<compile_context>
chip_gen: v5e
topology: v5e:2x2
jax: 0.10.0
libtpu: 0.0.40
codegen_flags: <defaults>
</compile_context>

<pallas_src>
import jax
import jax.numpy as jnp
from jax.experimental import pallas as pl
from jax.experimental.pallas import tpu as pltpu


LATENT = 1024
NUM_DENSE = 8192
OUT_DIM = 3 * NUM_DENSE
TN = 4096                       # decoder column tile; wd3 pre-tiled to this width
NB = OUT_DIM // TN


def _round_up(x, m):
    return (x + m - 1) // m * m


# ---------------------------------------------------------------------------
# Kernels
# ---------------------------------------------------------------------------

def encoder_kernel(x_ref, w1_ref, b1_ref, w2_ref, b2_ref,
                   w3g_ref, w3f_ref, b3_ref, w4_ref, b4_ref,
                   out_ref, g_sc, lat_sc, gb_sc):
    """Grid = (batch, pass, point-chunk); running-max accumulators in VMEM.

    pass 0: per-chunk first_conv -> running max of f (256-d)        -> g_sc
    pass 1: recompute f, second_conv with hoisted g@w3g+b3 (gb_sc),
            running max of the 1024-d feature                        -> lat_sc
    """
    pss = pl.program_id(1)
    c = pl.program_id(2)
    nc = pl.num_programs(2)

    @pl.when(jnp.logical_and(pss == 0, c == 0))
    def _init():
        g_sc[...] = jnp.full(g_sc.shape, -jnp.inf, dtype=g_sc.dtype)
        lat_sc[...] = jnp.full(lat_sc.shape, -jnp.inf, dtype=lat_sc.dtype)

    x = x_ref[0]                                                   # (tp, 3) f32
    # first_conv[0:3]: Conv1d(3,128,1) + BN(folded) + ReLU  (tiny; keep f32)
    h1 = jnp.dot(x, w1_ref[...], preferred_element_type=jnp.float32) + b1_ref[...]
    h1 = jnp.maximum(h1, 0.0)                                      # (tp, 128)
    # first_conv[3]: Conv1d(128,256,1)   (bf16 MXU, f32 accumulate)
    f = jnp.dot(h1.astype(jnp.bfloat16), w2_ref[...],
                preferred_element_type=jnp.float32) + b2_ref[...]  # (tp, 256)

    @pl.when(pss == 0)
    def _pass0():
        g_sc[...] = jnp.maximum(g_sc[...], jnp.max(f, axis=0, keepdims=True))

    # Hoisted once per batch: g @ w3g + b3  (M=1 matmul, was per-chunk before).
    @pl.when(jnp.logical_and(pss == 1, c == 0))
    def _hoist_gw3():
        g = g_sc[...].astype(jnp.bfloat16)                         # (1, 256)
        gb_sc[...] = (jnp.dot(g, w3g_ref[...],
                              preferred_element_type=jnp.float32) + b3_ref[...])

    @pl.when(pss == 1)
    def _pass1():
        # second_conv[0:3] on concat([g.expand, f]) via split weights:
        #   cat @ W3 + b3 == (g @ W3[:256] + b3) + f @ W3[256:]
        h2 = jnp.dot(f.astype(jnp.bfloat16), w3f_ref[...],
                     preferred_element_type=jnp.float32) + gb_sc[...]
        h2 = jnp.maximum(h2, 0.0)                                  # (tp, 512)
        # second_conv[3]: Conv1d(512,1024,1)
        f2 = jnp.dot(h2.astype(jnp.bfloat16), w4_ref[...],
                     preferred_element_type=jnp.float32) + b4_ref[...]  # (tp,1024)
        lat_sc[...] = jnp.maximum(lat_sc[...], jnp.max(f2, axis=0, keepdims=True))

    @pl.when(jnp.logical_and(pss == 1, c == nc - 1))
    def _finalize():
        out_ref[0] = lat_sc[...]


def decoder_hidden_kernel(lat_ref, wd1_ref, bd1_ref, wd2_ref, bd2_ref, h_ref):
    """Decoder hidden MLP, computed ONCE (hoisted out of the column loop)."""
    h = jnp.dot(lat_ref[...].astype(jnp.bfloat16), wd1_ref[...],
                preferred_element_type=jnp.float32) + bd1_ref[...]
    h = jnp.maximum(h, 0.0)
    h = jnp.dot(h.astype(jnp.bfloat16), wd2_ref[...],
                preferred_element_type=jnp.float32) + bd2_ref[...]
    h = jnp.maximum(h, 0.0)
    h_ref[...] = h.astype(h_ref.dtype)                             # bf16 out


def decoder_out_kernel(h_ref, wd3_ref, bd3_ref, out_ref):
    """Pure streaming kernel: one contiguous block-major wd3 tile per step."""
    out_ref[...] = (jnp.dot(h_ref[...], wd3_ref[0],
                            preferred_element_type=jnp.float32) + bd3_ref[...])


# ---------------------------------------------------------------------------
# Wrapper
# ---------------------------------------------------------------------------

def mva_forward(xyz, p, *, tp=1024):
    """xyz: (B, 3, N) float32 (PyTorch NCW). Returns (B, 3, 8192) float32."""
    B, C, N = xyz.shape
    assert C == 3
    # NOTE: the (1, tp, 3) x tile is lane-padded 3->128 in VMEM; acceptable
    # today (hidden under pass-1 compute) — revisit if tp grows further.
    x = jnp.transpose(xyz, (0, 2, 1)).astype(jnp.float32)          # (B, N, 3)

    # Pad the points axis so it splits into whole chunks.  Padding repeats
    # point 0, which leaves both global max-pools unchanged.
    n8 = _round_up(N, 8)
    tp_eff = min(tp, n8)
    assert tp_eff % 8 == 0
    n_pad = _round_up(n8, tp_eff)
    if n_pad != N:
        pad = jnp.broadcast_to(x[:, :1, :], (B, n_pad - N, 3))
        x = jnp.concatenate([x, pad], axis=1)
    num_chunks = n_pad // tp_eff

    # ---- encoder: grid over (batch, pass, point chunk) ----
    latent = pl.pallas_call(
        encoder_kernel,
        out_shape=jax.ShapeDtypeStruct((B, 1, LATENT), jnp.float32),
        grid=(B, 2, num_chunks),
        in_specs=[
            pl.BlockSpec((1, tp_eff, 3), lambda b, s, c: (b, c, 0)),
            pl.BlockSpec((3, 128), lambda b, s, c: (0, 0)),
            pl.BlockSpec((1, 128), lambda b, s, c: (0, 0)),
            pl.BlockSpec((128, 256), lambda b, s, c: (0, 0)),
            pl.BlockSpec((1, 256), lambda b, s, c: (0, 0)),
            pl.BlockSpec((256, 512), lambda b, s, c: (0, 0)),
            pl.BlockSpec((256, 512), lambda b, s, c: (0, 0)),
            pl.BlockSpec((1, 512), lambda b, s, c: (0, 0)),
            pl.BlockSpec((512, LATENT), lambda b, s, c: (0, 0)),
            pl.BlockSpec((1, LATENT), lambda b, s, c: (0, 0)),
        ],
        out_specs=pl.BlockSpec((1, 1, LATENT), lambda b, s, c: (b, 0, 0)),
        scratch_shapes=[pltpu.VMEM((1, 256), jnp.float32),     # running max of f
                        pltpu.VMEM((1, LATENT), jnp.float32),  # running max of f2
                        pltpu.VMEM((1, 512), jnp.float32)],    # hoisted g@w3g + b3
        compiler_params=pltpu.CompilerParams(
            dimension_semantics=("parallel", "arbitrary", "arbitrary"),
            vmem_limit_bytes=40 * 1024 * 1024),
    )(x, p["w1"], p["b1"], p["w2"], p["b2"],
      p["w3g"], p["w3f"], p["b3"], p["w4"], p["b4"])
    latent = latent[:, 0, :]                                       # (B, 1024)

    # ---- decoder: pad B to a sublane multiple so (B, tn) stores are unmasked ----
    b_pad = _round_up(B, 8)
    if b_pad != B:
        latent = jnp.concatenate(
            [latent, jnp.zeros((b_pad - B, LATENT), jnp.float32)], axis=0)

    # Hidden MLP once (hoisted), output bf16 to feed the streaming kernel.
    h_bf = pl.pallas_call(
        decoder_hidden_kernel,
        out_shape=jax.ShapeDtypeStruct((b_pad, LATENT), jnp.bfloat16),
        grid=(1,),
        in_specs=[
            pl.BlockSpec((b_pad, LATENT), lambda i: (0, 0)),
            pl.BlockSpec((LATENT, LATENT), lambda i: (0, 0)),
            pl.BlockSpec((1, LATENT), lambda i: (0, 0)),
            pl.BlockSpec((LATENT, LATENT), lambda i: (0, 0)),
            pl.BlockSpec((1, LATENT), lambda i: (0, 0)),
        ],
        out_specs=pl.BlockSpec((b_pad, LATENT), lambda i: (0, 0)),
        compiler_params=pltpu.CompilerParams(
            vmem_limit_bytes=24 * 1024 * 1024),
    )(latent, p["wd1"], p["bd1"], p["wd2"], p["bd2"])

    # Final layer: stream the block-major-pre-tiled wd3 (one contiguous DMA
    # per 1024 x TN column tile), column axis "parallel" for megacore.
    wd3t = p["wd3t"]                                               # (NB, 1024, TN)
    nb, _, tn = wd3t.shape
    pre = pl.pallas_call(
        decoder_out_kernel,
        out_shape=jax.ShapeDtypeStruct((b_pad, OUT_DIM), jnp.float32),
        grid=(nb,),
        in_specs=[
            pl.BlockSpec((b_pad, LATENT), lambda j: (0, 0)),
            pl.BlockSpec((1, LATENT, tn), lambda j: (j, 0, 0)),
            pl.BlockSpec((1, tn), lambda j: (0, j)),
        ],
        out_specs=pl.BlockSpec((b_pad, tn), lambda j: (0, j)),
        compiler_params=pltpu.CompilerParams(
            dimension_semantics=("parallel",),
            vmem_limit_bytes=32 * 1024 * 1024),
    )(h_bf, wd3t, p["bd3"])

    # matches pre.view(-1, 3, 8192).contiguous()
    return pre[:B].reshape(B, 3, NUM_DENSE)


# ---------------------------------------------------------------------------
# Deterministic parameter init (PyTorch-style U(-1/sqrt(fan_in), ...)),
# BN folded (eval mode), large weights stored in bf16, wd3 pre-tiled
# block-major (NB, LATENT, TN) for contiguous per-tile DMA.
# ---------------------------------------------------------------------------

def init_params(key):
    def lin(k, fan_in, fan_out):
        kw, kb = jax.random.split(k)
        bound = 1.0 / (fan_in ** 0.5)
        w = jax.random.uniform(kw, (fan_in, fan_out), jnp.float32, -bound, bound)
        b = jax.random.uniform(kb, (1, fan_out), jnp.float32, -bound, bound)
        return w, b

    ks = jax.random.split(key, 7)
    eps = 1e-5
    bn_scale = 1.0 / jnp.sqrt(1.0 + eps)   # gamma=1, beta=0, mean=0, var=1

    # first_conv
    w1, b1 = lin(ks[0], 3, 128)
    w1, b1 = w1 * bn_scale, b1 * bn_scale          # fold BN1 (eval mode)
    w2, b2 = lin(ks[1], 128, 256)
    # second_conv
    w3, b3 = lin(ks[2], 512, 512)
    w3, b3 = w3 * bn_scale, b3 * bn_scale          # fold BN2 (eval mode)
    w3g, w3f = w3[:256], w3[256:]                  # [global ; per-point] split
    w4, b4 = lin(ks[3], 512, LATENT)
    # decoder
    wd1, bd1 = lin(ks[4], LATENT, LATENT)
    wd2, bd2 = lin(ks[5], LATENT, LATENT)
    wd3, bd3 = lin(ks[6], LATENT, OUT_DIM)

    bf16 = jnp.bfloat16
    # Pre-tile wd3 block-major so each decoder column tile is one contiguous DMA.
    wd3t = jnp.transpose(wd3.astype(bf16).reshape(LATENT, NB, TN), (1, 0, 2))

    return dict(
        w1=w1, b1=b1,
        w2=w2.astype(bf16), b2=b2,
        w3g=w3g.astype(bf16), w3f=w3f.astype(bf16), b3=b3,
        w4=w4.astype(bf16), b4=b4,
        wd1=wd1.astype(bf16), bd1=bd1,
        wd2=wd2.astype(bf16), bd2=bd2,
        wd3t=wd3t, bd3=bd3,
    )


# ---------------------------------------------------------------------------
# Pure-JAX reference (same bf16/f32 mixed-precision math) for correctness
# ---------------------------------------------------------------------------

def _bdot(a, b):
    return jnp.matmul(a.astype(jnp.bfloat16), b.astype(jnp.bfloat16),
                      preferred_element_type=jnp.float32)


def mva_reference(xyz, p):
    x = jnp.transpose(xyz, (0, 2, 1)).astype(jnp.float32)          # (B, N, 3)
    h1 = jax.nn.relu(jnp.einsum("bnc,cd->bnd", x, p["w1"],
                                preferred_element_type=jnp.float32) + p["b1"])
    f = _bdot(h1, p["w2"]) + p["b2"]                               # (B, N, 256)
    g = jnp.max(f, axis=1, keepdims=True)                          # (B, 1, 256)
    h2 = jax.nn.relu(_bdot(g, p["w3g"]) + _bdot(f, p["w3f"]) + p["b3"])
    f2 = _bdot(h2, p["w4"]) + p["b4"]                              # (B, N, 1024)
    lat = jnp.max(f2, axis=1)                                      # (B, 1024)
    h = jax.nn.relu(_bdot(lat, p["wd1"]) + p["bd1"])
    h = jax.nn.relu(_bdot(h, p["wd2"]) + p["bd2"])
    wd3 = jnp.transpose(p["wd3t"], (1, 0, 2)).reshape(LATENT, OUT_DIM)
    out = _bdot(h, wd3) + p["bd3"]
    return out.reshape(out.shape[0], 3, NUM_DENSE)


if __name__ == "__main__":
    key = jax.random.PRNGKey(0)
    kp, kx = jax.random.split(key)
    params = init_params(kp)

    B, N = 2, 16                                 # small point cloud, 3 channels
    xyz = jax.random.normal(kx, (B, 3, N), jnp.float32)

    out = jax.block_until_ready(mva_forward(xyz, params))
    assert out.shape == (B, 3, NUM_DENSE), out.shape

    ref = mva_reference(xyz, params)
    rel_err = float(jnp.max(jnp.abs(out - ref)) / (jnp.max(jnp.abs(ref)) + 1e-6))
    assert rel_err < 2e-2, f"kernel/reference mismatch, rel_err={rel_err}"

    print("KERNEL_OK")
</pallas_src>

<mosaic_0001>
module attributes {stable_mosaic.version = 11 : i64} {
  func.func @encoder_kernel(%arg0: i32, %arg1: i32, %arg2: i32, %arg3: memref<1x16x3xf32, #tpu.memory_space<vmem>>, %arg4: memref<3x128xf32, #tpu.memory_space<vmem>>, %arg5: memref<1x128xf32, #tpu.memory_space<vmem>>, %arg6: memref<128x256xbf16, #tpu.memory_space<vmem>>, %arg7: memref<1x256xf32, #tpu.memory_space<vmem>>, %arg8: memref<256x512xbf16, #tpu.memory_space<vmem>>, %arg9: memref<256x512xbf16, #tpu.memory_space<vmem>>, %arg10: memref<1x512xf32, #tpu.memory_space<vmem>>, %arg11: memref<512x1024xbf16, #tpu.memory_space<vmem>>, %arg12: memref<1x1024xf32, #tpu.memory_space<vmem>>, %arg13: memref<1x1x1024xf32, #tpu.memory_space<vmem>>, %arg14: memref<1x256xf32, #tpu.memory_space<vmem>>, %arg15: memref<1x1024xf32, #tpu.memory_space<vmem>>, %arg16: memref<1x512xf32, #tpu.memory_space<vmem>>) attributes {dimension_semantics = [#tpu.dimension_semantics<parallel>, #tpu.dimension_semantics<arbitrary>, #tpu.dimension_semantics<arbitrary>], iteration_bounds = array<i64: 2, 2, 1>, scalar_prefetch = 0 : i64, scratch_operands = 3 : i64, tpu.core_type = #tpu.core_type<tc>, window_params = [{transform_indices = @transform_0, window_bounds = array<i64: 1, 16, 3>}, {pipeline_mode = #tpu.pipeline_mode<synchronous>, transform_indices = @transform_1, window_bounds = array<i64: 3, 128>}, {pipeline_mode = #tpu.pipeline_mode<synchronous>, transform_indices = @transform_2, window_bounds = array<i64: 1, 128>}, {pipeline_mode = #tpu.pipeline_mode<synchronous>, transform_indices = @transform_3, window_bounds = array<i64: 128, 256>}, {pipeline_mode = #tpu.pipeline_mode<synchronous>, transform_indices = @transform_4, window_bounds = array<i64: 1, 256>}, {pipeline_mode = #tpu.pipeline_mode<synchronous>, transform_indices = @transform_5, window_bounds = array<i64: 256, 512>}, {pipeline_mode = #tpu.pipeline_mode<synchronous>, transform_indices = @transform_6, window_bounds = array<i64: 256, 512>}, {pipeline_mode = #tpu.pipeline_mode<synchronous>, transform_indices = @transform_7, window_bounds = array<i64: 1, 512>}, {pipeline_mode = #tpu.pipeline_mode<synchronous>, transform_indices = @transform_8, window_bounds = array<i64: 512, 1024>}, {pipeline_mode = #tpu.pipeline_mode<synchronous>, transform_indices = @transform_9, window_bounds = array<i64: 1, 1024>}, {transform_indices = @transform_10, window_bounds = array<i64: 1, 1, 1024>}]} {
    %c0_i32 = arith.constant 0 : i32
    %0 = arith.cmpi eq, %arg1, %c0_i32 : i32
    %c0_i32_0 = arith.constant 0 : i32
    %1 = arith.cmpi eq, %arg2, %c0_i32_0 : i32
    %2 = arith.andi %0, %1 : i1
    %3 = arith.extui %2 : i1 to i32
    %c0_i32_1 = arith.constant 0 : i32
    %4 = arith.cmpi ne, %3, %c0_i32_1 : i32
    scf.if %4 {
      %cst_23 = arith.constant 0xFF800000 : f32
      %36 = vector.broadcast %cst_23 : f32 to vector<1x256xf32>
      %c0_24 = arith.constant 0 : index
      %c0_25 = arith.constant 0 : index
      %37 = vector.load %arg14[%c0_24, %c0_25] : memref<1x256xf32, #tpu.memory_space<vmem>>, vector<1x256xf32>
      tpu.vector_store %arg14[%c0_24, %c0_25], %36 {strides = array<i32>} : memref<1x256xf32, #tpu.memory_space<vmem>>, vector<1x256xf32>,
      %cst_26 = arith.constant 0xFF800000 : f32
      %38 = vector.broadcast %cst_26 : f32 to vector<1x1024xf32>
      %c0_27 = arith.constant 0 : index
      %c0_28 = arith.constant 0 : index
      %39 = vector.load %arg15[%c0_27, %c0_28] : memref<1x1024xf32, #tpu.memory_space<vmem>>, vector<1x1024xf32>
      tpu.vector_store %arg15[%c0_27, %c0_28], %38 {strides = array<i32>} : memref<1x1024xf32, #tpu.memory_space<vmem>>, vector<1x1024xf32>,
    } else {
    }
    %c0 = arith.constant 0 : index
    %c0_2 = arith.constant 0 : index
    %c0_3 = arith.constant 0 : index
    %5 = vector.load %arg3[%c0, %c0_2, %c0_3] : memref<1x16x3xf32, #tpu.memory_space<vmem>>, vector<1x16x3xf32>
    %6 = vector.shape_cast %5 : vector<1x16x3xf32> to vector<16x3xf32>
    %c0_4 = arith.constant 0 : index
    %c0_5 = arith.constant 0 : index
    %7 = vector.load %arg4[%c0_4, %c0_5] : memref<3x128xf32, #tpu.memory_space<vmem>>, vector<3x128xf32>
    %cst = arith.constant dense<0.000000e+00> : vector<16x128xf32>
    %8 = tpu.matmul %6, %7, %cst {dimension_numbers = #tpu.dot_dimension_numbers<[1], [0], [0], [1], [0, 0, 1, 1], [], []>} : vector<16x3xf32>, vector<3x128xf32>, vector<16x128xf32> -> vector<16x128xf32>
    %c0_6 = arith.constant 0 : index
    %c0_7 = arith.constant 0 : index
    %9 = vector.load %arg5[%c0_6, %c0_7] : memref<1x128xf32, #tpu.memory_space<vmem>>, vector<1x128xf32>
    %10 = vector.broadcast %9 : vector<1x128xf32> to vector<16x128xf32>
    %11 = arith.addf %8, %10 : vector<16x128xf32>
    %cst_8 = arith.constant 0.000000e+00 : f32
    %12 = vector.broadcast %cst_8 : f32 to vector<16x128xf32>
    %13 = arith.maximumf %11, %12 : vector<16x128xf32>
    %14 = arith.truncf %13 : vector<16x128xf32> to vector<16x128xbf16>
    %c0_9 = arith.constant 0 : index
    %c0_10 = arith.constant 0 : index
    %15 = vector.load %arg6[%c0_9, %c0_10] : memref<128x256xbf16, #tpu.memory_space<vmem>>, vector<128x256xbf16>
    %cst_11 = arith.constant dense<0.000000e+00> : vector<16x256xf32>
    %16 = tpu.matmul %14, %15, %cst_11 {dimension_numbers = #tpu.dot_dimension_numbers<[1], [0], [0], [1], [0, 0, 1, 1], [], []>} : vector<16x128xbf16>, vector<128x256xbf16>, vector<16x256xf32> -> vector<16x256xf32>
    %c0_12 = arith.constant 0 : index
    %c0_13 = arith.constant 0 : index
    %17 = vector.load %arg7[%c0_12, %c0_13] : memref<1x256xf32, #tpu.memory_space<vmem>>, vector<1x256xf32>
    %18 = vector.broadcast %17 : vector<1x256xf32> to vector<16x256xf32>
    %19 = arith.addf %16, %18 : vector<16x256xf32>
    %c0_i32_14 = arith.constant 0 : i32
    %20 = arith.cmpi eq, %arg1, %c0_i32_14 : i32
    %21 = arith.extui %20 : i1 to i32
    %c0_i32_15 = arith.constant 0 : i32
    %22 = arith.cmpi ne, %21, %c0_i32_15 : i32
    scf.if %22 {
      %c0_23 = arith.constant 0 : index
      %c0_24 = arith.constant 0 : index
      %36 = vector.load %arg14[%c0_23, %c0_24] : memref<1x256xf32, #tpu.memory_space<vmem>>, vector<1x256xf32>
      %cst_25 = arith.constant dense<0xFF800000> : vector<256xf32>
      %37 = vector.multi_reduction <maximumf>, %19, %cst_25 [0] : vector<16x256xf32> to vector<256xf32>
      %38 = vector.shape_cast %37 : vector<256xf32> to vector<1x256xf32>
      %39 = arith.maximumf %36, %38 : vector<1x256xf32>
      %c0_26 = arith.constant 0 : index
      %c0_27 = arith.constant 0 : index
      %40 = vector.load %arg14[%c0_26, %c0_27] : memref<1x256xf32, #tpu.memory_space<vmem>>, vector<1x256xf32>
      tpu.vector_store %arg14[%c0_26, %c0_27], %39 {strides = array<i32>} : memref<1x256xf32, #tpu.memory_space<vmem>>, vector<1x256xf32>,
    } else {
    }
    %c1_i32 = arith.constant 1 : i32
    %23 = arith.cmpi eq, %arg1, %c1_i32 : i32
    %c0_i32_16 = arith.constant 0 : i32
    %24 = arith.cmpi eq, %arg2, %c0_i32_16 : i32
    %25 = arith.andi %23, %24 : i1
    %26 = arith.extui %25 : i1 to i32
    %c0_i32_17 = arith.constant 0 : i32
    %27 = arith.cmpi ne, %26, %c0_i32_17 : i32
    scf.if %27 {
      %c0_23 = arith.constant 0 : index
      %c0_24 = arith.constant 0 : index
      %36 = vector.load %arg14[%c0_23, %c0_24] : memref<1x256xf32, #tpu.memory_space<vmem>>, vector<1x256xf32>
      %37 = arith.truncf %36 : vector<1x256xf32> to vector<1x256xbf16>
      %c0_25 = arith.constant 0 : index
      %c0_26 = arith.constant 0 : index
      %38 = vector.load %arg8[%c0_25, %c0_26] : memref<256x512xbf16, #tpu.memory_space<vmem>>, vector<256x512xbf16>
      %cst_27 = arith.constant dense<0.000000e+00> : vector<1x512xf32>
      %39 = tpu.matmul %37, %38, %cst_27 {dimension_numbers = #tpu.dot_dimension_numbers<[1], [0], [0], [1], [0, 0, 1, 1], [], []>} : vector<1x256xbf16>, vector<256x512xbf16>, vector<1x512xf32> -> vector<1x512xf32>
      %c0_28 = arith.constant 0 : index
      %c0_29 = arith.constant 0 : index
      %40 = vector.load %arg10[%c0_28, %c0_29] : memref<1x512xf32, #tpu.memory_space<vmem>>, vector<1x512xf32>
      %41 = arith.addf %39, %40 : vector<1x512xf32>
      %c0_30 = arith.constant 0 : index
      %c0_31 = arith.constant 0 : index
      %42 = vector.load %arg16[%c0_30, %c0_31] : memref<1x512xf32, #tpu.memory_space<vmem>>, vector<1x512xf32>
      tpu.vector_store %arg16[%c0_30, %c0_31], %41 {strides = array<i32>} : memref<1x512xf32, #tpu.memory_space<vmem>>, vector<1x512xf32>,
    } else {
    }
    %c1_i32_18 = arith.constant 1 : i32
    %28 = arith.cmpi eq, %arg1, %c1_i32_18 : i32
    %29 = arith.extui %28 : i1 to i32
    %c0_i32_19 = arith.constant 0 : i32
    %30 = arith.cmpi ne, %29, %c0_i32_19 : i32
    scf.if %30 {
      %36 = arith.truncf %19 : vector<16x256xf32> to vector<16x256xbf16>
      %c0_23 = arith.constant 0 : index
      %c0_24 = arith.constant 0 : index
      %37 = vector.load %arg9[%c0_23, %c0_24] : memref<256x512xbf16, #tpu.memory_space<vmem>>, vector<256x512xbf16>
      %cst_25 = arith.constant dense<0.000000e+00> : vector<16x512xf32>
      %38 = tpu.matmul %36, %37, %cst_25 {dimension_numbers = #tpu.dot_dimension_numbers<[1], [0], [0], [1], [0, 0, 1, 1], [], []>} : vector<16x256xbf16>, vector<256x512xbf16>, vector<16x512xf32> -> vector<16x512xf32>
      %c0_26 = arith.constant 0 : index
      %c0_27 = arith.constant 0 : index
      %39 = vector.load %arg16[%c0_26, %c0_27] : memref<1x512xf32, #tpu.memory_space<vmem>>, vector<1x512xf32>
      %40 = vector.broadcast %39 : vector<1x512xf32> to vector<16x512xf32>
      %41 = arith.addf %38, %40 : vector<16x512xf32>
      %cst_28 = arith.constant 0.000000e+00 : f32
      %42 = vector.broadcast %cst_28 : f32 to vector<16x512xf32>
      %43 = arith.maximumf %41, %42 : vector<16x512xf32>
      %44 = arith.truncf %43 : vector<16x512xf32> to vector<16x512xbf16>
      %c0_29 = arith.constant 0 : index
      %c0_30 = arith.constant 0 : index
      %45 = vector.load %arg11[%c0_29, %c0_30] : memref<512x1024xbf16, #tpu.memory_space<vmem>>, vector<512x1024xbf16>
      %cst_31 = arith.constant dense<0.000000e+00> : vector<16x1024xf32>
      %46 = tpu.matmul %44, %45, %cst_31 {dimension_numbers = #tpu.dot_dimension_numbers<[1], [0], [0], [1], [0, 0, 1, 1], [], []>} : vector<16x512xbf16>, vector<512x1024xbf16>, vector<16x1024xf32> -> vector<16x1024xf32>
      %c0_32 = arith.constant 0 : index
      %c0_33 = arith.constant 0 : index
      %47 = vector.load %arg12[%c0_32, %c0_33] : memref<1x1024xf32, #tpu.memory_space<vmem>>, vector<1x1024xf32>
      %48 = vector.broadcast %47 : vector<1x1024xf32> to vector<16x1024xf32>
      %49 = arith.addf %46, %48 : vector<16x1024xf32>
      %c0_34 = arith.constant 0 : index
      %c0_35 = arith.constant 0 : index
      %50 = vector.load %arg15[%c0_34, %c0_35] : memref<1x1024xf32, #tpu.memory_space<vmem>>, vector<1x1024xf32>
      %cst_36 = arith.constant dense<0xFF800000> : vector<1024xf32>
      %51 = vector.multi_reduction <maximumf>, %49, %cst_36 [0] : vector<16x1024xf32> to vector<1024xf32>
      %52 = vector.shape_cast %51 : vector<1024xf32> to vector<1x1024xf32>
      %53 = arith.maximumf %50, %52 : vector<1x1024xf32>
      %c0_37 = arith.constant 0 : index
      %c0_38 = arith.constant 0 : index
      %54 = vector.load %arg15[%c0_37, %c0_38] : memref<1x1024xf32, #tpu.memory_space<vmem>>, vector<1x1024xf32>
      tpu.vector_store %arg15[%c0_37, %c0_38], %53 {strides = array<i32>} : memref<1x1024xf32, #tpu.memory_space<vmem>>, vector<1x1024xf32>,
    } else {
    }
    %c1_i32_20 = arith.constant 1 : i32
    %31 = arith.cmpi eq, %arg1, %c1_i32_20 : i32
    %c0_i32_21 = arith.constant 0 : i32
    %32 = arith.cmpi eq, %arg2, %c0_i32_21 : i32
    %33 = arith.andi %31, %32 : i1
    %34 = arith.extui %33 : i1 to i32
    %c0_i32_22 = arith.constant 0 : i32
    %35 = arith.cmpi ne, %34, %c0_i32_22 : i32
    scf.if %35 {
      %c0_23 = arith.constant 0 : index
      %c0_24 = arith.constant 0 : index
      %36 = vector.load %arg15[%c0_23, %c0_24] : memref<1x1024xf32, #tpu.memory_space<vmem>>, vector<1x1024xf32>
      %c0_25 = arith.constant 0 : index
      %c0_26 = arith.constant 0 : index
      %c0_27 = arith.constant 0 : index
      %37 = vector.load %arg13[%c0_25, %c0_26, %c0_27] : memref<1x1x1024xf32, #tpu.memory_space<vmem>>, vector<1x1x1024xf32>
      %38 = vector.shape_cast %37 : vector<1x1x1024xf32> to vector<1x1024xf32>
      %39 = vector.shape_cast %36 : vector<1x1024xf32> to vector<1x1x1024xf32>
      tpu.vector_store %arg13[%c0_25, %c0_26, %c0_27], %39 {strides = array<i32>} : memref<1x1x1024xf32, #tpu.memory_space<vmem>>, vector<1x1x1024xf32>,
    } else {
    }
    return
  }
  func.func @transform_0(%arg0: i32, %arg1: i32, %arg2: i32) -> (i32, i32, i32) {
    %c0_i32 = arith.constant 0 : i32
    %c0_i32_0 = arith.constant 0 : i32
    return %arg0, %arg2, %c0_i32 : i32, i32, i32
  }
  func.func @transform_1(%arg0: i32, %arg1: i32, %arg2: i32) -> (i32, i32) {
    %c0_i32 = arith.constant 0 : i32
    %c0_i32_0 = arith.constant 0 : i32
    %c0_i32_1 = arith.constant 0 : i32
    return %c0_i32, %c0_i32_0 : i32, i32
  }
  func.func @transform_2(%arg0: i32, %arg1: i32, %arg2: i32) -> (i32, i32) {
    %c0_i32 = arith.constant 0 : i32
    %c0_i32_0 = arith.constant 0 : i32
    %c0_i32_1 = arith.constant 0 : i32
    return %c0_i32, %c0_i32_0 : i32, i32
  }
  func.func @transform_3(%arg0: i32, %arg1: i32, %arg2: i32) -> (i32, i32) {
    %c0_i32 = arith.constant 0 : i32
    %c0_i32_0 = arith.constant 0 : i32
    %c0_i32_1 = arith.constant 0 : i32
    return %c0_i32, %c0_i32_0 : i32, i32
  }
  func.func @transform_4(%arg0: i32, %arg1: i32, %arg2: i32) -> (i32, i32) {
    %c0_i32 = arith.constant 0 : i32
    %c0_i32_0 = arith.constant 0 : i32
    %c0_i32_1 = arith.constant 0 : i32
    return %c0_i32, %c0_i32_0 : i32, i32
  }
  func.func @transform_5(%arg0: i32, %arg1: i32, %arg2: i32) -> (i32, i32) {
    %c0_i32 = arith.constant 0 : i32
    %c0_i32_0 = arith.constant 0 : i32
    %c0_i32_1 = arith.constant 0 : i32
    return %c0_i32, %c0_i32_0 : i32, i32
  }
  func.func @transform_6(%arg0: i32, %arg1: i32, %arg2: i32) -> (i32, i32) {
    %c0_i32 = arith.constant 0 : i32
    %c0_i32_0 = arith.constant 0 : i32
    %c0_i32_1 = arith.constant 0 : i32
    return %c0_i32, %c0_i32_0 : i32, i32
  }
  func.func @transform_7(%arg0: i32, %arg1: i32, %arg2: i32) -> (i32, i32) {
    %c0_i32 = arith.constant 0 : i32
    %c0_i32_0 = arith.constant 0 : i32
    %c0_i32_1 = arith.constant 0 : i32
    return %c0_i32, %c0_i32_0 : i32, i32
  }
  func.func @transform_8(%arg0: i32, %arg1: i32, %arg2: i32) -> (i32, i32) {
    %c0_i32 = arith.constant 0 : i32
    %c0_i32_0 = arith.constant 0 : i32
    %c0_i32_1 = arith.constant 0 : i32
    return %c0_i32, %c0_i32_0 : i32, i32
  }
  func.func @transform_9(%arg0: i32, %arg1: i32, %arg2: i32) -> (i32, i32) {
    %c0_i32 = arith.constant 0 : i32
    %c0_i32_0 = arith.constant 0 : i32
    %c0_i32_1 = arith.constant 0 : i32
    return %c0_i32, %c0_i32_0 : i32, i32
  }
  func.func @transform_10(%arg0: i32, %arg1: i32, %arg2: i32) -> (i32, i32, i32) {
    %c0_i32 = arith.constant 0 : i32
    %c0_i32_0 = arith.constant 0 : i32
    %c0_i32_1 = arith.constant 0 : i32
    return %arg0, %c0_i32, %c0_i32_0 : i32, i32, i32
  }
}

</mosaic_0001>

<bundles_post_ra>
// kernel: tpu_custom_call.1
= control target key start
LH: loop header
LB: loop body
LE: loop exit
PB: predicated region body
PF: predicated region fallthrough
CT: control target
= control target key end

     0   :  { %s6740_s0 = inlined_call_operand.vmem [shape: f32[2,16,3], index: 0, kind: input, shape index: {}]   ;;  %s6741_s1 = inlined_call_operand.vmem [shape: f32[3,128], index: 1, kind: input, shape index: {}]   ;;  %s6742_s2 = inlined_call_operand.vmem [shape: f32[1,128], index: 2, kind: input, shape index: {}]   ;;  %s6743_s3 = inlined_call_operand.hbm [shape: bf16[128,256], index: 3, kind: input, shape index: {}]   ;;  %s6744_s4 = inlined_call_operand.vmem [shape: f32[1,256], index: 4, kind: input, shape index: {}]   ;;  %s6745_s5 = inlined_call_operand.hbm [shape: bf16[256,512], index: 5, kind: input, shape index: {}]   ;;  %s6746_s6 = inlined_call_operand.hbm [shape: bf16[256,512], index: 6, kind: input, shape index: {}]   ;;  %s6747_s7 = inlined_call_operand.vmem [shape: f32[1,512], index: 7, kind: input, shape index: {}]   ;;  %s6748_s8 = inlined_call_operand.hbm [shape: bf16[512,1024], index: 8, kind: input, shape index: {}]   ;;  %s6749_s9 = inlined_call_operand.vmem [shape: f32[1,1024], index: 9, kind: input, shape index: {}]   ;;  %s6750_s10 = inlined_call_operand.hbm [shape: f32[2,1,1024], index: 10, kind: output, shape index: {}]  }
   0x1   :  { %6760 = sst [smem:[#allocation27_spill]] %s6743_s3 }
   0x2   :  { %6761 = sst [smem:[#allocation28_spill]] %s6745_s5 }
   0x3   :  { %6762 = sst [smem:[#allocation29_spill]] %s6750_s10 }
   0x4   :  { %15 = vsyncpa [#allocation6], 0 }
   0x5   :  { %16 = vsyncpa [#allocation9], 0 }
   0x6   :  { %17 = vsyncpa [#allocation12], 0 }
   0x7   :  { %18 = vsyncpa [#allocation7], 0 }
   0x8   :  { %20 = vsyncpa [#allocation7 + $0x1], 0  ;;  %s6404_s13 = smov 0   ;;  %s6406_s14 = smov 0  }
   0x9   :  { %s6408_s15 = smov 0   ;;  %s6410_s16 = smov 0  }
   0xa   :  { %s6412_s17 = smov 0   ;;  %s6414_s18 = smov 0  }
   0xb   :  { %s6416_s19 = smov 0   ;;  %s6418_s20 = smov 0  }
   0xc LB: > { %6763 = sst [smem:[#allocation18_spill]] %s6308_s13  ;;  %s3960_s21 = sadd.s32 4294967295, %s6336_s20   ;;  %s6336_s20 = sphi %s6418_s20, %s26_s20   ;;  %s6332_s19 = sphi %s6416_s19, %s6789_s19   ;;  %s6328_s18 = sphi %s6414_s18, %s6788_s18   ;;  %s6324_s17 = sphi %s6412_s17, %s6787_s17   ;;  %s6320_s16 = sphi %s6410_s16, %s6786_s16   ;;  %s6316_s15 = sphi %s6408_s15, %s6785_s15   ;;  %s6312_s14 = sphi %s6406_s14, %s6791_s14   ;;  %s6308_s13 = sphi %s6404_s13, %s6790_s13  }
   0xd   : > { %6764 = sst [smem:[#allocation19_spill]] %s6316_s15  ;;  %s3961_s22 = sadd.s32 4294967294, %s6336_s20  }
   0xe   : > { %6765 = sst [smem:[#allocation20_spill]] %s6328_s18  ;;  %s41_s23 = sadd.s32 1, %s6328_s18 }
   0xf   : > { %6766 = sst [smem:[#allocation21_spill]] %s6332_s19  ;;  %s45_s24 = sadd.s32 1, %s6332_s19 }
  0x10   : > { %6767 = sst [smem:[#allocation22_spill]] %s6336_s20  ;;  %p43_p0 = scmp.ge.s32.totalorder %s41_s23, 2 }
  0x11   : > { %s269_s25 = sadd.s32 1, %s6316_s15  ;;  %p279_p1 = scmp.ne.s32.totalorder %s6316_s15, %s6312_s14 }
  0x12   : > { %p280_p2 = scmp.eq.s32.totalorder %s3960_s21, 3  ;;  %s6793_s23 = smov (%p43_p0, %s41_s23), 0 }
  0x13   : > { %6768 = sst [smem:[#allocation23_spill]] %s6793_s23  ;;  %s6795_s24 = smov (!%p43_p0, %s45_s24), %s6332_s19 }
  0x14   : > { %p6454_p3 = por %p280_p2, %p279_p1  ;;  %p285_p4 = scmp.ne.s32.totalorder %s6312_s14, %s6308_s13 }
  0x15   : > { %p47_p5 = scmp.ge.s32.totalorder %s6795_s24, 2  ;;  %p286_p6 = scmp.eq.s32.totalorder %s3961_s22, 3 }
  0x16   : > { %p3962_p7 = scmp.ge.s32.totalorder %s6336_s20, 1  ;;  %p293_p8 = scmp.lt.s32.totalorder %s6336_s20, 5 }
  0x17   : > { %s6797_s24 = smov (%p47_p5, %s6795_s24), 0  ;;  %p6464_p9 = por %p286_p6, %p285_p4 }
  0x18   : > { %6770 = sst [smem:[#allocation24_spill]] %s6797_s24  ;;  %p6468_p10 = pnand %p3962_p7, %p293_p8 }
  0x19   : > { %s6771_s27 = scalar_select %p6464_p9, 1, 0 }
  0x1a   : > { %s266_s29 = ssub.s32 %s6332_s19, %s6797_s24  ;;  %p6008_p12 = pneg %p6468_p10 }
  0x1b   : > { %6772 = sst [smem:[#allocation25_spill]] %s6771_s27  ;;  %p267_p11 = scmp.eq.s32.totalorder %s266_s29, 0 }
  0x1c   : > { %p6476_p13 = scmp.eq.s32.totalorder %s3960_s21, 0  ;;  %s6775_s5 = sld [smem:[#allocation28_spill]] }
  0x1d   : > { %s6484_s23 = scalar_select %p267_p11, %s6316_s15, %s269_s25  }
  0x1e   : > { %p6488_p0 = pnand %p6476_p13, %p6008_p12  ;;  %s6338_s29 = smov [#allocation8]  }
  0x1f   : > { %6776 = sst [smem:[#allocation26_spill]] %s6484_s23  ;;  %s329_s21 = sshll.u32 %s6338_s29, 4  ;;  %s330_s21 = int_to_ptr.vmem [resolvable:$true] %s329_s21 }
  0x20   : > { %s6339_s24 = smov 256   ;;  %s6340_s19 = smov 16  }
  0x21   : > { %s6778_s3 = sld [smem:[#allocation27_spill]]  ;;  %s341_s13 = sshll.u32 %s6746_s6, 4  ;;  %s342_s13 = int_to_ptr.hbm [resolvable:$true] %s341_s13 }
  0x22   : > { %s327_s22 = sshll.u32 %s6775_s5, 4  ;;  %s6341_s5 = smov [#allocation5]   ;;  %s328_s22 = int_to_ptr.hbm [resolvable:$true] %s327_s22 }
  0x23   : > { %6014 = dma.hbm_to_vmem [thread:$0]  (!%p6488_p0), %s328_s22, 8192, %s330_s21, [#allocation9], %s6339_s24, %s6339_s24, %s6340_s19  }
  0x24   : > { %s312_s23 = sshll.u32 %s6341_s5, 4  ;;  %s6342_s29 = smov 128   ;;  %s313_s23 = int_to_ptr.vmem [resolvable:$true] %s312_s23 }
  0x25   : > { %s6343_s20 = smov 8   ;;  %s6344_s22 = smov [#allocation10]  }
  0x26   : > { %s343_s21 = sshll.u32 %s6344_s22, 4  ;;  %s358_s12 = sshll.u32 %s6748_s8, 4  ;;  %s344_s21 = int_to_ptr.vmem [resolvable:$true] %s343_s21  ;;  %s359_s12 = int_to_ptr.hbm [resolvable:$true] %s358_s12 }
  0x27   : > { %s310_s25 = sshll.u32 %s6778_s3, 4  ;;  %s6345_s5 = smov [#allocation11]   ;;  %s311_s25 = int_to_ptr.hbm [resolvable:$true] %s310_s25 }
  0x28   : > { %6011 = dma.hbm_to_vmem [thread:$0]  (!%p6488_p0), %s311_s25, 2048, %s313_s23, [#allocation6], %s6342_s29, %s6342_s29, %s6343_s20  }
  0x29   : > { %6017 = dma.hbm_to_vmem [thread:$0]  (!%p6488_p0), %s342_s13, 8192, %s344_s21, [#allocation9], %s6339_s24, %s6339_s24, %s6340_s19  }
  0x2a   : > { %s360_s3 = sshll.u32 %s6345_s5, 4  ;;  %s6346_s15 = smov 512   ;;  %s361_s3 = int_to_ptr.vmem [resolvable:$true] %s360_s3 }
  0x2b   : > { %s6347_s27 = smov 32   ;;  %392 = sbr.rel (%p6468_p10) target bundleno = 1182 (0x49e), region = 60 }
  0x2c   : > { %6020 = dma.hbm_to_vmem [thread:$0]  (!%p6488_p0), %s359_s12, 32768, %s361_s3, [#allocation12], %s6346_s15, %s6346_s15, %s6347_s27  }
  0x30   : > { %6291 = dma.done.wait (%p6476_p13), [#allocation6], 2048  }
  0x31   : > { %6293 = vsyncadd (%p6476_p13), [#allocation6], 4294965248 }
  0x32   : > { %6295 = dma.done.wait (%p6476_p13), [#allocation9], 16384  }
  0x33   : > { %6297 = vsyncadd (%p6476_p13), [#allocation9], 4294950912 }
  0x34   : > { %6299 = dma.done.wait (%p6476_p13), [#allocation12], 32768  }
  0x35   : > { %6301 = vsyncadd (%p6476_p13), [#allocation12], 4294934528  ;;  %s447_s3 = sand.u32 1, %s6312_s14   ;;  %p451_p1 = scmp.lt.s32.totalorder %s6324_s17, 1 }
  0x36   : > { %s6527_s10 = sshll.u32 %s447_s3, 3  ;;  %p460_p2 = scmp.eq.s32.totalorder %s6320_s16, 0 }
  0x37   : > { %s452_s13 = scalar_select %p451_p1, %s6324_s17, 1  ;;  %v466_v0 = vlaneseq (%p460_p2)  ;;  %v6348_v1 = vmov (%p460_p2), -inf  }
  0x38   : > { %s449_s24 = scalar_lea.vmem [#allocation13], %s6527_s10  ;;  %465 = sbr.rel (!%p460_p2) target bundleno = 61 (0x3d), region = 80  ;;  %471 = vst [vmem:[#allocation3] sm:$0xff] (%p460_p2), %v6348_v1 }
  0x39   : > { %s5587_s18 = sshll.u32 %s452_s13, 4  ;;  %vm468_vm0 = vcmp.lt.s32.totalorder (%p460_p2), %v466_v0, 256 }
  0x3a   : > { %s6534_s23 = scalar_lea.vmem %s6740_s0, %s5587_s18  ;;  %470 = vst.msk [vmem:[#allocation2] sm:$0x3] (%p460_p2), %vm468_vm0, %v6348_v1 }
  0x3d PF: > { %v474_v2 = vld [vmem:[%s6741_s1] sm:$0x7]  ;;  %vm486_vm1 = vcmask 1042432   ;;  %vm479_vm2 = vcmask 23552   ;;  %v5604_v5 = vld [vmem:[#allocation5 + $0x74] sm:$0xf0] }
  0x3e   : > { %v472_v3 = vld [vmem:[%s6534_s23] sm:$0xff]  ;;  %3977 = vmatpush.msk.msra.mxu0 %vm486_vm1, %v474_v2  ;;  %v4040_v8 = vld [vmem:[#allocation5 + $0x78] sm:$0xf0]  ;;  %v4030_v9 = vld [vmem:[#allocation5 + $0x60] sm:$0xf]  ;;  %p4044_p4 = scmp.ne.s32.totalorder %s6320_s16, 0 }
  0x3f   : > { %v4038_v4 = vld [vmem:[#allocation5 + $0x70] sm:$0xf]  ;;  %v5603_v6 = vld [vmem:[#allocation5 + $0x74] sm:$0xf]  ;;  %3978 = vmatmul.msk.f32.vlgmr.msra.gmra.mxu0 %vm479_vm2, %v472_v3  ;;  %v5602_v10 = vld [vmem:[#allocation5 + $0x64] sm:$0xf0] }
  0x40   : > { %v4039_v7 = vor.u32 %v5604_v5, %v4038_v4  ;;  %v4043_v11 = vor.u32 %v5603_v6, %v4040_v8  ;;  %v5601_v12 = vld [vmem:[#allocation5 + $0x64] sm:$0xf]  ;;  %v4032_v13 = vld [vmem:[#allocation5 + $0x68] sm:$0xf0]  ;;  %v4031_v14 = vor.u32 %v5602_v10, %v4030_v9  ;;  %v4022_v16 = vld [vmem:[#allocation5 + $0x50] sm:$0xf] }
  0x41   : > { %v4035_v15 = vor.u32 %v5601_v12, %v4032_v13  ;;  %v5600_v17 = vld [vmem:[#allocation5 + $0x54] sm:$0xf0]  ;;  %v5599_v18 = vld [vmem:[#allocation5 + $0x54] sm:$0xf]  ;;  %v4024_v19 = vld [vmem:[#allocation5 + $0x58] sm:$0xf0] }
  0x42   : > { %618 = vmatpush.bf16.msra.mxu1 %v4039_v7  ;;  %632 = vmatpush.bf16.msra.mxu2 %v4043_v11  ;;  %v473_v20 = vld [vmem:[%s6534_s23 + $0x8] sm:$0xff]  ;;  %v4023_v21 = vor.u32 %v5600_v17, %v4022_v16  ;;  %v4027_v22 = vor.u32 %v5599_v18, %v4024_v19  ;;  %v5598_v24 = vld [vmem:[#allocation5 + $0x44] sm:$0xf0]  ;;  %v5597_v25 = vld [vmem:[#allocation5 + $0x44] sm:$0xf] }
  0x43   : > { %v4014_v23 = vld [vmem:[#allocation5 + $0x40] sm:$0xf]  ;;  %v4016_v26 = vld [vmem:[#allocation5 + $0x48] sm:$0xf0]  ;;  %v4006_v29 = vld [vmem:[#allocation5 + $0x30] sm:$0xf] }
  0x44   : > { %v4015_v27 = vor.u32 %v5598_v24, %v4014_v23  ;;  %v4019_v28 = vor.u32 %v5597_v25, %v4016_v26  ;;  %v5596_v30 = vld [vmem:[#allocation5 + $0x34] sm:$0xf0]  ;;  %v5595_v31 = vld [vmem:[#allocation5 + $0x34] sm:$0xf]  ;;  %v4008_v33 = vld [vmem:[#allocation5 + $0x38] sm:$0xf0] }
  0x45   : > { %v4007_v32 = vor.u32 %v5596_v30, %v4006_v29  ;;  %v4011_v34 = vor.u32 %v5595_v31, %v4008_v33  ;;  %v3998_v35 = vld [vmem:[#allocation5 + $0x20] sm:$0xf]  ;;  %v5594_v36 = vld [vmem:[#allocation5 + $0x24] sm:$0xf0]  ;;  %v5593_v37 = vld [vmem:[#allocation5 + $0x24] sm:$0xf] }
  0x46   : > { %619 = vmatpush.bf16.msra.mxu1 %v4031_v14  ;;  %633 = vmatpush.bf16.msra.mxu2 %v4035_v15  ;;  %v3999_v38 = vor.u32 %v5594_v36, %v3998_v35  ;;  %v4000_v39 = vld [vmem:[#allocation5 + $0x28] sm:$0xf0]  ;;  %v3990_v41 = vld [vmem:[#allocation5 + $0x10] sm:$0xf]  ;;  %v5592_v42 = vld [vmem:[#allocation5 + $0x14] sm:$0xf0] }
  0x47   : > { %3979 = vmatmul.msk.f32.gmra.mxu0 %vm479_vm2, %v473_v20  ;;  %v4003_v40 = vor.u32 %v5593_v37, %v4000_v39  ;;  %v5591_v43 = vld [vmem:[#allocation5 + $0x14] sm:$0xf]  ;;  %v3991_v44 = vor.u32 %v5592_v42, %v3990_v41  ;;  %v3992_v45 = vld [vmem:[#allocation5 + $0x18] sm:$0xf0]  ;;  %v3982_v47 = vld [vmem:[#allocation5] sm:$0xf] }
  0x48   : > { %v3995_v46 = vor.u32 %v5591_v43, %v3992_v45  ;;  %v5590_v48 = vld [vmem:[#allocation5 + $0x4] sm:$0xf0]  ;;  %v5589_v49 = vld [vmem:[#allocation5 + $0x4] sm:$0xf]  ;;  %v3984_v51 = vld [vmem:[#allocation5 + $0x8] sm:$0xf0] }
  0x49   : > { %v3983_v50 = vor.u32 %v5590_v48, %v3982_v47  ;;  %v3987_v52 = vor.u32 %v5589_v49, %v3984_v51  ;;  %v6109_v54 = vld [vmem:[%s6742_s2] ss:$0 sm:$0xff] }
  0x4a   : > { %620 = vmatpush.bf16.msra.mxu1 %v4023_v21  ;;  %634 = vmatpush.bf16.msra.mxu2 %v4027_v22  ;;  %v532_v61 = vld [vmem:[%s6744_s4] sm:$0x3] }
  0x4b   : > { %v534_v62 = vperm.slane %v532_v61, 0  ;;  %v535_v1 = vperm.slane %v532_v61, 1 }
  0x4e   : > { %621 = vmatpush.bf16.msra.mxu1 %v4015_v27  ;;  %635 = vmatpush.bf16.msra.mxu2 %v4019_v28 }
  0x52   : > { %622 = vmatpush.bf16.msra.mxu1 %v4007_v32  ;;  %636 = vmatpush.bf16.msra.mxu2 %v4011_v34 }
  0x56   : > { %623 = vmatpush.bf16.msra.mxu1 %v3999_v38  ;;  %637 = vmatpush.bf16.msra.mxu2 %v4003_v40 }
  0x5a   : > { %624 = vmatpush.bf16.msra.mxu1 %v3991_v44  ;;  %638 = vmatpush.bf16.msra.mxu2 %v3995_v46 }
  0x5e   : > { %625 = vmatpush.bf16.msra.mxu1 %v3983_v50  ;;  %639 = vmatpush.bf16.msra.mxu2 %v3987_v52 }
  0xbc   : > { %v507_v53 = vpop.f32.mrf.mxu0 }
  0xbd   : > { %v508_v55 = vadd.f32 %v6109_v54, %v507_v53 }
  0xbf   : > { %v513_v58 = vmax.f32 %v508_v55, 0.0 }
  0xc4   : > { %v510_v56 = vpop.f32.mrf.mxu0 }
  0xc5   : > { %v511_v57 = vadd.f32 %v6109_v54, %v510_v56 }
  0xc7   : > { %v514_v59 = vmax.f32 %v511_v57, 0.0 }
  0xc9   : > { %v515_v60 = vpack.c.bf16 %v514_v59, %v513_v58 }
  0xcb   : > { %626 = vmatmul.bf16.vlgmr.msra.gmra.mxu1 %v515_v60  ;;  %640 = vmatmul.bf16.vlgmr.msra.gmra.mxu2 %v515_v60 }
 0x148   : > { %v627_v63 = vpop.f32.mrf.mxu1 }
 0x149   : > { %v6550_v0 = vadd.f32 %v627_v63, %v534_v62 }
 0x14e   : > { %v641_v2 = vpop.f32.mrf.mxu2 }
 0x14f   : > { %v6552_v3 = vadd.f32 %v641_v2, %v535_v1 }
 0x150   : > { %v629_v4 = vpop.f32.mrf.mxu1 }
 0x151   : > { %v6554_v5 = vadd.f32 %v629_v4, %v534_v62 }
 0x153   : > { %648 = sbr.rel (%p4044_p4) target bundleno = 365 (0x16d), region = 84 }
 0x156   : > { %v643_v6 = vpop.f32.mrf.mxu2 }
 0x157   : > { %v6556_v7 = vadd.f32 %v643_v6, %v535_v1 }
 0x158   : > { %v650_v8 = vmax.f32 %v6550_v0, %v6554_v5  ;;  %v671_v22 = vlaneseq  ;;  %vm667_vm3 = vcmask 1040384   ;;  %v649_v23 = vld [vmem:[#allocation2] sm:$0x3] }
 0x159   : > { %v657_v9 = vmax.f32 %v6552_v3, %v6556_v7 }
 0x15a   : > { %v651_v10 = vrot.slane %v650_v8, 4  ;;  %vm673_vm4 = vcmp.lt.s32.totalorder %v671_v22, 256 }
 0x15b   : > { %v658_v11 = vrot.slane %v657_v9, 4 }
 0x15c   : > { %v652_v12 = vmax.f32 %v650_v8, %v651_v10 }
 0x15d   : > { %v659_v13 = vmax.f32 %v657_v9, %v658_v11 }
 0x15e   : > { %v653_v14 = vrot.slane %v652_v12, 2 }
 0x15f   : > { %v660_v15 = vrot.slane %v659_v13, 2 }
 0x160   : > { %v654_v16 = vmax.f32 %v652_v12, %v653_v14 }
 0x161   : > { %v661_v17 = vmax.f32 %v659_v13, %v660_v15 }
 0x162   : > { %v655_v18 = vrot.slane %v654_v16, 1 }
 0x163   : > { %v662_v19 = vrot.slane %v661_v17, 1 }
 0x164   : > { %v656_v20 = vmax.f32 %v654_v16, %v655_v18 }
 0x165   : > { %v663_v21 = vmax.f32 %v661_v17, %v662_v19 }
 0x167   : > { %v666_v24 = vrot.slane %v663_v21, 7 }
 0x169   : > { %v668_v25 = vsel %vm667_vm3, %v656_v20, %v666_v24 }
 0x16a   : > { %v670_v26 = vmax.f32 %v649_v23, %v668_v25 }
 0x16c   : > { %675 = vst.msk [vmem:[#allocation2] sm:$0x3] %vm673_vm4, %v670_v26 }
 0x16d PF: > { %p676_p5 = scmp.eq.s32.totalorder %s6320_s16, 1 }
 0x16e   : > { %v4160_v27 = vld [vmem:[#allocation8 + $0xe0] sm:$0xf] (%p676_p5)  ;;  %v5636_v28 = vld [vmem:[#allocation8 + $0xec] sm:$0xf0] (%p676_p5)  ;;  %v5634_v32 = vld [vmem:[#allocation8 + $0xe4] sm:$0xf] (%p676_p5) }
 0x16f   : > { %680 = sbr.rel (!%p676_p5) target bundleno = 575 (0x23f), region = 88  ;;  %v4288_v29 = vld [vmem:[#allocation8 + $0x1e0] sm:$0xf] (%p676_p5)  ;;  %v4161_v30 = vor.u32 (%p676_p5), %v5636_v28, %v4160_v27  ;;  %v5668_v31 = vld [vmem:[#allocation8 + $0x1ec] sm:$0xf0] (%p676_p5)  ;;  %vm1194_vm5 = vcmask (%p676_p5), 1040384  }
 0x170   : > { %v4162_v33 = vld [vmem:[#allocation8 + $0xf0] sm:$0xf0] (%p676_p5)  ;;  %v4289_v34 = vor.u32 (%p676_p5), %v5668_v31, %v4288_v29  ;;  %v5666_v36 = vld [vmem:[#allocation8 + $0x1e4] sm:$0xf] (%p676_p5)  ;;  %v4144_v38 = vld [vmem:[#allocation8 + $0xc0] sm:$0xf] (%p676_p5) }
 0x171   : > { %v4165_v35 = vor.u32 (%p676_p5), %v5634_v32, %v4162_v33  ;;  %v4290_v37 = vld [vmem:[#allocation8 + $0x1f0] sm:$0xf0] (%p676_p5)  ;;  %1083 = vmatpush.bf16.msra.mxu0 (%p676_p5), %v4161_v30  ;;  %v5632_v40 = vld [vmem:[#allocation8 + $0xcc] sm:$0xf0] (%p676_p5)  ;;  %v4272_v41 = vld [vmem:[#allocation8 + $0x1c0] sm:$0xf] (%p676_p5) }
 0x172   : > { %v4293_v39 = vor.u32 (%p676_p5), %v5666_v36, %v4290_v37  ;;  %v5664_v42 = vld [vmem:[#allocation8 + $0x1cc] sm:$0xf0] (%p676_p5)  ;;  %1096 = vmatpush.bf16.msra.mxu1 (%p676_p5), %v4289_v34  ;;  %v4145_v43 = vor.u32 (%p676_p5), %v5632_v40, %v4144_v38  ;;  %v5630_v45 = vld [vmem:[#allocation8 + $0xc4] sm:$0xf] (%p676_p5)  ;;  %v4146_v46 = vld [vmem:[#allocation8 + $0xd0] sm:$0xf0] (%p676_p5) }
 0x173   : > { %1109 = vmatpush.bf16.msra.mxu2 (%p676_p5), %v4165_v35  ;;  %v4273_v44 = vor.u32 (%p676_p5), %v5664_v42, %v4272_v41  ;;  %v5662_v47 = vld [vmem:[#allocation8 + $0x1c4] sm:$0xf] (%p676_p5)  ;;  %v4149_v48 = vor.u32 (%p676_p5), %v5630_v45, %v4146_v46  ;;  %v4274_v49 = vld [vmem:[#allocation8 + $0x1d0] sm:$0xf0] (%p676_p5)  ;;  %v4128_v50 = vld [vmem:[#allocation8 + $0xa0] sm:$0xf] (%p676_p5) }
 0x174   : > { %1122 = vmatpush.bf16.msra.mxu3 %v4293_v39  ;;  %v5628_v51 = vld [vmem:[#allocation8 + $0xac] sm:$0xf0]  ;;  %v4277_v52 = vor.u32 %v5662_v47, %v4274_v49  ;;  %v4256_v53 = vld [vmem:[#allocation8 + $0x1a0] sm:$0xf]  ;;  %v5626_v55 = vld [vmem:[#allocation8 + $0xa4] sm:$0xf] }
 0x175   : > { %v5660_v54 = vld [vmem:[#allocation8 + $0x1ac] sm:$0xf0]  ;;  %1084 = vmatpush.bf16.msra.mxu0 %v4145_v43  ;;  %v4129_v56 = vor.u32 %v5628_v51, %v4128_v50  ;;  %v4130_v57 = vld [vmem:[#allocation8 + $0xb0] sm:$0xf0]  ;;  %v5658_v58 = vld [vmem:[#allocation8 + $0x1a4] sm:$0xf] }
 0x176   : > { %v4258_v59 = vld [vmem:[#allocation8 + $0x1b0] sm:$0xf0]  ;;  %1097 = vmatpush.bf16.msra.mxu1 %v4273_v44  ;;  %v4257_v60 = vor.u32 %v5660_v54, %v4256_v53  ;;  %v4133_v61 = vor.u32 %v5626_v55, %v4130_v57  ;;  %v4112_v62 = vld [vmem:[#allocation8 + $0x80] sm:$0xf]  ;;  %v5624_v63 = vld [vmem:[#allocation8 + $0x8c] sm:$0xf0] }
 0x177   : > { %1110 = vmatpush.bf16.msra.mxu2 %v4149_v48  ;;  %v4240_v1 = vld [vmem:[#allocation8 + $0x180] sm:$0xf]  ;;  %v4261_v2 = vor.u32 %v5658_v58, %v4258_v59  ;;  %v5656_v4 = vld [vmem:[#allocation8 + $0x18c] sm:$0xf0]  ;;  %v5622_v6 = vld [vmem:[#allocation8 + $0x84] sm:$0xf]  ;;  %v4113_v11 = vor.u32 %v5624_v63, %v4112_v62 }
 0x178   : > { %1123 = vmatpush.bf16.msra.mxu3 %v4277_v52  ;;  %v4114_v8 = vld [vmem:[#allocation8 + $0x90] sm:$0xf0]  ;;  %v5654_v9 = vld [vmem:[#allocation8 + $0x184] sm:$0xf]  ;;  %v4241_v12 = vor.u32 %v5656_v4, %v4240_v1  ;;  %v4096_v14 = vld [vmem:[#allocation8 + $0x60] sm:$0xf] }
 0x179   : > { %v4242_v10 = vld [vmem:[#allocation8 + $0x190] sm:$0xf0]  ;;  %1085 = vmatpush.bf16.msra.mxu0 %v4129_v56  ;;  %v4117_v13 = vor.u32 %v5622_v6, %v4114_v8  ;;  %v5620_v15 = vld [vmem:[#allocation8 + $0x6c] sm:$0xf0]  ;;  %v4224_v16 = vld [vmem:[#allocation8 + $0x160] sm:$0xf] }
 0x17a   : > { %1098 = vmatpush.bf16.msra.mxu1 %v4257_v60  ;;  %v4245_v17 = vor.u32 %v5654_v9, %v4242_v10  ;;  %v5652_v18 = vld [vmem:[#allocation8 + $0x16c] sm:$0xf0]  ;;  %v5618_v19 = vld [vmem:[#allocation8 + $0x64] sm:$0xf]  ;;  %v4098_v20 = vld [vmem:[#allocation8 + $0x70] sm:$0xf0]  ;;  %v4097_v23 = vor.u32 %v5620_v15, %v4096_v14 }
 0x17b   : > { %1111 = vmatpush.bf16.msra.mxu2 %v4133_v61  ;;  %v5650_v21 = vld [vmem:[#allocation8 + $0x164] sm:$0xf]  ;;  %v4226_v22 = vld [vmem:[#allocation8 + $0x170] sm:$0xf0]  ;;  %v4225_v24 = vor.u32 %v5652_v18, %v4224_v16  ;;  %v4101_v25 = vor.u32 %v5618_v19, %v4098_v20  ;;  %v4080_v26 = vld [vmem:[#allocation8 + $0x40] sm:$0xf] }
 0x17c   : > { %1124 = vmatpush.bf16.msra.mxu3 %v4261_v2  ;;  %v5616_v27 = vld [vmem:[#allocation8 + $0x4c] sm:$0xf0]  ;;  %v4208_v28 = vld [vmem:[#allocation8 + $0x140] sm:$0xf]  ;;  %v4229_v29 = vor.u32 %v5650_v21, %v4226_v22  ;;  %v5614_v31 = vld [vmem:[#allocation8 + $0x44] sm:$0xf] }
 0x17d   : > { %1086 = vmatpush.bf16.msra.mxu0 %v4113_v11  ;;  %v5648_v30 = vld [vmem:[#allocation8 + $0x14c] sm:$0xf0]  ;;  %v4082_v32 = vld [vmem:[#allocation8 + $0x50] sm:$0xf0]  ;;  %v5646_v33 = vld [vmem:[#allocation8 + $0x144] sm:$0xf]  ;;  %v4081_v35 = vor.u32 %v5616_v27, %v4080_v26 }
 0x17e   : > { %1099 = vmatpush.bf16.msra.mxu1 %v4241_v12  ;;  %v4210_v34 = vld [vmem:[#allocation8 + $0x150] sm:$0xf0]  ;;  %v4209_v36 = vor.u32 %v5648_v30, %v4208_v28  ;;  %v4085_v37 = vor.u32 %v5614_v31, %v4082_v32  ;;  %v4064_v38 = vld [vmem:[#allocation8 + $0x20] sm:$0xf]  ;;  %v5612_v39 = vld [vmem:[#allocation8 + $0x2c] sm:$0xf0] }
 0x17f   : > { %1112 = vmatpush.bf16.msra.mxu2 %v4117_v13  ;;  %v4192_v40 = vld [vmem:[#allocation8 + $0x120] sm:$0xf]  ;;  %v4213_v41 = vor.u32 %v5646_v33, %v4210_v34  ;;  %v5644_v42 = vld [vmem:[#allocation8 + $0x12c] sm:$0xf0]  ;;  %v5610_v43 = vld [vmem:[#allocation8 + $0x24] sm:$0xf]  ;;  %v4065_v48 = vor.u32 %v5612_v39, %v4064_v38 }
 0x180   : > { %1125 = vmatpush.bf16.msra.mxu3 %v4245_v17  ;;  %v4066_v44 = vld [vmem:[#allocation8 + $0x30] sm:$0xf0]  ;;  %v5642_v45 = vld [vmem:[#allocation8 + $0x124] sm:$0xf]  ;;  %v4048_v47 = vld [vmem:[#allocation8] sm:$0xf]  ;;  %v4193_v52 = vor.u32 %v5644_v42, %v4192_v40 }
 0x181   : > { %1087 = vmatpush.bf16.msra.mxu0 %v4097_v23  ;;  %v4194_v46 = vld [vmem:[#allocation8 + $0x130] sm:$0xf0]  ;;  %v5608_v49 = vld [vmem:[#allocation8 + $0xc] sm:$0xf0]  ;;  %v4176_v50 = vld [vmem:[#allocation8 + $0x100] sm:$0xf]  ;;  %v4069_v53 = vor.u32 %v5610_v43, %v4066_v44 }
 0x182   : > { %1100 = vmatpush.bf16.msra.mxu1 %v4225_v24  ;;  %v5640_v51 = vld [vmem:[#allocation8 + $0x10c] sm:$0xf0]  ;;  %v5606_v54 = vld [vmem:[#allocation8 + $0x4] sm:$0xf]  ;;  %v4050_v55 = vld [vmem:[#allocation8 + $0x10] sm:$0xf0]  ;;  %v4197_v57 = vor.u32 %v5642_v45, %v4194_v46  ;;  %v4049_v1 = vor.u32 %v5608_v49, %v4048_v47 }
 0x183   : > { %1113 = vmatpush.bf16.msra.mxu2 %v4101_v25  ;;  %v5638_v56 = vld [vmem:[#allocation8 + $0x104] sm:$0xf]  ;;  %v4178_v58 = vld [vmem:[#allocation8 + $0x110] sm:$0xf0]  ;;  %v4168_v59 = vld [vmem:[#allocation8 + $0xe8] sm:$0xf]  ;;  %v4177_v8 = vor.u32 %v5640_v51, %v4176_v50  ;;  %v4053_v9 = vor.u32 %v5606_v54, %v4050_v55 }
 0x184   : > { %1126 = vmatpush.bf16.msra.mxu3 %v4229_v29  ;;  %v5637_v60 = vld [vmem:[#allocation8 + $0xf4] sm:$0xf0]  ;;  %v4296_v61 = vld [vmem:[#allocation8 + $0x1e8] sm:$0xf]  ;;  %v681_v63 = vld [vmem:[#allocation2] sm:$0x3]  ;;  %v4181_v13 = vor.u32 %v5638_v56, %v4178_v58 }
 0x185   : > { %1088 = vmatpush.bf16.msra.mxu0 %v4081_v35  ;;  %v5669_v62 = vld [vmem:[#allocation8 + $0x1f4] sm:$0xf0]  ;;  %v5635_v2 = vld [vmem:[#allocation8 + $0xec] sm:$0xf]  ;;  %v4170_v4 = vld [vmem:[#allocation8 + $0xf8] sm:$0xf0]  ;;  %v4169_v14 = vor.u32 %v5637_v60, %v4168_v59 }
 0x186   : > { %1101 = vmatpush.bf16.msra.mxu1 %v4209_v36  ;;  %v683_v6 = vperm.slane %v681_v63, 0  ;;  %v5667_v10 = vld [vmem:[#allocation8 + $0x1ec] sm:$0xf]  ;;  %v4298_v11 = vld [vmem:[#allocation8 + $0x1f8] sm:$0xf0]  ;;  %v684_v12 = vperm.slane %v681_v63, 1  ;;  %v4297_v15 = vor.u32 %v5669_v62, %v4296_v61  ;;  %v4173_v16 = vor.u32 %v5635_v2, %v4170_v4 }
 0x187   : > { %1114 = vmatpush.bf16.msra.mxu2 %v4085_v37  ;;  %v4152_v17 = vld [vmem:[#allocation8 + $0xc8] sm:$0xf]  ;;  %v5633_v18 = vld [vmem:[#allocation8 + $0xd4] sm:$0xf0]  ;;  %v4301_v20 = vor.u32 %v5667_v10, %v4298_v11  ;;  %v5631_v22 = vld [vmem:[#allocation8 + $0xcc] sm:$0xf] }
 0x188   : > { %1127 = vmatpush.bf16.msra.mxu3 %v4213_v41  ;;  %v4280_v19 = vld [vmem:[#allocation8 + $0x1c8] sm:$0xf]  ;;  %v5665_v21 = vld [vmem:[#allocation8 + $0x1d4] sm:$0xf0]  ;;  %v4154_v23 = vld [vmem:[#allocation8 + $0xd8] sm:$0xf0]  ;;  %v6566_v24 = vpack.c.bf16 %v683_v6, %v683_v6  ;;  %v6568_v27 = vpack.c.bf16 %v684_v12, %v684_v12  ;;  %v4153_v28 = vor.u32 %v5633_v18, %v4152_v17 }
 0x189   : > { %1089 = vmatpush.bf16.msra.mxu0 %v4065_v48  ;;  %v5663_v25 = vld [vmem:[#allocation8 + $0x1cc] sm:$0xf]  ;;  %v4282_v26 = vld [vmem:[#allocation8 + $0x1d8] sm:$0xf0]  ;;  %v4281_v29 = vor.u32 %v5665_v21, %v4280_v19  ;;  %v4157_v30 = vor.u32 %v5631_v22, %v4154_v23  ;;  %v4136_v31 = vld [vmem:[#allocation8 + $0xa8] sm:$0xf] }
 0x18a   : > { %1102 = vmatpush.bf16.msra.mxu1 %v4193_v52  ;;  %v5629_v32 = vld [vmem:[#allocation8 + $0xb4] sm:$0xf0]  ;;  %v4264_v33 = vld [vmem:[#allocation8 + $0x1a8] sm:$0xf]  ;;  %v4285_v34 = vor.u32 %v5663_v25, %v4282_v26  ;;  %v5627_v36 = vld [vmem:[#allocation8 + $0xac] sm:$0xf] }
 0x18b   : > { %1115 = vmatpush.bf16.msra.mxu2 %v4069_v53  ;;  %v5661_v35 = vld [vmem:[#allocation8 + $0x1b4] sm:$0xf0]  ;;  %v4138_v37 = vld [vmem:[#allocation8 + $0xb8] sm:$0xf0]  ;;  %v5659_v38 = vld [vmem:[#allocation8 + $0x1ac] sm:$0xf]  ;;  %v4137_v40 = vor.u32 %v5629_v32, %v4136_v31 }
 0x18c   : > { %1128 = vmatpush.bf16.msra.mxu3 %v4197_v57  ;;  %v4266_v39 = vld [vmem:[#allocation8 + $0x1b8] sm:$0xf0]  ;;  %v4265_v41 = vor.u32 %v5661_v35, %v4264_v33  ;;  %v4141_v42 = vor.u32 %v5627_v36, %v4138_v37  ;;  %v4120_v43 = vld [vmem:[#allocation8 + $0x88] sm:$0xf]  ;;  %v5625_v44 = vld [vmem:[#allocation8 + $0x94] sm:$0xf0] }
 0x18d   : > { %1090 = vmatpush.bf16.msra.mxu0 %v4049_v1  ;;  %v4248_v45 = vld [vmem:[#allocation8 + $0x188] sm:$0xf]  ;;  %v4269_v46 = vor.u32 %v5659_v38, %v4266_v39  ;;  %v5657_v47 = vld [vmem:[#allocation8 + $0x194] sm:$0xf0]  ;;  %v5623_v48 = vld [vmem:[#allocation8 + $0x8c] sm:$0xf]  ;;  %v4121_v52 = vor.u32 %v5625_v44, %v4120_v43 }
 0x18e   : > { %1103 = vmatpush.bf16.msra.mxu1 %v4177_v8  ;;  %v4122_v49 = vld [vmem:[#allocation8 + $0x98] sm:$0xf0]  ;;  %v5655_v50 = vld [vmem:[#allocation8 + $0x18c] sm:$0xf]  ;;  %v4249_v53 = vor.u32 %v5657_v47, %v4248_v45  ;;  %v4104_v55 = vld [vmem:[#allocation8 + $0x68] sm:$0xf] }
 0x18f   : > { %1116 = vmatpush.bf16.msra.mxu2 %v4053_v9  ;;  %v4250_v51 = vld [vmem:[#allocation8 + $0x198] sm:$0xf0]  ;;  %v4125_v54 = vor.u32 %v5623_v48, %v4122_v49  ;;  %v5621_v56 = vld [vmem:[#allocation8 + $0x74] sm:$0xf0]  ;;  %v4232_v57 = vld [vmem:[#allocation8 + $0x168] sm:$0xf] }
 0x190   : > { %1129 = vmatpush.bf16.msra.mxu3 %v4181_v13  ;;  %1091 = vmatmul.bf16.vlgmr.msra.gmra.mxu0 %v6566_v24  ;;  %v4253_v58 = vor.u32 %v5655_v50, %v4250_v51  ;;  %v5653_v59 = vld [vmem:[#allocation8 + $0x174] sm:$0xf0]  ;;  %v5619_v60 = vld [vmem:[#allocation8 + $0x6c] sm:$0xf]  ;;  %v4106_v61 = vld [vmem:[#allocation8 + $0x78] sm:$0xf0]  ;;  %v4105_v1 = vor.u32 %v5621_v56, %v4104_v55 }
 0x191   : > { %1135 = vmatpush.bf16.msrb.mxu0 %v4169_v14  ;;  %1104 = vmatmul.bf16.vlgmr.msra.gmra.mxu1 %v6568_v27  ;;  %v5651_v62 = vld [vmem:[#allocation8 + $0x16c] sm:$0xf]  ;;  %v4234_v63 = vld [vmem:[#allocation8 + $0x178] sm:$0xf0]  ;;  %v4233_v2 = vor.u32 %v5653_v59, %v4232_v57  ;;  %v4109_v4 = vor.u32 %v5619_v60, %v4106_v61  ;;  %v4088_v6 = vld [vmem:[#allocation8 + $0x48] sm:$0xf] }
 0x192   : > { %1148 = vmatpush.bf16.msrb.mxu1 %v4297_v15  ;;  %1117 = vmatmul.bf16.vlgmr.msra.gmra.mxu2 %v6566_v24  ;;  %v5617_v8 = vld [vmem:[#allocation8 + $0x54] sm:$0xf0]  ;;  %v4216_v9 = vld [vmem:[#allocation8 + $0x148] sm:$0xf]  ;;  %v4237_v10 = vor.u32 %v5651_v62, %v4234_v63  ;;  %v5615_v12 = vld [vmem:[#allocation8 + $0x4c] sm:$0xf] }
 0x193   : > { %1161 = vmatpush.bf16.msrb.mxu2 %v4173_v16  ;;  %1130 = vmatmul.bf16.vlgmr.msra.gmra.mxu3 %v6568_v27  ;;  %v5649_v11 = vld [vmem:[#allocation8 + $0x154] sm:$0xf0]  ;;  %v4090_v13 = vld [vmem:[#allocation8 + $0x58] sm:$0xf0]  ;;  %v5647_v14 = vld [vmem:[#allocation8 + $0x14c] sm:$0xf]  ;;  %v4089_v16 = vor.u32 %v5617_v8, %v4088_v6  ;;  %v1201_v8 = vlaneseq }
 0x194   : > { %1174 = vmatpush.bf16.msrb.mxu3 %v4301_v20  ;;  %v4218_v15 = vld [vmem:[#allocation8 + $0x158] sm:$0xf0]  ;;  %v4217_v17 = vor.u32 %v5649_v11, %v4216_v9  ;;  %v4093_v18 = vor.u32 %v5615_v12, %v4090_v13  ;;  %v4072_v19 = vld [vmem:[#allocation8 + $0x28] sm:$0xf]  ;;  %v5613_v20 = vld [vmem:[#allocation8 + $0x34] sm:$0xf0] }
 0x195   : > { %1136 = vmatpush.bf16.msrb.mxu0 %v4153_v28  ;;  %v4200_v21 = vld [vmem:[#allocation8 + $0x128] sm:$0xf]  ;;  %v4221_v22 = vor.u32 %v5647_v14, %v4218_v15  ;;  %v5645_v23 = vld [vmem:[#allocation8 + $0x134] sm:$0xf0]  ;;  %v5611_v25 = vld [vmem:[#allocation8 + $0x2c] sm:$0xf] }
 0x196   : > { %1149 = vmatpush.bf16.msrb.mxu1 %v4281_v29  ;;  %v4074_v26 = vld [vmem:[#allocation8 + $0x38] sm:$0xf0]  ;;  %v5643_v28 = vld [vmem:[#allocation8 + $0x12c] sm:$0xf]  ;;  %v4201_v31 = vor.u32 %v5645_v23, %v4200_v21  ;;  %v4056_v33 = vld [vmem:[#allocation8 + $0x8] sm:$0xf] }
 0x197   : > { %1162 = vmatpush.bf16.msrb.mxu2 %v4157_v30  ;;  %v4202_v29 = vld [vmem:[#allocation8 + $0x138] sm:$0xf0]  ;;  %v4073_v30 = vor.u32 %v5613_v20, %v4072_v19  ;;  %v4077_v32 = vor.u32 %v5611_v25, %v4074_v26  ;;  %v4184_v35 = vld [vmem:[#allocation8 + $0x108] sm:$0xf]  ;;  %v5641_v37 = vld [vmem:[#allocation8 + $0x114] sm:$0xf0] }
 0x198   : > { %1175 = vmatpush.bf16.msrb.mxu3 %v4285_v34  ;;  %v5609_v34 = vld [vmem:[#allocation8 + $0x14] sm:$0xf0]  ;;  %v4205_v36 = vor.u32 %v5643_v28, %v4202_v29  ;;  %v5607_v38 = vld [vmem:[#allocation8 + $0xc] sm:$0xf]  ;;  %v4058_v39 = vld [vmem:[#allocation8 + $0x18] sm:$0xf0]  ;;  %v4185_v43 = vor.u32 %v5641_v37, %v4184_v35 }
 0x199   : > { %1137 = vmatpush.bf16.msrb.mxu0 %v4137_v40  ;;  %v5639_v40 = vld [vmem:[#allocation8 + $0x10c] sm:$0xf]  ;;  %v4061_v44 = vor.u32 %v5607_v38, %v4058_v39  ;;  %vm1196_vm6 = vcmask 1042434   ;;  %vm1198_vm7 = vcmask 1041408   ;;  %vm1203_vm8 = vcmp.lt.s32.totalorder %v1201_v8, 512 }
 0x19a   : > { %1150 = vmatpush.bf16.msrb.mxu1 %v4265_v41  ;;  %v4186_v41 = vld [vmem:[#allocation8 + $0x118] sm:$0xf0] }
 0x19b   : > { %1163 = vmatpush.bf16.msrb.mxu2 %v4141_v42  ;;  %v4057_v42 = vor.u32 %v5609_v34, %v4056_v33  ;;  %v4189_v45 = vor.u32 %v5639_v40, %v4186_v41 }
 0x19c   : > { %1176 = vmatpush.bf16.msrb.mxu3 %v4269_v46 }
 0x19d   : > { %1138 = vmatpush.bf16.msrb.mxu0 %v4121_v52 }
 0x19e   : > { %1151 = vmatpush.bf16.msrb.mxu1 %v4249_v53 }
 0x19f   : > { %1164 = vmatpush.bf16.msrb.mxu2 %v4125_v54  ;;  %v753_v54 = vld [vmem:[%s6747_s7] sm:$0xf] }
 0x1a0   : > { %1177 = vmatpush.bf16.msrb.mxu3 %v4253_v58  ;;  %v1076_v55 = vperm.slane %v753_v54, 1  ;;  %v1077_v56 = vperm.slane %v753_v54, 2  ;;  %v1075_v59 = vperm.slane %v753_v54, 0 }
 0x1a1   : > { %1139 = vmatpush.bf16.msrb.mxu0 %v4105_v1 }
 0x1a2   : > { %1152 = vmatpush.bf16.msrb.mxu1 %v4233_v2 }
 0x1a3   : > { %1165 = vmatpush.bf16.msrb.mxu2 %v4109_v4 }
 0x1a4   : > { %1178 = vmatpush.bf16.msrb.mxu3 %v4237_v10 }
 0x1a5   : > { %1140 = vmatpush.bf16.msrb.mxu0 %v4089_v16 }
 0x1a6   : > { %1153 = vmatpush.bf16.msrb.mxu1 %v4217_v17 }
 0x1a7   : > { %1166 = vmatpush.bf16.msrb.mxu2 %v4093_v18 }
 0x1a8   : > { %1179 = vmatpush.bf16.msrb.mxu3 %v4221_v22 }
 0x1a9   : > { %1141 = vmatpush.bf16.msrb.mxu0 %v4073_v30 }
 0x1aa   : > { %1154 = vmatpush.bf16.msrb.mxu1 %v4201_v31 }
 0x1ab   : > { %1167 = vmatpush.bf16.msrb.mxu2 %v4077_v32 }
 0x1ac   : > { %1180 = vmatpush.bf16.msrb.mxu3 %v4205_v36 }
 0x1ad   : > { %1142 = vmatpush.bf16.msrb.mxu0 %v4057_v42 }
 0x1ae   : > { %1155 = vmatpush.bf16.msrb.mxu1 %v4185_v43 }
 0x1af   : > { %1168 = vmatpush.bf16.msrb.mxu2 %v4061_v44 }
 0x1b0   : > { %1181 = vmatpush.bf16.msrb.mxu3 %v4189_v45  ;;  %1143 = vmatmul.bf16.vlgmr.msrb.gmra.mxu0 %v6566_v24 }
 0x1b1   : > { %1156 = vmatmul.bf16.vlgmr.msrb.gmra.mxu1 %v6568_v27 }
 0x1b2   : > { %1169 = vmatmul.bf16.vlgmr.msrb.gmra.mxu2 %v6566_v24 }
 0x1b3   : > { %1182 = vmatmul.bf16.vlgmr.msrb.gmra.mxu3 %v6568_v27  ;;  %v1078_v27 = vperm.slane %v753_v54, 3 }
 0x20d   : > { %v1092_v46 = vpop.f32.mrf.mxu0 }
 0x20e   : > { %v1105_v47 = vpop.f32.mrf.mxu1  ;;  %v1093_v61 = vadd.f32 %v1092_v46, %v1075_v59 }
 0x210   : > { %v1106_v10 = vadd.f32 %v1105_v47, %v1093_v61 }
 0x215   : > { %v1118_v48 = vpop.f32.mrf.mxu2  ;;  %v1094_v50 = vpop.f32.mrf.mxu0 }
 0x216   : > { %v1131_v49 = vpop.f32.mrf.mxu3  ;;  %v1107_v51 = vpop.f32.mrf.mxu1  ;;  %v1119_v24 = vadd.f32 %v1118_v48, %v1076_v55 }
 0x218   : > { %v1132_v62 = vadd.f32 %v1131_v49, %v1119_v24 }
 0x21a   : > { %v1191_v11 = vrot.slane %v1132_v62, 7 }
 0x21c   : > { %v1195_v15 = vsel %vm1194_vm5, %v1106_v10, %v1191_v11 }
 0x21d   : > { %v1120_v52 = vpop.f32.mrf.mxu2 }
 0x21e   : > { %v1133_v53 = vpop.f32.mrf.mxu3 }
 0x22d   : > { %v1144_v57 = vpop.f32.mrf.mxu0 }
 0x22e   : > { %v1157_v58 = vpop.f32.mrf.mxu1  ;;  %v1145_v60 = vadd.f32 %v1144_v57, %v1077_v56 }
 0x230   : > { %v1158_v63 = vadd.f32 %v1157_v58, %v1145_v60 }
 0x232   : > { %v1192_v12 = vrot.slane %v1158_v63, 6 }
 0x235   : > { %v1170_v1 = vpop.f32.mrf.mxu2  ;;  %v1146_v6 = vpop.f32.mrf.mxu0 }
 0x236   : > { %v1171_v2 = vadd.f32 %v1170_v1, %v1078_v27  ;;  %v1183_v4 = vpop.f32.mrf.mxu3  ;;  %v1159_v9 = vpop.f32.mrf.mxu1 }
 0x238   : > { %v1184_v13 = vadd.f32 %v1183_v4, %v1171_v2 }
 0x23a   : > { %v1193_v14 = vrot.slane %v1184_v13, 5 }
 0x23c   : > { %v1197_v16 = vsel %vm1196_vm6, %v1192_v12, %v1193_v14 }
 0x23d   : > { %v1199_v17 = vsel %vm1198_vm7, %v1195_v15, %v1197_v16  ;;  %v1172_v18 = vpop.f32.mrf.mxu2 }
 0x23e   : > { %1205 = vst.msk [vmem:[#allocation4] sm:$0xf] %vm1203_vm8, %v1199_v17  ;;  %v1185_v19 = vpop.f32.mrf.mxu3 }
 0x23f PF: > { %p4302_p6 = scmp.ne.s32.totalorder %s6320_s16, 1 }
 0x241   : > { %1208 = sbr.rel (%p4302_p6) target bundleno = 1154 (0x482), region = 92 }
 0x246   : > { %v4417_v20 = vld [vmem:[#allocation10 + $0xe0] sm:$0xf]  ;;  %v5700_v21 = vld [vmem:[#allocation10 + $0xec] sm:$0xf0]  ;;  %v5698_v26 = vld [vmem:[#allocation10 + $0xe4] sm:$0xf] }
 0x247   : > { %v4545_v22 = vld [vmem:[#allocation10 + $0x1e0] sm:$0xf]  ;;  %v4418_v23 = vor.u32 %v5700_v21, %v4417_v20  ;;  %v5732_v25 = vld [vmem:[#allocation10 + $0x1ec] sm:$0xf0]  ;;  %v4419_v28 = vld [vmem:[#allocation10 + $0xf0] sm:$0xf0] }
 0x248   : > { %v4546_v29 = vor.u32 %v5732_v25, %v4545_v22  ;;  %v4422_v30 = vor.u32 %v5698_v26, %v4419_v28  ;;  %v5730_v31 = vld [vmem:[#allocation10 + $0x1e4] sm:$0xf]  ;;  %v4547_v32 = vld [vmem:[#allocation10 + $0x1f0] sm:$0xf0]  ;;  %v4401_v33 = vld [vmem:[#allocation10 + $0xc0] sm:$0xf] }
 0x249   : > { %1605 = vmatpush.bf16.msra.mxu0 %v4418_v23  ;;  %v4550_v34 = vor.u32 %v5730_v31, %v4547_v32  ;;  %v5696_v35 = vld [vmem:[#allocation10 + $0xcc] sm:$0xf0]  ;;  %v4529_v36 = vld [vmem:[#allocation10 + $0x1c0] sm:$0xf]  ;;  %v5694_v40 = vld [vmem:[#allocation10 + $0xc4] sm:$0xf] }
 0x24a   : > { %v5728_v37 = vld [vmem:[#allocation10 + $0x1cc] sm:$0xf0]  ;;  %1619 = vmatpush.bf16.msra.mxu1 %v4546_v29  ;;  %1633 = vmatpush.bf16.msra.mxu2 %v4422_v30  ;;  %v4402_v38 = vor.u32 %v5696_v35, %v4401_v33  ;;  %v4403_v41 = vld [vmem:[#allocation10 + $0xd0] sm:$0xf0]  ;;  %v5726_v42 = vld [vmem:[#allocation10 + $0x1c4] sm:$0xf] }
 0x24b   : > { %v4530_v39 = vor.u32 %v5728_v37, %v4529_v36  ;;  %1647 = vmatpush.bf16.msra.mxu3 %v4550_v34  ;;  %v4406_v43 = vor.u32 %v5694_v40, %v4403_v41  ;;  %v4531_v44 = vld [vmem:[#allocation10 + $0x1d0] sm:$0xf0]  ;;  %v4385_v45 = vld [vmem:[#allocation10 + $0xa0] sm:$0xf]  ;;  %v5692_v46 = vld [vmem:[#allocation10 + $0xac] sm:$0xf0] }
 0x24c   : > { %v4534_v47 = vor.u32 %v5726_v42, %v4531_v44  ;;  %v4513_v48 = vld [vmem:[#allocation10 + $0x1a0] sm:$0xf]  ;;  %v5724_v49 = vld [vmem:[#allocation10 + $0x1ac] sm:$0xf0]  ;;  %v5690_v50 = vld [vmem:[#allocation10 + $0xa4] sm:$0xf]  ;;  %v4386_v51 = vor.u32 %v5692_v46, %v4385_v45 }
 0x24d   : > { %1606 = vmatpush.bf16.msra.mxu0 %v4402_v38  ;;  %v4387_v52 = vld [vmem:[#allocation10 + $0xb0] sm:$0xf0]  ;;  %v5722_v53 = vld [vmem:[#allocation10 + $0x1a4] sm:$0xf]  ;;  %v4514_v55 = vor.u32 %v5724_v49, %v4513_v48  ;;  %v4369_v57 = vld [vmem:[#allocation10 + $0x80] sm:$0xf] }
 0x24e   : > { %v4515_v54 = vld [vmem:[#allocation10 + $0x1b0] sm:$0xf0]  ;;  %1620 = vmatpush.bf16.msra.mxu1 %v4530_v39  ;;  %1634 = vmatpush.bf16.msra.mxu2 %v4406_v43  ;;  %v4390_v56 = vor.u32 %v5690_v50, %v4387_v52  ;;  %v5688_v58 = vld [vmem:[#allocation10 + $0x8c] sm:$0xf0]  ;;  %v4497_v59 = vld [vmem:[#allocation10 + $0x180] sm:$0xf] }
 0x24f   : > { %1648 = vmatpush.bf16.msra.mxu3 %v4534_v47  ;;  %v4518_v24 = vor.u32 %v5722_v53, %v4515_v54  ;;  %v5720_v60 = vld [vmem:[#allocation10 + $0x18c] sm:$0xf0]  ;;  %v5686_v27 = vld [vmem:[#allocation10 + $0x84] sm:$0xf]  ;;  %v4371_v61 = vld [vmem:[#allocation10 + $0x90] sm:$0xf0]  ;;  %v4370_v1 = vor.u32 %v5688_v58, %v4369_v57 }
 0x250   : > { %v5718_v62 = vld [vmem:[#allocation10 + $0x184] sm:$0xf]  ;;  %v4499_v63 = vld [vmem:[#allocation10 + $0x190] sm:$0xf0]  ;;  %v4498_v2 = vor.u32 %v5720_v60, %v4497_v59  ;;  %v4374_v4 = vor.u32 %v5686_v27, %v4371_v61  ;;  %v4353_v6 = vld [vmem:[#allocation10 + $0x60] sm:$0xf] }
 0x251   : > { %1607 = vmatpush.bf16.msra.mxu0 %v4386_v51  ;;  %v5684_v8 = vld [vmem:[#allocation10 + $0x6c] sm:$0xf0]  ;;  %v4481_v9 = vld [vmem:[#allocation10 + $0x160] sm:$0xf]  ;;  %v4502_v10 = vor.u32 %v5718_v62, %v4499_v63  ;;  %v5682_v12 = vld [vmem:[#allocation10 + $0x64] sm:$0xf] }
 0x252   : > { %1621 = vmatpush.bf16.msra.mxu1 %v4514_v55  ;;  %1635 = vmatpush.bf16.msra.mxu2 %v4390_v56  ;;  %v5716_v11 = vld [vmem:[#allocation10 + $0x16c] sm:$0xf0]  ;;  %v4355_v13 = vld [vmem:[#allocation10 + $0x70] sm:$0xf0]  ;;  %v5714_v14 = vld [vmem:[#allocation10 + $0x164] sm:$0xf]  ;;  %v4354_v16 = vor.u32 %v5684_v8, %v4353_v6 }
 0x253   : > { %1649 = vmatpush.bf16.msra.mxu3 %v4518_v24  ;;  %v4483_v15 = vld [vmem:[#allocation10 + $0x170] sm:$0xf0]  ;;  %v4482_v17 = vor.u32 %v5716_v11, %v4481_v9  ;;  %v4358_v18 = vor.u32 %v5682_v12, %v4355_v13  ;;  %v4337_v19 = vld [vmem:[#allocation10 + $0x40] sm:$0xf]  ;;  %v5680_v20 = vld [vmem:[#allocation10 + $0x4c] sm:$0xf0]  ;;  %v6584_v11 = vpack.c.bf16 %v6554_v5, %v6550_v0 }
 0x254   : > { %v4465_v21 = vld [vmem:[#allocation10 + $0x140] sm:$0xf]  ;;  %v4486_v22 = vor.u32 %v5714_v14, %v4483_v15  ;;  %v5712_v23 = vld [vmem:[#allocation10 + $0x14c] sm:$0xf0]  ;;  %v5678_v25 = vld [vmem:[#allocation10 + $0x44] sm:$0xf]  ;;  %v4338_v30 = vor.u32 %v5680_v20, %v4337_v19  ;;  %v6588_v15 = vpack.c.bf16 %v6556_v7, %v6552_v3 }
 0x255   : > { %1608 = vmatpush.bf16.msra.mxu0 %v4370_v1  ;;  %v4339_v26 = vld [vmem:[#allocation10 + $0x50] sm:$0xf0]  ;;  %v5710_v28 = vld [vmem:[#allocation10 + $0x144] sm:$0xf]  ;;  %v4466_v31 = vor.u32 %v5712_v23, %v4465_v21  ;;  %v4321_v33 = vld [vmem:[#allocation10 + $0x20] sm:$0xf] }
 0x256   : > { %1622 = vmatpush.bf16.msra.mxu1 %v4498_v2  ;;  %1636 = vmatpush.bf16.msra.mxu2 %v4374_v4  ;;  %v4467_v29 = vld [vmem:[#allocation10 + $0x150] sm:$0xf0]  ;;  %v4342_v32 = vor.u32 %v5678_v25, %v4339_v26  ;;  %v5676_v34 = vld [vmem:[#allocation10 + $0x2c] sm:$0xf0]  ;;  %v4449_v35 = vld [vmem:[#allocation10 + $0x120] sm:$0xf] }
 0x257   : > { %1650 = vmatpush.bf16.msra.mxu3 %v4502_v10  ;;  %v4470_v36 = vor.u32 %v5710_v28, %v4467_v29  ;;  %v5708_v37 = vld [vmem:[#allocation10 + $0x12c] sm:$0xf0]  ;;  %v5674_v38 = vld [vmem:[#allocation10 + $0x24] sm:$0xf]  ;;  %v4323_v39 = vld [vmem:[#allocation10 + $0x30] sm:$0xf0]  ;;  %v4322_v42 = vor.u32 %v5676_v34, %v4321_v33 }
 0x258   : > { %v5706_v40 = vld [vmem:[#allocation10 + $0x124] sm:$0xf]  ;;  %v4451_v41 = vld [vmem:[#allocation10 + $0x130] sm:$0xf0]  ;;  %v4305_v43 = vld [vmem:[#allocation10] sm:$0xf]  ;;  %v4450_v45 = vor.u32 %v5708_v37, %v4449_v35  ;;  %v4326_v46 = vor.u32 %v5674_v38, %v4323_v39 }
 0x259   : > { %1609 = vmatpush.bf16.msra.mxu0 %v4354_v16  ;;  %v5672_v44 = vld [vmem:[#allocation10 + $0xc] sm:$0xf0]  ;;  %v4433_v47 = vld [vmem:[#allocation10 + $0x100] sm:$0xf]  ;;  %v5670_v49 = vld [vmem:[#allocation10 + $0x4] sm:$0xf]  ;;  %v4454_v50 = vor.u32 %v5706_v40, %v4451_v41 }
 0x25a   : > { %1623 = vmatpush.bf16.msra.mxu1 %v4482_v17  ;;  %1637 = vmatpush.bf16.msra.mxu2 %v4358_v18  ;;  %v5704_v48 = vld [vmem:[#allocation10 + $0x10c] sm:$0xf0]  ;;  %v4307_v51 = vld [vmem:[#allocation10 + $0x10] sm:$0xf0]  ;;  %v5702_v52 = vld [vmem:[#allocation10 + $0x104] sm:$0xf]  ;;  %v4306_v57 = vor.u32 %v5672_v44, %v4305_v43 }
 0x25b   : > { %1651 = vmatpush.bf16.msra.mxu3 %v4486_v22  ;;  %v4435_v53 = vld [vmem:[#allocation10 + $0x110] sm:$0xf0]  ;;  %v4425_v54 = vld [vmem:[#allocation10 + $0xe8] sm:$0xf]  ;;  %v5701_v55 = vld [vmem:[#allocation10 + $0xf4] sm:$0xf0]  ;;  %v4434_v60 = vor.u32 %v5704_v48, %v4433_v47  ;;  %v4310_v27 = vor.u32 %v5670_v49, %v4307_v51 }
 0x25c   : > { %v4553_v56 = vld [vmem:[#allocation10 + $0x1e8] sm:$0xf]  ;;  %v5733_v58 = vld [vmem:[#allocation10 + $0x1f4] sm:$0xf0]  ;;  %v5699_v59 = vld [vmem:[#allocation10 + $0xec] sm:$0xf]  ;;  %v4438_v63 = vor.u32 %v5702_v52, %v4435_v53  ;;  %v4426_v1 = vor.u32 %v5701_v55, %v4425_v54 }
 0x25d   : > { %1610 = vmatpush.bf16.msra.mxu0 %v4338_v30  ;;  %v4427_v24 = vld [vmem:[#allocation10 + $0xf8] sm:$0xf0]  ;;  %v5731_v61 = vld [vmem:[#allocation10 + $0x1ec] sm:$0xf]  ;;  %v4554_v2 = vor.u32 %v5733_v58, %v4553_v56  ;;  %v4409_v6 = vld [vmem:[#allocation10 + $0xc8] sm:$0xf] }
 0x25e   : > { %1624 = vmatpush.bf16.msra.mxu1 %v4466_v31  ;;  %1638 = vmatpush.bf16.msra.mxu2 %v4342_v32  ;;  %v4555_v62 = vld [vmem:[#allocation10 + $0x1f8] sm:$0xf0]  ;;  %v4430_v4 = vor.u32 %v5699_v59, %v4427_v24  ;;  %v5697_v8 = vld [vmem:[#allocation10 + $0xd4] sm:$0xf0]  ;;  %v4537_v9 = vld [vmem:[#allocation10 + $0x1c8] sm:$0xf] }
 0x25f   : > { %1652 = vmatpush.bf16.msra.mxu3 %v4470_v36  ;;  %v4558_v10 = vor.u32 %v5731_v61, %v4555_v62  ;;  %v5729_v12 = vld [vmem:[#allocation10 + $0x1d4] sm:$0xf0]  ;;  %v5695_v13 = vld [vmem:[#allocation10 + $0xcc] sm:$0xf]  ;;  %v4411_v14 = vld [vmem:[#allocation10 + $0xd8] sm:$0xf0]  ;;  %v4410_v18 = vor.u32 %v5697_v8, %v4409_v6 }
 0x260   : > { %v5727_v16 = vld [vmem:[#allocation10 + $0x1cc] sm:$0xf]  ;;  %v4539_v17 = vld [vmem:[#allocation10 + $0x1d8] sm:$0xf0]  ;;  %v4538_v19 = vor.u32 %v5729_v12, %v4537_v9  ;;  %v4414_v20 = vor.u32 %v5695_v13, %v4411_v14  ;;  %v4393_v0 = vld [vmem:[#allocation10 + $0xa8] sm:$0xf] }
 0x261   : > { %1611 = vmatpush.bf16.msra.mxu0 %v4322_v42  ;;  %v5693_v5 = vld [vmem:[#allocation10 + $0xb4] sm:$0xf0]  ;;  %v4521_v21 = vld [vmem:[#allocation10 + $0x1a8] sm:$0xf]  ;;  %v4542_v22 = vor.u32 %v5727_v16, %v4539_v17  ;;  %v5691_v25 = vld [vmem:[#allocation10 + $0xac] sm:$0xf] }
 0x262   : > { %1625 = vmatpush.bf16.msra.mxu1 %v4450_v45  ;;  %1639 = vmatpush.bf16.msra.mxu2 %v4326_v46  ;;  %v5725_v23 = vld [vmem:[#allocation10 + $0x1b4] sm:$0xf0]  ;;  %v4395_v3 = vld [vmem:[#allocation10 + $0xb8] sm:$0xf0]  ;;  %v5723_v7 = vld [vmem:[#allocation10 + $0x1ac] sm:$0xf]  ;;  %v4394_v28 = vor.u32 %v5693_v5, %v4393_v0 }
 0x263   : > { %1653 = vmatpush.bf16.msra.mxu3 %v4454_v50  ;;  %v4523_v26 = vld [vmem:[#allocation10 + $0x1b8] sm:$0xf0]  ;;  %v4522_v29 = vor.u32 %v5725_v23, %v4521_v21  ;;  %v4398_v30 = vor.u32 %v5691_v25, %v4395_v3  ;;  %v4377_v31 = vld [vmem:[#allocation10 + $0x88] sm:$0xf]  ;;  %v5689_v32 = vld [vmem:[#allocation10 + $0x94] sm:$0xf0] }
 0x264   : > { %v4505_v33 = vld [vmem:[#allocation10 + $0x188] sm:$0xf]  ;;  %v4526_v34 = vor.u32 %v5723_v7, %v4523_v26  ;;  %v5721_v35 = vld [vmem:[#allocation10 + $0x194] sm:$0xf0]  ;;  %v5687_v36 = vld [vmem:[#allocation10 + $0x8c] sm:$0xf]  ;;  %v4378_v40 = vor.u32 %v5689_v32, %v4377_v31 }
 0x265   : > { %1612 = vmatpush.bf16.msra.mxu0 %v4306_v57  ;;  %v4379_v37 = vld [vmem:[#allocation10 + $0x98] sm:$0xf0]  ;;  %v5719_v38 = vld [vmem:[#allocation10 + $0x18c] sm:$0xf]  ;;  %v4506_v41 = vor.u32 %v5721_v35, %v4505_v33  ;;  %v4361_v43 = vld [vmem:[#allocation10 + $0x68] sm:$0xf] }
 0x266   : > { %1626 = vmatpush.bf16.msra.mxu1 %v4434_v60  ;;  %1640 = vmatpush.bf16.msra.mxu2 %v4310_v27  ;;  %v4507_v39 = vld [vmem:[#allocation10 + $0x198] sm:$0xf0]  ;;  %v4382_v42 = vor.u32 %v5687_v36, %v4379_v37  ;;  %v5685_v44 = vld [vmem:[#allocation10 + $0x74] sm:$0xf0]  ;;  %v4489_v45 = vld [vmem:[#allocation10 + $0x168] sm:$0xf] }
 0x267   : > { %1654 = vmatpush.bf16.msra.mxu3 %v4438_v63  ;;  %v4510_v46 = vor.u32 %v5719_v38, %v4507_v39  ;;  %v5717_v47 = vld [vmem:[#allocation10 + $0x174] sm:$0xf0]  ;;  %v5683_v48 = vld [vmem:[#allocation10 + $0x6c] sm:$0xf]  ;;  %v4363_v49 = vld [vmem:[#allocation10 + $0x78] sm:$0xf0]  ;;  %v4362_v52 = vor.u32 %v5685_v44, %v4361_v43 }
 0x268   : > { %1613 = vmatmul.bf16.vlgmr.msra.gmra.mxu0 %v6584_v11  ;;  %v5715_v50 = vld [vmem:[#allocation10 + $0x16c] sm:$0xf]  ;;  %v4491_v51 = vld [vmem:[#allocation10 + $0x178] sm:$0xf0]  ;;  %v4490_v53 = vor.u32 %v5717_v47, %v4489_v45  ;;  %v4366_v54 = vor.u32 %v5683_v48, %v4363_v49  ;;  %v4345_v55 = vld [vmem:[#allocation10 + $0x48] sm:$0xf] }
 0x269   : > { %1661 = vmatpush.bf16.msrb.mxu0 %v4426_v1  ;;  %1641 = vmatmul.bf16.vlgmr.msra.gmra.mxu2 %v6584_v11  ;;  %v5681_v56 = vld [vmem:[#allocation10 + $0x54] sm:$0xf0]  ;;  %v4473_v57 = vld [vmem:[#allocation10 + $0x148] sm:$0xf]  ;;  %v4494_v58 = vor.u32 %v5715_v50, %v4491_v51  ;;  %v5679_v24 = vld [vmem:[#allocation10 + $0x4c] sm:$0xf] }
 0x26a   : > { %1675 = vmatpush.bf16.msrb.mxu1 %v4554_v2  ;;  %1689 = vmatpush.bf16.msrb.mxu2 %v4430_v4  ;;  %v5713_v59 = vld [vmem:[#allocation10 + $0x154] sm:$0xf0]  ;;  %v4347_v60 = vld [vmem:[#allocation10 + $0x58] sm:$0xf0]  ;;  %v5711_v27 = vld [vmem:[#allocation10 + $0x14c] sm:$0xf]  ;;  %v4346_v62 = vor.u32 %v5681_v56, %v4345_v55 }
 0x26b   : > { %1703 = vmatpush.bf16.msrb.mxu3 %v4558_v10  ;;  %1627 = vmatmul.bf16.vlgmr.msra.gmra.mxu1 %v6588_v15  ;;  %v4475_v61 = vld [vmem:[#allocation10 + $0x158] sm:$0xf0]  ;;  %v4474_v63 = vor.u32 %v5713_v59, %v4473_v57  ;;  %v4350_v1 = vor.u32 %v5679_v24, %v4347_v60  ;;  %v4329_v2 = vld [vmem:[#allocation10 + $0x28] sm:$0xf]  ;;  %v5677_v4 = vld [vmem:[#allocation10 + $0x34] sm:$0xf0] }
 0x26c   : > { %1655 = vmatmul.bf16.vlgmr.msra.gmra.mxu3 %v6588_v15  ;;  %v4457_v6 = vld [vmem:[#allocation10 + $0x128] sm:$0xf]  ;;  %v4478_v8 = vor.u32 %v5711_v27, %v4475_v61  ;;  %v5709_v9 = vld [vmem:[#allocation10 + $0x134] sm:$0xf0]  ;;  %v5675_v10 = vld [vmem:[#allocation10 + $0x2c] sm:$0xf]  ;;  %v4330_v16 = vor.u32 %v5677_v4, %v4329_v2 }
 0x26d   : > { %1662 = vmatpush.bf16.msrb.mxu0 %v4410_v18  ;;  %v4331_v12 = vld [vmem:[#allocation10 + $0x38] sm:$0xf0]  ;;  %v5707_v13 = vld [vmem:[#allocation10 + $0x12c] sm:$0xf]  ;;  %v4313_v17 = vld [vmem:[#allocation10 + $0x8] sm:$0xf]  ;;  %v4458_v18 = vor.u32 %v5709_v9, %v4457_v6 }
 0x26e   : > { %1676 = vmatpush.bf16.msrb.mxu1 %v4538_v19  ;;  %1690 = vmatpush.bf16.msrb.mxu2 %v4414_v20  ;;  %v4459_v14 = vld [vmem:[#allocation10 + $0x138] sm:$0xf0]  ;;  %v4334_v19 = vor.u32 %v5675_v10, %v4331_v12  ;;  %v5673_v20 = vld [vmem:[#allocation10 + $0x14] sm:$0xf0]  ;;  %v4441_v0 = vld [vmem:[#allocation10 + $0x108] sm:$0xf] }
 0x26f   : > { %1704 = vmatpush.bf16.msrb.mxu3 %v4542_v22  ;;  %v5705_v5 = vld [vmem:[#allocation10 + $0x114] sm:$0xf0]  ;;  %v4462_v21 = vor.u32 %v5707_v13, %v4459_v14  ;;  %v5671_v22 = vld [vmem:[#allocation10 + $0xc] sm:$0xf]  ;;  %v4315_v23 = vld [vmem:[#allocation10 + $0x18] sm:$0xf0] }
 0x270   : > { %v5703_v25 = vld [vmem:[#allocation10 + $0x10c] sm:$0xf]  ;;  %v4443_v3 = vld [vmem:[#allocation10 + $0x118] sm:$0xf0]  ;;  %v4785_v7 = vld [vmem:[#allocation11 + $0x1c0] sm:$0xf]  ;;  %v4442_v31 = vor.u32 %v5705_v5, %v4441_v0  ;;  %v4318_v32 = vor.u32 %v5671_v22, %v4315_v23 }
 0x271   : > { %1663 = vmatpush.bf16.msrb.mxu0 %v4394_v28  ;;  %v5794_v26 = vld [vmem:[#allocation11 + $0x1dc] sm:$0xf0]  ;;  %v4314_v28 = vor.u32 %v5673_v20, %v4313_v17  ;;  %v4446_v33 = vor.u32 %v5703_v25, %v4443_v3  ;;  %v5790_v25 = vld [vmem:[#allocation11 + $0x1c4] sm:$0xf]  ;;  %vm3803_vm9 = vcmask 1040384   ;;  %vm3805_vm10 = vcmask 1042434  }
 0x272   : > { %1677 = vmatpush.bf16.msrb.mxu1 %v4522_v29  ;;  %1691 = vmatpush.bf16.msrb.mxu2 %v4398_v30  ;;  %v5041_v29 = vld [vmem:[#allocation11 + $0x3c0] sm:$0xf]  ;;  %vm3807_vm11 = vcmask 1041408   ;;  %vm3809_vm12 = vcmask 1044484   ;;  %vm3811_vm13 = vcmask 1046534   ;;  %vm3813_vm14 = vcmask 1045508  }
 0x273   : > { %1705 = vmatpush.bf16.msrb.mxu3 %v4526_v34  ;;  %v5858_v30 = vld [vmem:[#allocation11 + $0x3dc] sm:$0xf0]  ;;  %v4786_v34 = vor.u32 %v5794_v26, %v4785_v7  ;;  %v4787_v7 = vld [vmem:[#allocation11 + $0x1e0] sm:$0xf0]  ;;  %vm3815_vm15 = vcmask 1043456  }
 0x274   : > { %v5297_v35 = vld [vmem:[#allocation11 + $0x5c0] sm:$0xf]  ;;  %v5042_v39 = vor.u32 %v5858_v30, %v5041_v29  ;;  %v5854_v29 = vld [vmem:[#allocation11 + $0x3c4] sm:$0xf] }
 0x275   : > { %1664 = vmatpush.bf16.msrb.mxu0 %v4378_v40  ;;  %v5922_v36 = vld [vmem:[#allocation11 + $0x5dc] sm:$0xf0]  ;;  %v5043_v30 = vld [vmem:[#allocation11 + $0x3e0] sm:$0xf0] }
 0x276   : > { %1678 = vmatpush.bf16.msrb.mxu1 %v4506_v41  ;;  %1692 = vmatpush.bf16.msrb.mxu2 %v4382_v42  ;;  %v4753_v37 = vld [vmem:[#allocation11 + $0x180] sm:$0xf]  ;;  %v5298_v42 = vor.u32 %v5922_v36, %v5297_v35  ;;  %v4755_v35 = vld [vmem:[#allocation11 + $0x1a0] sm:$0xf0]  ;;  %v5046_v36 = vor.u32 %v5854_v29, %v5043_v30 }
 0x277   : > { %1706 = vmatpush.bf16.msrb.mxu3 %v4510_v46  ;;  %v5786_v38 = vld [vmem:[#allocation11 + $0x19c] sm:$0xf0]  ;;  %v5734_v30 = vld [vmem:[#allocation11 + $0x4] sm:$0xf] }
 0x278   : > { %v5009_v40 = vld [vmem:[#allocation11 + $0x380] sm:$0xf]  ;;  %v4754_v43 = vor.u32 %v5786_v38, %v4753_v37  ;;  %v5846_v37 = vld [vmem:[#allocation11 + $0x384] sm:$0xf] }
 0x279   : > { %1665 = vmatpush.bf16.msrb.mxu0 %v4362_v52  ;;  %v5850_v41 = vld [vmem:[#allocation11 + $0x39c] sm:$0xf0]  ;;  %v5011_v38 = vld [vmem:[#allocation11 + $0x3a0] sm:$0xf0] }
 0x27a   : > { %1679 = vmatpush.bf16.msrb.mxu1 %v4490_v53  ;;  %1693 = vmatpush.bf16.msrb.mxu2 %v4366_v54  ;;  %v5265_v44 = vld [vmem:[#allocation11 + $0x580] sm:$0xf]  ;;  %v5010_v48 = vor.u32 %v5850_v41, %v5009_v40  ;;  %v5774_v40 = vld [vmem:[#allocation11 + $0x144] sm:$0xf] }
 0x27b   : > { %1707 = vmatpush.bf16.msrb.mxu3 %v4494_v58  ;;  %v5914_v45 = vld [vmem:[#allocation11 + $0x59c] sm:$0xf0]  ;;  %v4723_v41 = vld [vmem:[#allocation11 + $0x160] sm:$0xf0] }
 0x27c   : > { %v4721_v46 = vld [vmem:[#allocation11 + $0x140] sm:$0xf]  ;;  %v5266_v53 = vor.u32 %v5914_v45, %v5265_v44 }
 0x27d   : > { %1666 = vmatpush.bf16.msrb.mxu0 %v4346_v62  ;;  %v5778_v47 = vld [vmem:[#allocation11 + $0x15c] sm:$0xf0] }
 0x27e   : > { %1680 = vmatpush.bf16.msrb.mxu1 %v4474_v63  ;;  %1694 = vmatpush.bf16.msrb.mxu2 %v4350_v1  ;;  %v5553_v49 = vld [vmem:[#allocation11 + $0x7c0] sm:$0xf]  ;;  %v4722_v55 = vor.u32 %v5778_v47, %v4721_v46  ;;  %v5766_v46 = vld [vmem:[#allocation11 + $0x104] sm:$0xf] }
 0x27f   : > { %1708 = vmatpush.bf16.msrb.mxu3 %v4478_v8  ;;  %v4977_v50 = vld [vmem:[#allocation11 + $0x340] sm:$0xf] }
 0x280   : > { %v5842_v51 = vld [vmem:[#allocation11 + $0x35c] sm:$0xf0] }
 0x281   : > { %1667 = vmatpush.bf16.msrb.mxu0 %v4330_v16  ;;  %v5986_v52 = vld [vmem:[#allocation11 + $0x7dc] sm:$0xf0]  ;;  %v4978_v24 = vor.u32 %v5842_v51, %v4977_v50 }
 0x282   : > { %1681 = vmatpush.bf16.msrb.mxu1 %v4458_v18  ;;  %1695 = vmatpush.bf16.msrb.mxu2 %v4334_v19  ;;  %v5554_v54 = vor.u32 %v5986_v52, %v5553_v49  ;;  %v4689_v56 = vld [vmem:[#allocation11 + $0x100] sm:$0xf]  ;;  %v5838_v52 = vld [vmem:[#allocation11 + $0x344] sm:$0xf] }
 0x283   : > { %1709 = vmatpush.bf16.msrb.mxu3 %v4462_v21  ;;  %v5233_v57 = vld [vmem:[#allocation11 + $0x540] sm:$0xf] }
 0x284   : > { %v5906_v58 = vld [vmem:[#allocation11 + $0x55c] sm:$0xf0] }
 0x285   : > { %1668 = vmatpush.bf16.msrb.mxu0 %v4314_v28  ;;  %v5770_v59 = vld [vmem:[#allocation11 + $0x11c] sm:$0xf0]  ;;  %v5234_v63 = vor.u32 %v5906_v58, %v5233_v57  ;;  %v5758_v58 = vld [vmem:[#allocation11 + $0xc4] sm:$0xf] }
 0x286   : > { %1682 = vmatpush.bf16.msrb.mxu1 %v4442_v31  ;;  %1696 = vmatpush.bf16.msrb.mxu2 %v4318_v32  ;;  %v5521_v60 = vld [vmem:[#allocation11 + $0x780] sm:$0xf]  ;;  %v4790_v32 = vor.u32 %v5790_v25, %v4787_v7  ;;  %v5814_v25 = vld [vmem:[#allocation11 + $0x284] sm:$0xf] }
 0x287   : > { %1710 = vmatpush.bf16.msrb.mxu3 %v4446_v33  ;;  %v5978_v27 = vld [vmem:[#allocation11 + $0x79c] sm:$0xf0]  ;;  %v4883_v7 = vld [vmem:[#allocation11 + $0x2a0] sm:$0xf0] }
 0x288   : > { %1669 = vmatmul.bf16.vlgmr.msrb.gmra.mxu0 %v6584_v11  ;;  %v5834_v61 = vld [vmem:[#allocation11 + $0x31c] sm:$0xf0]  ;;  %v5522_v62 = vor.u32 %v5978_v27, %v5521_v60 }
 0x289   : > { %3283 = vmatpush.bf16.msra.mxu0 %v4786_v34  ;;  %1683 = vmatmul.bf16.vlgmr.msrb.gmra.mxu1 %v6588_v15  ;;  %v4657_v1 = vld [vmem:[#allocation11 + $0xc0] sm:$0xf]  ;;  %v5782_v34 = vld [vmem:[#allocation11 + $0x184] sm:$0xf] }
 0x28a   : > { %3297 = vmatpush.bf16.msra.mxu1 %v5042_v39  ;;  %1697 = vmatmul.bf16.vlgmr.msrb.gmra.mxu2 %v6584_v11  ;;  %v4945_v11 = vld [vmem:[#allocation11 + $0x300] sm:$0xf]  ;;  %v4758_v39 = vor.u32 %v5782_v34, %v4755_v35  ;;  %v5299_v34 = vld [vmem:[#allocation11 + $0x5e0] sm:$0xf0] }
 0x28b   : > { %1711 = vmatmul.bf16.vlgmr.msrb.gmra.mxu3 %v6588_v15  ;;  %3311 = vmatpush.bf16.msra.mxu2 %v5298_v42  ;;  %v4690_v15 = vor.u32 %v5770_v59, %v4689_v56  ;;  %v5762_v2 = vld [vmem:[#allocation11 + $0xdc] sm:$0xf0]  ;;  %v4946_v4 = vor.u32 %v5834_v61, %v4945_v11  ;;  %v5014_v42 = vor.u32 %v5846_v37, %v5011_v38 }
 0x28c   : > { %3325 = vmatpush.bf16.msra.mxu3 %v5554_v54  ;;  %v4913_v6 = vld [vmem:[#allocation11 + $0x2c0] sm:$0xf]  ;;  %v4658_v9 = vor.u32 %v5762_v2, %v4657_v1  ;;  %v4979_v54 = vld [vmem:[#allocation11 + $0x360] sm:$0xf0] }
 0x28d   : > { %3284 = vmatpush.bf16.msra.mxu0 %v4754_v43  ;;  %v5826_v8 = vld [vmem:[#allocation11 + $0x2dc] sm:$0xf0]  ;;  %v4726_v43 = vor.u32 %v5774_v40, %v4723_v41  ;;  %v4851_v40 = vld [vmem:[#allocation11 + $0x260] sm:$0xf0] }
 0x28e   : > { %3298 = vmatpush.bf16.msra.mxu1 %v5010_v48  ;;  %v4625_v10 = vld [vmem:[#allocation11 + $0x80] sm:$0xf]  ;;  %v4914_v13 = vor.u32 %v5826_v8, %v4913_v6  ;;  %v4691_v48 = vld [vmem:[#allocation11 + $0x120] sm:$0xf0] }
 0x28f   : > { %3312 = vmatpush.bf16.msra.mxu2 %v5266_v53  ;;  %v5754_v12 = vld [vmem:[#allocation11 + $0x9c] sm:$0xf0]  ;;  %v4694_v49 = vor.u32 %v5766_v46, %v4691_v48  ;;  %v4627_v8 = vld [vmem:[#allocation11 + $0xa0] sm:$0xf0] }
 0x290   : > { %3326 = vmatpush.bf16.msra.mxu3 %v5522_v62  ;;  %v4881_v14 = vld [vmem:[#allocation11 + $0x280] sm:$0xf]  ;;  %v4626_v17 = vor.u32 %v5754_v12, %v4625_v10  ;;  %v5830_v62 = vld [vmem:[#allocation11 + $0x304] sm:$0xf] }
 0x291   : > { %3285 = vmatpush.bf16.msra.mxu0 %v4722_v55  ;;  %v5818_v16 = vld [vmem:[#allocation11 + $0x29c] sm:$0xf0]  ;;  %v4982_v55 = vor.u32 %v5838_v52, %v4979_v54 }
 0x292   : > { %3299 = vmatpush.bf16.msra.mxu1 %v4978_v24  ;;  %v4593_v18 = vld [vmem:[#allocation11 + $0x40] sm:$0xf]  ;;  %v4882_v20 = vor.u32 %v5818_v16, %v4881_v14  ;;  %v4659_v24 = vld [vmem:[#allocation11 + $0xe0] sm:$0xf0] }
 0x293   : > { %3313 = vmatpush.bf16.msra.mxu2 %v5234_v63  ;;  %v5746_v19 = vld [vmem:[#allocation11 + $0x5c] sm:$0xf0]  ;;  %v4662_v60 = vor.u32 %v5758_v58, %v4659_v24  ;;  %v4947_v63 = vld [vmem:[#allocation11 + $0x320] sm:$0xf0] }
 0x294   : > { %v4849_v0 = vld [vmem:[#allocation11 + $0x240] sm:$0xf]  ;;  %v4594_v21 = vor.u32 %v5746_v19, %v4593_v18  ;;  %v4915_v16 = vld [vmem:[#allocation11 + $0x2e0] sm:$0xf0] }
 0x295   : > { %3286 = vmatpush.bf16.msra.mxu0 %v4690_v15  ;;  %v5810_v5 = vld [vmem:[#allocation11 + $0x25c] sm:$0xf0]  ;;  %v4950_v15 = vor.u32 %v5830_v62, %v4947_v63  ;;  %v5974_v58 = vld [vmem:[#allocation11 + $0x784] sm:$0xf] }
 0x296   : > { %3300 = vmatpush.bf16.msra.mxu1 %v4946_v4  ;;  %v4561_v22 = vld [vmem:[#allocation11] sm:$0xf]  ;;  %v4850_v3 = vor.u32 %v5810_v5, %v4849_v0  ;;  %v5750_v4 = vld [vmem:[#allocation11 + $0x84] sm:$0xf] }
 0x297   : > { %v5738_v23 = vld [vmem:[#allocation11 + $0x1c] sm:$0xf0]  ;;  %v4595_v5 = vld [vmem:[#allocation11 + $0x60] sm:$0xf0] }
 0x298   : > { %v4817_v26 = vld [vmem:[#allocation11 + $0x200] sm:$0xf]  ;;  %v4562_v31 = vor.u32 %v5738_v23, %v4561_v22  ;;  %v5966_v62 = vld [vmem:[#allocation11 + $0x744] sm:$0xf] }
 0x299   : > { %3287 = vmatpush.bf16.msra.mxu0 %v4658_v9  ;;  %v5802_v28 = vld [vmem:[#allocation11 + $0x21c] sm:$0xf0]  ;;  %v4630_v9 = vor.u32 %v5750_v4, %v4627_v8  ;;  %v5491_v63 = vld [vmem:[#allocation11 + $0x760] sm:$0xf0] }
 0x29a   : > { %3301 = vmatpush.bf16.msra.mxu1 %v4914_v13  ;;  %v4818_v33 = vor.u32 %v5802_v28, %v4817_v26  ;;  %v5201_v44 = vld [vmem:[#allocation11 + $0x500] sm:$0xf]  ;;  %v5822_v13 = vld [vmem:[#allocation11 + $0x2c4] sm:$0xf]  ;;  %v4886_v26 = vor.u32 %v5814_v25, %v4883_v7 }
 0x29b   : > { %v5898_v45 = vld [vmem:[#allocation11 + $0x51c] sm:$0xf0]  ;;  %v5886_v4 = vld [vmem:[#allocation11 + $0x4c4] sm:$0xf] }
 0x29c   : > { %v5202_v47 = vor.u32 %v5898_v45, %v5201_v44  ;;  %v5489_v50 = vld [vmem:[#allocation11 + $0x740] sm:$0xf]  ;;  %v5267_v44 = vld [vmem:[#allocation11 + $0x5a0] sm:$0xf0] }
 0x29d   : > { %3288 = vmatpush.bf16.msra.mxu0 %v4626_v17  ;;  %v5970_v51 = vld [vmem:[#allocation11 + $0x75c] sm:$0xf0]  ;;  %v4918_v17 = vor.u32 %v5822_v13, %v4915_v16  ;;  %v5878_v16 = vld [vmem:[#allocation11 + $0x484] sm:$0xf] }
 0x29e   : > { %3302 = vmatpush.bf16.msra.mxu1 %v4882_v20  ;;  %3314 = vmatpush.bf16.msra.mxu2 %v5202_v47  ;;  %v5490_v53 = vor.u32 %v5970_v51, %v5489_v50  ;;  %v5169_v56 = vld [vmem:[#allocation11 + $0x4c0] sm:$0xf]  ;;  %v5742_v20 = vld [vmem:[#allocation11 + $0x44] sm:$0xf] }
 0x29f   : > { %v5890_v57 = vld [vmem:[#allocation11 + $0x4dc] sm:$0xf0]  ;;  %v4819_v50 = vld [vmem:[#allocation11 + $0x220] sm:$0xf0] }
 0x2a0   : > { %3327 = vmatpush.bf16.msra.mxu3 %v5490_v53  ;;  %v5170_v59 = vor.u32 %v5890_v57, %v5169_v56  ;;  %v5457_v27 = vld [vmem:[#allocation11 + $0x700] sm:$0xf]  ;;  %v5982_v51 = vld [vmem:[#allocation11 + $0x7c4] sm:$0xf] }
 0x2a1   : > { %3289 = vmatpush.bf16.msra.mxu0 %v4594_v21  ;;  %v5962_v11 = vld [vmem:[#allocation11 + $0x71c] sm:$0xf0]  ;;  %v4598_v21 = vor.u32 %v5742_v20, %v4595_v5  ;;  %v5555_v53 = vld [vmem:[#allocation11 + $0x7e0] sm:$0xf0] }
 0x2a2   : > { %3303 = vmatpush.bf16.msra.mxu1 %v4850_v3  ;;  %3315 = vmatpush.bf16.msra.mxu2 %v5170_v59  ;;  %v5458_v61 = vor.u32 %v5962_v11, %v5457_v27  ;;  %v5137_v1 = vld [vmem:[#allocation11 + $0x480] sm:$0xf]  ;;  %v5558_v54 = vor.u32 %v5982_v51, %v5555_v53  ;;  %v5235_v56 = vld [vmem:[#allocation11 + $0x560] sm:$0xf0]  ;;  %v5049_v53 = vld [vmem:[#allocation11 + $0x3c8] sm:$0xf] }
 0x2a3   : > { %v5882_v2 = vld [vmem:[#allocation11 + $0x49c] sm:$0xf0]  ;;  %v5523_v59 = vld [vmem:[#allocation11 + $0x7a0] sm:$0xf0] }
 0x2a4   : > { %3328 = vmatpush.bf16.msra.mxu3 %v5458_v61  ;;  %v5138_v6 = vor.u32 %v5882_v2, %v5137_v1  ;;  %v5425_v10 = vld [vmem:[#allocation11 + $0x6c0] sm:$0xf]  ;;  %v5526_v24 = vor.u32 %v5974_v58, %v5523_v59  ;;  %v5894_v27 = vld [vmem:[#allocation11 + $0x504] sm:$0xf]  ;;  %v5494_v1 = vor.u32 %v5966_v62, %v5491_v63 }
 0x2a5   : > { %3290 = vmatpush.bf16.msra.mxu0 %v4562_v31  ;;  %v5954_v12 = vld [vmem:[#allocation11 + $0x6dc] sm:$0xf0]  ;;  %v5203_v11 = vld [vmem:[#allocation11 + $0x520] sm:$0xf0] }
 0x2a6   : > { %3304 = vmatpush.bf16.msra.mxu1 %v4818_v33  ;;  %3316 = vmatpush.bf16.msra.mxu2 %v5138_v6  ;;  %v5426_v14 = vor.u32 %v5954_v12, %v5425_v10  ;;  %v5105_v18 = vld [vmem:[#allocation11 + $0x440] sm:$0xf]  ;;  %v5918_v33 = vld [vmem:[#allocation11 + $0x5c4] sm:$0xf]  ;;  %v5206_v61 = vor.u32 %v5894_v27, %v5203_v11  ;;  %v5779_v27 = vld [vmem:[#allocation11 + $0x164] sm:$0xf0] }
 0x2a7   : > { %v5874_v19 = vld [vmem:[#allocation11 + $0x45c] sm:$0xf0]  ;;  %v5171_v6 = vld [vmem:[#allocation11 + $0x4e0] sm:$0xf0] }
 0x2a8   : > { %3329 = vmatpush.bf16.msra.mxu3 %v5426_v14  ;;  %v5106_v0 = vor.u32 %v5874_v19, %v5105_v18  ;;  %v5393_v22 = vld [vmem:[#allocation11 + $0x680] sm:$0xf]  ;;  %v5958_v10 = vld [vmem:[#allocation11 + $0x704] sm:$0xf] }
 0x2a9   : > { %3339 = vmatpush.bf16.msrb.mxu0 %v4790_v32  ;;  %v5946_v23 = vld [vmem:[#allocation11 + $0x69c] sm:$0xf0]  ;;  %v4563_v32 = vld [vmem:[#allocation11 + $0x20] sm:$0xf0] }
 0x2aa   : > { %3353 = vmatpush.bf16.msrb.mxu1 %v5046_v36  ;;  %3317 = vmatpush.bf16.msra.mxu2 %v5106_v0  ;;  %v5394_v3 = vor.u32 %v5946_v23, %v5393_v22  ;;  %v5073_v28 = vld [vmem:[#allocation11 + $0x400] sm:$0xf]  ;;  %v4566_v35 = vor.u32 %v5734_v30, %v4563_v32  ;;  %v5302_v36 = vor.u32 %v5918_v33, %v5299_v34  ;;  %v5459_v12 = vld [vmem:[#allocation11 + $0x720] sm:$0xf0] }
 0x2ab   : > { %v5866_v29 = vld [vmem:[#allocation11 + $0x41c] sm:$0xf0]  ;;  %v5462_v14 = vor.u32 %v5958_v10, %v5459_v12  ;;  %v5950_v20 = vld [vmem:[#allocation11 + $0x6c4] sm:$0xf]  ;;  %v4985_v10 = vld [vmem:[#allocation11 + $0x348] sm:$0xf] }
 0x2ac   : > { %3330 = vmatpush.bf16.msra.mxu3 %v5394_v3  ;;  %v5074_v31 = vor.u32 %v5866_v29, %v5073_v28  ;;  %v5361_v37 = vld [vmem:[#allocation11 + $0x640] sm:$0xf]  ;;  %v5427_v0 = vld [vmem:[#allocation11 + $0x6e0] sm:$0xf0]  ;;  %v5843_v12 = vld [vmem:[#allocation11 + $0x364] sm:$0xf0] }
 0x2ad   : > { %3340 = vmatpush.bf16.msrb.mxu0 %v4758_v39  ;;  %v5938_v38 = vld [vmem:[#allocation11 + $0x65c] sm:$0xf0]  ;;  %v5806_v39 = vld [vmem:[#allocation11 + $0x244] sm:$0xf]  ;;  %v5430_v22 = vor.u32 %v5950_v20, %v5427_v0  ;;  %v4953_v0 = vld [vmem:[#allocation11 + $0x308] sm:$0xf] }
 0x2ae   : > { %3354 = vmatpush.bf16.msrb.mxu1 %v5014_v42  ;;  %3318 = vmatpush.bf16.msra.mxu2 %v5074_v31  ;;  %v5362_v41 = vor.u32 %v5938_v38, %v5361_v37  ;;  %v4854_v42 = vor.u32 %v5806_v39, %v4851_v40  ;;  %v5329_v46 = vld [vmem:[#allocation11 + $0x600] sm:$0xf]  ;;  %v5870_v3 = vld [vmem:[#allocation11 + $0x444] sm:$0xf] }
 0x2af   : > { %v5930_v47 = vld [vmem:[#allocation11 + $0x61c] sm:$0xf0]  ;;  %v5107_v7 = vld [vmem:[#allocation11 + $0x460] sm:$0xf0] }
 0x2b0   : > { %3331 = vmatpush.bf16.msra.mxu3 %v5362_v41  ;;  %v5330_v48 = vor.u32 %v5930_v47, %v5329_v46  ;;  %v5110_v29 = vor.u32 %v5870_v3, %v5107_v7  ;;  %v5942_v31 = vld [vmem:[#allocation11 + $0x684] sm:$0xf]  ;;  %v5787_v47 = vld [vmem:[#allocation11 + $0x1a4] sm:$0xf0] }
 0x2b1   : > { %3341 = vmatpush.bf16.msrb.mxu0 %v4726_v43  ;;  %v5910_v43 = vld [vmem:[#allocation11 + $0x584] sm:$0xf]  ;;  %v4921_v7 = vld [vmem:[#allocation11 + $0x2c8] sm:$0xf] }
 0x2b2   : > { %3355 = vmatpush.bf16.msrb.mxu1 %v4982_v55  ;;  %3367 = vmatpush.bf16.msrb.mxu2 %v5302_v36  ;;  %v5270_v45 = vor.u32 %v5910_v43, %v5267_v44  ;;  %v5902_v55 = vld [vmem:[#allocation11 + $0x544] sm:$0xf]  ;;  %v5795_v36 = vld [vmem:[#allocation11 + $0x1e4] sm:$0xf0] }
 0x2b3   : > { %v5238_v57 = vor.u32 %v5902_v55, %v5235_v56  ;;  %v5395_v32 = vld [vmem:[#allocation11 + $0x6a0] sm:$0xf0]  ;;  %v4761_v44 = vld [vmem:[#allocation11 + $0x188] sm:$0xf] }
 0x2b4   : > { %3332 = vmatpush.bf16.msra.mxu3 %v5330_v48  ;;  %v5398_v37 = vor.u32 %v5942_v31, %v5395_v32  ;;  %v5862_v38 = vld [vmem:[#allocation11 + $0x404] sm:$0xf] }
 0x2b5   : > { %3342 = vmatpush.bf16.msrb.mxu0 %v4694_v49  ;;  %v5798_v49 = vld [vmem:[#allocation11 + $0x204] sm:$0xf] }
 0x2b6   : > { %3356 = vmatpush.bf16.msrb.mxu1 %v4950_v15  ;;  %3368 = vmatpush.bf16.msrb.mxu2 %v5270_v45  ;;  %v4822_v52 = vor.u32 %v5798_v49, %v4819_v50  ;;  %v5075_v39 = vld [vmem:[#allocation11 + $0x420] sm:$0xf0] }
 0x2b7   : > { %v5078_v41 = vor.u32 %v5862_v38, %v5075_v39  ;;  %v5934_v48 = vld [vmem:[#allocation11 + $0x644] sm:$0xf]  ;;  %v4889_v38 = vld [vmem:[#allocation11 + $0x288] sm:$0xf] }
 0x2b8   : > { %3381 = vmatpush.bf16.msrb.mxu3 %v5558_v54  ;;  %v5363_v49 = vld [vmem:[#allocation11 + $0x660] sm:$0xf0]  ;;  %v5859_v54 = vld [vmem:[#allocation11 + $0x3e4] sm:$0xf0] }
 0x2b9   : > { %3343 = vmatpush.bf16.msrb.mxu0 %v4662_v60  ;;  %v6598_v60 = vld [vmem:[#allocation4] sm:$0xf]  ;;  %v5926_v58 = vld [vmem:[#allocation11 + $0x604] sm:$0xf]  ;;  %v5050_v62 = vor.u32 %v5859_v54, %v5049_v53  ;;  %v5819_v39 = vld [vmem:[#allocation11 + $0x2a4] sm:$0xf0] }
 0x2ba   : > { %3357 = vmatpush.bf16.msrb.mxu1 %v4918_v17  ;;  %3369 = vmatpush.bf16.msrb.mxu2 %v5238_v57  ;;  %v1277_v15 = vperm.slane %v6598_v60, 0  ;;  %v5139_v17 = vld [vmem:[#allocation11 + $0x4a0] sm:$0xf0]  ;;  %v1278_v19 = vperm.slane %v6598_v60, 1  ;;  %v4762_v57 = vor.u32 %v5787_v47, %v4761_v44  ;;  %v1280_v31 = vperm.slane %v6598_v60, 3 }
 0x2bb   : > { %v5142_v18 = vor.u32 %v5878_v16, %v5139_v17  ;;  %v5331_v59 = vld [vmem:[#allocation11 + $0x620] sm:$0xf0]  ;;  %v4986_v17 = vor.u32 %v5843_v12, %v4985_v10  ;;  %v5791_v47 = vld [vmem:[#allocation11 + $0x1cc] sm:$0xf]  ;;  %v4857_v53 = vld [vmem:[#allocation11 + $0x248] sm:$0xf] }
 0x2bc   : > { %3382 = vmatpush.bf16.msrb.mxu3 %v5526_v24  ;;  %v4729_v24 = vld [vmem:[#allocation11 + $0x148] sm:$0xf]  ;;  %v5334_v11 = vor.u32 %v5926_v58, %v5331_v59 }
 0x2bd   : > { %3344 = vmatpush.bf16.msrb.mxu0 %v4630_v9  ;;  %v5174_v9 = vor.u32 %v5886_v4, %v5171_v6  ;;  %v4697_v4 = vld [vmem:[#allocation11 + $0x108] sm:$0xf] }
 0x2be   : > { %3358 = vmatpush.bf16.msrb.mxu1 %v4886_v26  ;;  %3370 = vmatpush.bf16.msrb.mxu2 %v5206_v61  ;;  %v5771_v6 = vld [vmem:[#allocation11 + $0x124] sm:$0xf0] }
 0x2bf   : > { %v5811_v54 = vld [vmem:[#allocation11 + $0x264] sm:$0xf0] }
 0x2c0   : > { %3383 = vmatpush.bf16.msrb.mxu3 %v5494_v1  ;;  %v5017_v1 = vld [vmem:[#allocation11 + $0x388] sm:$0xf] }
 0x2c1   : > { %3345 = vmatpush.bf16.msrb.mxu0 %v4598_v21 }
 0x2c2   : > { %3359 = vmatpush.bf16.msrb.mxu1 %v4854_v42  ;;  %3371 = vmatpush.bf16.msrb.mxu2 %v5174_v9  ;;  %v4698_v9 = vor.u32 %v5771_v6, %v4697_v4  ;;  %v5803_v4 = vld [vmem:[#allocation11 + $0x224] sm:$0xf0] }
 0x2c3   : > { %v5561_v6 = vld [vmem:[#allocation11 + $0x7c8] sm:$0xf] }
 0x2c4   : > { %3384 = vmatpush.bf16.msrb.mxu3 %v5462_v14  ;;  %v5763_v14 = vld [vmem:[#allocation11 + $0xe4] sm:$0xf0] }
 0x2c5   : > { %3346 = vmatpush.bf16.msrb.mxu0 %v4566_v35  ;;  %v4793_v35 = vld [vmem:[#allocation11 + $0x1c8] sm:$0xf] }
 0x2c6   : > { %3360 = vmatpush.bf16.msrb.mxu1 %v4822_v52  ;;  %3372 = vmatpush.bf16.msrb.mxu2 %v5142_v18  ;;  %v4794_v43 = vor.u32 %v5795_v36, %v4793_v35  ;;  %v5366_v52 = vor.u32 %v5934_v48, %v5363_v49  ;;  %v1279_v18 = vperm.slane %v6598_v60, 2  ;;  %v4795_v60 = vld [vmem:[#allocation11 + $0x1e8] sm:$0xf0]  ;;  %v4890_v49 = vor.u32 %v5819_v39, %v4889_v38  ;;  %v5971_v39 = vld [vmem:[#allocation11 + $0x764] sm:$0xf0] }
 0x2c8   : > { %3385 = vmatpush.bf16.msrb.mxu3 %v5430_v22  ;;  %v5755_v22 = vld [vmem:[#allocation11 + $0xa4] sm:$0xf0] }
 0x2ca   : > { %3373 = vmatpush.bf16.msrb.mxu2 %v5110_v29  ;;  %v5747_v29 = vld [vmem:[#allocation11 + $0x64] sm:$0xf0] }
 0x2cc   : > { %3386 = vmatpush.bf16.msrb.mxu3 %v5398_v37 }
 0x2ce   : > { %3374 = vmatpush.bf16.msrb.mxu2 %v5078_v41  ;;  %v4569_v41 = vld [vmem:[#allocation11 + $0x8] sm:$0xf] }
 0x2d0   : > { %3387 = vmatpush.bf16.msrb.mxu3 %v5366_v52 }
 0x2d4   : > { %3388 = vmatpush.bf16.msrb.mxu3 %v5334_v11  ;;  %v4763_v11 = vld [vmem:[#allocation11 + $0x1a8] sm:$0xf0] }
 0x2e5   : > { %v1614_v2 = vpop.f32.mrf.mxu0 }
 0x2e6   : > { %v1615_v13 = vadd.f32 %v1614_v2, %v1277_v15  ;;  %v5851_v2 = vld [vmem:[#allocation11 + $0x3a4] sm:$0xf0] }
 0x2e8   : > { %v1628_v8 = vpop.f32.mrf.mxu1 }
 0x2e9   : > { %v1629_v5 = vadd.f32 %v1628_v8, %v1615_v13  ;;  %v5018_v8 = vor.u32 %v5851_v2, %v5017_v1  ;;  %v4665_v13 = vld [vmem:[#allocation11 + $0xc8] sm:$0xf] }
 0x2ea   : > { %v4666_v20 = vor.u32 %v5763_v14, %v4665_v13  ;;  %v4825_v1 = vld [vmem:[#allocation11 + $0x208] sm:$0xf]  ;;  %v5855_v13 = vld [vmem:[#allocation11 + $0x3cc] sm:$0xf] }
 0x2eb   : > { %v1717_v33 = vmax.f32 %v1629_v5, 0.0  ;;  %v5835_v5 = vld [vmem:[#allocation11 + $0x324] sm:$0xf0]  ;;  %v5051_v14 = vld [vmem:[#allocation11 + $0x3e8] sm:$0xf0] }
 0x2ec   : > { %v1642_v21 = vpop.f32.mrf.mxu2 }
 0x2ed   : > { %v1616_v23 = vpop.f32.mrf.mxu0  ;;  %v1643_v30 = vadd.f32 %v1642_v21, %v1278_v19  ;;  %v4633_v21 = vld [vmem:[#allocation11 + $0x88] sm:$0xf] }
 0x2ee   : > { %v1617_v26 = vadd.f32 %v1616_v23, %v1277_v15  ;;  %v4730_v15 = vor.u32 %v5779_v27, %v4729_v24  ;;  %v4954_v23 = vor.u32 %v5835_v5, %v4953_v0  ;;  %v4634_v3 = vor.u32 %v5755_v22, %v4633_v21  ;;  %v5915_v24 = vld [vmem:[#allocation11 + $0x5a4] sm:$0xf0]  ;;  %v5783_v27 = vld [vmem:[#allocation11 + $0x18c] sm:$0xf] }
 0x2ef   : > { %v1656_v25 = vpop.f32.mrf.mxu3  ;;  %v4766_v12 = vor.u32 %v5783_v27, %v4763_v11  ;;  %v4826_v5 = vor.u32 %v5803_v4, %v4825_v1  ;;  %v5054_v22 = vor.u32 %v5855_v13, %v5051_v14  ;;  %v5433_v27 = vld [vmem:[#allocation11 + $0x6c8] sm:$0xf]  ;;  %v4603_v4 = vld [vmem:[#allocation11 + $0x68] sm:$0xf0] }
 0x2f0   : > { %v1630_v28 = vpop.f32.mrf.mxu1  ;;  %v1657_v42 = vadd.f32 %v1656_v25, %v1643_v30  ;;  %v5947_v14 = vld [vmem:[#allocation11 + $0x6a4] sm:$0xf0] }
 0x2f1   : > { %v1631_v34 = vadd.f32 %v1630_v28, %v1617_v26  ;;  %v5827_v26 = vld [vmem:[#allocation11 + $0x2e4] sm:$0xf0] }
 0x2f2   : > { %v1718_v55 = vmax.f32 %v1657_v42, 0.0  ;;  %v4601_v28 = vld [vmem:[#allocation11 + $0x48] sm:$0xf] }
 0x2f3   : > { %v1721_v40 = vmax.f32 %v1631_v34, 0.0  ;;  %v4922_v34 = vor.u32 %v5827_v26, %v4921_v7  ;;  %v4602_v37 = vor.u32 %v5747_v29, %v4601_v28  ;;  %v5739_v42 = vld [vmem:[#allocation11 + $0x24] sm:$0xf0]  ;;  %v5847_v28 = vld [vmem:[#allocation11 + $0x38c] sm:$0xf] }
 0x2f4   : > { %v1644_v46 = vpop.f32.mrf.mxu2  ;;  %v4570_v52 = vor.u32 %v5739_v42, %v4569_v41  ;;  %v5019_v29 = vld [vmem:[#allocation11 + $0x3a8] sm:$0xf0] }
 0x2f5   : > { %v6602_v45 = vpack.c.bf16 %v1721_v40, %v1717_v33  ;;  %v1645_v50 = vadd.f32 %v1644_v46, %v1278_v19  ;;  %v5923_v46 = vld [vmem:[#allocation11 + $0x5e4] sm:$0xf0]  ;;  %v4987_v41 = vld [vmem:[#allocation11 + $0x368] sm:$0xf0] }
 0x2f6   : > { %v5759_v42 = vld [vmem:[#allocation11 + $0xcc] sm:$0xf] }
 0x2f7   : > { %v1658_v51 = vpop.f32.mrf.mxu3  ;;  %3291 = vmatmul.bf16.vlgmr.msra.gmra.mxu0 %v6602_v45 }
 0x2f8   : > { %v1659_v56 = vadd.f32 %v1658_v51, %v1645_v50  ;;  %3395 = vmatpush.bf16.msra.mxu0 %v4794_v43  ;;  %v5305_v43 = vld [vmem:[#allocation11 + $0x5c8] sm:$0xf] }
 0x2fa   : > { %v1722_v61 = vmax.f32 %v1659_v56, 0.0  ;;  %v4798_v56 = vor.u32 %v5791_v47, %v4795_v60 }
 0x2fc   : > { %v6605_v63 = vpack.c.bf16 %v1722_v61, %v1718_v55  ;;  %3396 = vmatpush.bf16.msra.mxu0 %v4762_v57  ;;  %v5306_v55 = vor.u32 %v5923_v46, %v5305_v43  ;;  %v5273_v57 = vld [vmem:[#allocation11 + $0x588] sm:$0xf]  ;;  %v4667_v43 = vld [vmem:[#allocation11 + $0xe8] sm:$0xf0] }
 0x2fd   : > { %v5274_v10 = vor.u32 %v5915_v24, %v5273_v57  ;;  %v5891_v46 = vld [vmem:[#allocation11 + $0x4e4] sm:$0xf0] }
 0x2fe   : > { %3305 = vmatmul.bf16.vlgmr.msra.gmra.mxu1 %v6605_v63  ;;  %v5883_v57 = vld [vmem:[#allocation11 + $0x4a4] sm:$0xf0] }
 0x2ff   : > { %3409 = vmatpush.bf16.msra.mxu1 %v5050_v62 }
 0x300   : > { %3397 = vmatpush.bf16.msra.mxu0 %v4730_v15  ;;  %v4858_v15 = vor.u32 %v5811_v54, %v4857_v53  ;;  %v5751_v54 = vld [vmem:[#allocation11 + $0x8c] sm:$0xf] }
 0x303   : > { %3410 = vmatpush.bf16.msra.mxu1 %v5018_v8  ;;  %v5987_v8 = vld [vmem:[#allocation11 + $0x7e4] sm:$0xf0] }
 0x304   : > { %3398 = vmatpush.bf16.msra.mxu0 %v4698_v9  ;;  %v5562_v21 = vor.u32 %v5987_v8, %v5561_v6  ;;  %v5113_v6 = vld [vmem:[#allocation11 + $0x448] sm:$0xf] }
 0x305   : > { %v1670_v16 = vpop.f32.mrf.mxu0  ;;  %v5875_v8 = vld [vmem:[#allocation11 + $0x464] sm:$0xf0] }
 0x306   : > { %v1684_v19 = vpop.f32.mrf.mxu1  ;;  %v1671_v25 = vadd.f32 %v1670_v16, %v1279_v18  ;;  %v5241_v16 = vld [vmem:[#allocation11 + $0x548] sm:$0xf] }
 0x307   : > { %3411 = vmatpush.bf16.msra.mxu1 %v4986_v17  ;;  %3347 = vmatmul.bf16.vlgmr.msrb.gmra.mxu0 %v6602_v45  ;;  %v5907_v17 = vld [vmem:[#allocation11 + $0x564] sm:$0xf0] }
 0x308   : > { %3399 = vmatpush.bf16.msra.mxu0 %v4666_v20  ;;  %v1685_v35 = vadd.f32 %v1684_v19, %v1671_v25  ;;  %v4731_v19 = vld [vmem:[#allocation11 + $0x168] sm:$0xf0]  ;;  %v5979_v25 = vld [vmem:[#allocation11 + $0x7a4] sm:$0xf0]  ;;  %v5242_v7 = vor.u32 %v5907_v17, %v5241_v16 }
 0x309   : > { %v5815_v16 = vld [vmem:[#allocation11 + $0x28c] sm:$0xf] }
 0x30a   : > { %v1719_v50 = vmax.f32 %v1685_v35, 0.0  ;;  %v5022_v35 = vor.u32 %v5847_v28, %v5019_v29  ;;  %v4891_v17 = vld [vmem:[#allocation11 + $0x2a8] sm:$0xf0]  ;;  %v5369_v28 = vld [vmem:[#allocation11 + $0x648] sm:$0xf] }
 0x30b   : > { %3412 = vmatpush.bf16.msra.mxu1 %v4954_v23  ;;  %v5529_v23 = vld [vmem:[#allocation11 + $0x788] sm:$0xf] }
 0x30c   : > { %3400 = vmatpush.bf16.msra.mxu0 %v4634_v3 }
 0x30d   : > { %v1698_v30 = vpop.f32.mrf.mxu2  ;;  %v1672_v33 = vpop.f32.mrf.mxu0 }
 0x30e   : > { %v1712_v32 = vpop.f32.mrf.mxu3  ;;  %v1673_v36 = vadd.f32 %v1672_v33, %v1279_v18  ;;  %v1686_v40 = vpop.f32.mrf.mxu1  ;;  %3361 = vmatmul.bf16.vlgmr.msrb.gmra.mxu1 %v6605_v63  ;;  %v1699_v48 = vadd.f32 %v1698_v30, %v1280_v31  ;;  %v5775_v18 = vld [vmem:[#allocation11 + $0x14c] sm:$0xf]  ;;  %v5209_v30 = vld [vmem:[#allocation11 + $0x508] sm:$0xf] }
 0x30f   : > { %3413 = vmatpush.bf16.msra.mxu1 %v4922_v34  ;;  %v4734_v26 = vor.u32 %v5775_v18, %v4731_v19  ;;  %v4699_v33 = vld [vmem:[#allocation11 + $0x128] sm:$0xf0]  ;;  %v5530_v34 = vor.u32 %v5979_v25, %v5529_v23  ;;  %v5114_v18 = vor.u32 %v5875_v8, %v5113_v6  ;;  %v5081_v19 = vld [vmem:[#allocation11 + $0x408] sm:$0xf]  ;;  %v4894_v25 = vor.u32 %v5815_v16, %v4891_v17  ;;  %v4993_v16 = vld [vmem:[#allocation11 + $0x350] sm:$0xf] }
 0x310   : > { %v1687_v44 = vadd.f32 %v1686_v40, %v1673_v36  ;;  %3401 = vmatpush.bf16.msra.mxu0 %v4602_v37  ;;  %v1713_v61 = vadd.f32 %v1712_v32, %v1699_v48  ;;  %v5767_v32 = vld [vmem:[#allocation11 + $0x10c] sm:$0xf]  ;;  %v5497_v36 = vld [vmem:[#allocation11 + $0x748] sm:$0xf]  ;;  %v5844_v17 = vld [vmem:[#allocation11 + $0x36c] sm:$0xf0] }
 0x311   : > { %v4702_v38 = vor.u32 %v5767_v32, %v4699_v33  ;;  %v5839_v40 = vld [vmem:[#allocation11 + $0x34c] sm:$0xf]  ;;  %v5498_v47 = vor.u32 %v5971_v39, %v5497_v36  ;;  %v5465_v48 = vld [vmem:[#allocation11 + $0x708] sm:$0xf] }
 0x312   : > { %v1723_v51 = vmax.f32 %v1687_v44, 0.0  ;;  %v1720_v20 = vmax.f32 %v1713_v61, 0.0  ;;  %v5177_v44 = vld [vmem:[#allocation11 + $0x4c8] sm:$0xf]  ;;  %v4990_v60 = vor.u32 %v5839_v40, %v4987_v41  ;;  %v4859_v32 = vld [vmem:[#allocation11 + $0x268] sm:$0xf0] }
 0x313   : > { %3414 = vmatpush.bf16.msra.mxu1 %v4890_v49  ;;  %v4670_v49 = vor.u32 %v5759_v42, %v4667_v43  ;;  %v5178_v53 = vor.u32 %v5891_v46, %v5177_v44  ;;  %v5955_v61 = vld [vmem:[#allocation11 + $0x6e4] sm:$0xf0]  ;;  %v5911_v36 = vld [vmem:[#allocation11 + $0x58c] sm:$0xf] }
 0x314   : > { %v6612_v58 = vpack.c.bf16 %v1723_v51, %v1719_v50  ;;  %3402 = vmatpush.bf16.msra.mxu0 %v4570_v52  ;;  %v5963_v50 = vld [vmem:[#allocation11 + $0x724] sm:$0xf0]  ;;  %v5831_v51 = vld [vmem:[#allocation11 + $0x30c] sm:$0xf] }
 0x315   : > { %v1700_v59 = vpop.f32.mrf.mxu2  ;;  %v4955_v52 = vld [vmem:[#allocation11 + $0x328] sm:$0xf0]  ;;  %v5337_v42 = vld [vmem:[#allocation11 + $0x608] sm:$0xf] }
 0x316   : > { %v1701_v62 = vadd.f32 %v1700_v59, %v1280_v31  ;;  %v1714_v2 = vpop.f32.mrf.mxu3  ;;  %3319 = vmatmul.bf16.vlgmr.msra.gmra.mxu2 %v6612_v58  ;;  %v5899_v31 = vld [vmem:[#allocation11 + $0x524] sm:$0xf0]  ;;  %v5466_v59 = vor.u32 %v5963_v50, %v5465_v48  ;;  %v4958_v24 = vor.u32 %v5831_v51, %v4955_v52  ;;  %v5275_v41 = vld [vmem:[#allocation11 + $0x5a8] sm:$0xf0]  ;;  %v5860_v50 = vld [vmem:[#allocation11 + $0x3ec] sm:$0xf0] }
 0x317   : > { %3423 = vmatpush.bf16.msra.mxu2 %v5306_v55  ;;  %3415 = vmatpush.bf16.msra.mxu1 %v4858_v15  ;;  %v5210_v37 = vor.u32 %v5899_v31, %v5209_v30  ;;  %v4635_v55 = vld [vmem:[#allocation11 + $0xa8] sm:$0xf0]  ;;  %v5939_v30 = vld [vmem:[#allocation11 + $0x664] sm:$0xf0]  ;;  %v5278_v51 = vor.u32 %v5911_v36, %v5275_v41  ;;  %v4737_v52 = vld [vmem:[#allocation11 + $0x150] sm:$0xf] }
 0x318   : > { %v1715_v9 = vadd.f32 %v1714_v2, %v1701_v62  ;;  %3451 = vmatpush.bf16.msrb.mxu0 %v4798_v56  ;;  %v5145_v56 = vld [vmem:[#allocation11 + $0x488] sm:$0xf]  ;;  %v4638_v11 = vor.u32 %v5751_v54, %v4635_v55  ;;  %v5823_v62 = vld [vmem:[#allocation11 + $0x2cc] sm:$0xf]  ;;  %v5370_v39 = vor.u32 %v5939_v30, %v5369_v28  ;;  %v5836_v28 = vld [vmem:[#allocation11 + $0x32c] sm:$0xf0] }
 0x319   : > { %3403 = vmatmul.bf16.vlgmr.msra.gmra.mxu0 %v6602_v45  ;;  %v4923_v15 = vld [vmem:[#allocation11 + $0x2e8] sm:$0xf0]  ;;  %v5146_v1 = vor.u32 %v5883_v57, %v5145_v56  ;;  %v5931_v43 = vld [vmem:[#allocation11 + $0x624] sm:$0xf0]  ;;  %v4641_v30 = vld [vmem:[#allocation11 + $0x90] sm:$0xf] }
 0x31a   : > { %v1724_v0 = vmax.f32 %v1715_v9, 0.0  ;;  %v5743_v2 = vld [vmem:[#allocation11 + $0x4c] sm:$0xf]  ;;  %v5434_v9 = vor.u32 %v5955_v61, %v5433_v27  ;;  %v5338_v54 = vor.u32 %v5931_v43, %v5337_v42  ;;  %v4609_v42 = vld [vmem:[#allocation11 + $0x50] sm:$0xf] }
 0x31b   : > { %3424 = vmatpush.bf16.msra.mxu2 %v5274_v10  ;;  %3416 = vmatpush.bf16.msra.mxu1 %v4826_v5  ;;  %v4926_v10 = vor.u32 %v5823_v62, %v4923_v15  ;;  %v4606_v13 = vor.u32 %v5743_v2, %v4603_v4  ;;  %v5867_v5 = vld [vmem:[#allocation11 + $0x424] sm:$0xf0]  ;;  %v5807_v31 = vld [vmem:[#allocation11 + $0x24c] sm:$0xf]  ;;  %v5025_v62 = vld [vmem:[#allocation11 + $0x390] sm:$0xf] }
 0x31c   : > { %v6616_v3 = vpack.c.bf16 %v1724_v0, %v1720_v20  ;;  %3452 = vmatpush.bf16.msrb.mxu0 %v4766_v12  ;;  %v5401_v12 = vld [vmem:[#allocation11 + $0x688] sm:$0xf]  ;;  %v5735_v20 = vld [vmem:[#allocation11 + $0xc] sm:$0xf]  ;;  %v5082_v33 = vor.u32 %v5867_v5, %v5081_v19  ;;  %v4862_v40 = vor.u32 %v5807_v31, %v4859_v32  ;;  %v5852_v15 = vld [vmem:[#allocation11 + $0x3ac] sm:$0xf0] }
 0x31d   : > { %v4571_v0 = vld [vmem:[#allocation11 + $0x28] sm:$0xf0]  ;;  %v5402_v23 = vor.u32 %v5947_v14, %v5401_v12  ;;  %v4705_v2 = vld [vmem:[#allocation11 + $0x110] sm:$0xf] }
 0x31e   : > { %3333 = vmatmul.bf16.vlgmr.msra.gmra.mxu3 %v6616_v3  ;;  %3417 = vmatmul.bf16.vlgmr.msra.gmra.mxu1 %v6605_v63  ;;  %v4574_v29 = vor.u32 %v5735_v20, %v4571_v0  ;;  %v5799_v44 = vld [vmem:[#allocation11 + $0x20c] sm:$0xf]  ;;  %v5772_v4 = vld [vmem:[#allocation11 + $0x12c] sm:$0xf0] }
 0x31f   : > { %3437 = vmatpush.bf16.msra.mxu3 %v5562_v21  ;;  %3465 = vmatpush.bf16.msrb.mxu1 %v5054_v22  ;;  %v4801_v21 = vld [vmem:[#allocation11 + $0x1d0] sm:$0xf]  ;;  %v4827_v46 = vld [vmem:[#allocation11 + $0x228] sm:$0xf0] }
 0x320   : > { %3425 = vmatpush.bf16.msra.mxu2 %v5242_v7  ;;  %3453 = vmatpush.bf16.msrb.mxu0 %v4734_v26  ;;  %v5796_v22 = vld [vmem:[#allocation11 + $0x1ec] sm:$0xf0]  ;;  %v5919_v7 = vld [vmem:[#allocation11 + $0x5cc] sm:$0xf]  ;;  %v4830_v55 = vor.u32 %v5799_v44, %v4827_v46 }
 0x321   : > { %v5307_v26 = vld [vmem:[#allocation11 + $0x5e8] sm:$0xf0]  ;;  %v4673_v19 = vld [vmem:[#allocation11 + $0xd0] sm:$0xf] }
 0x322   : > { %v5563_v48 = vld [vmem:[#allocation11 + $0x7e8] sm:$0xf0]  ;;  %v5764_v20 = vld [vmem:[#allocation11 + $0xec] sm:$0xf0] }
 0x323   : > { %3438 = vmatpush.bf16.msra.mxu3 %v5530_v34  ;;  %3466 = vmatpush.bf16.msrb.mxu1 %v5022_v35  ;;  %v4802_v34 = vor.u32 %v5796_v22, %v4801_v21  ;;  %v5310_v35 = vor.u32 %v5919_v7, %v5307_v26  ;;  %v5903_v56 = vld [vmem:[#allocation11 + $0x54c] sm:$0xf]  ;;  %v4994_v22 = vor.u32 %v5844_v17, %v4993_v16  ;;  %v4961_v26 = vld [vmem:[#allocation11 + $0x310] sm:$0xf] }
 0x324   : > { %3426 = vmatpush.bf16.msra.mxu2 %v5210_v37  ;;  %3454 = vmatpush.bf16.msrb.mxu0 %v4702_v38  ;;  %v4769_v37 = vld [vmem:[#allocation11 + $0x190] sm:$0xf]  ;;  %v5243_v57 = vld [vmem:[#allocation11 + $0x568] sm:$0xf0] }
 0x325   : > { %v5788_v38 = vld [vmem:[#allocation11 + $0x1ac] sm:$0xf0]  ;;  %v5975_v27 = vld [vmem:[#allocation11 + $0x78c] sm:$0xf] }
 0x326   : > { %3375 = vmatmul.bf16.vlgmr.msrb.gmra.mxu2 %v6612_v58  ;;  %v5531_v61 = vld [vmem:[#allocation11 + $0x7a8] sm:$0xf0]  ;;  %v5756_v31 = vld [vmem:[#allocation11 + $0xac] sm:$0xf0] }
 0x327   : > { %3439 = vmatpush.bf16.msra.mxu3 %v5498_v47  ;;  %3467 = vmatpush.bf16.msrb.mxu1 %v4990_v60  ;;  %v5983_v47 = vld [vmem:[#allocation11 + $0x7cc] sm:$0xf]  ;;  %v4770_v60 = vor.u32 %v5788_v38, %v4769_v37  ;;  %v4642_v37 = vor.u32 %v5756_v31, %v4641_v30  ;;  %v5748_v43 = vld [vmem:[#allocation11 + $0x6c] sm:$0xf0] }
 0x328   : > { %3455 = vmatpush.bf16.msrb.mxu0 %v4670_v49  ;;  %3427 = vmatpush.bf16.msra.mxu2 %v5178_v53  ;;  %v5057_v49 = vld [vmem:[#allocation11 + $0x3d0] sm:$0xf]  ;;  %v5895_v6 = vld [vmem:[#allocation11 + $0x50c] sm:$0xf] }
 0x329   : > { %v5780_v53 = vld [vmem:[#allocation11 + $0x16c] sm:$0xf0]  ;;  %v5211_v8 = vld [vmem:[#allocation11 + $0x528] sm:$0xf0] }
 0x32a   : > { %v5967_v12 = vld [vmem:[#allocation11 + $0x74c] sm:$0xf] }
 0x32b   : > { %3440 = vmatpush.bf16.msra.mxu3 %v5466_v59  ;;  %3468 = vmatpush.bf16.msrb.mxu1 %v4958_v24  ;;  %v5566_v59 = vor.u32 %v5983_v47, %v5563_v48  ;;  %v5058_v24 = vor.u32 %v5860_v50, %v5057_v49  ;;  %v5499_v14 = vld [vmem:[#allocation11 + $0x768] sm:$0xf0]  ;;  %v4610_v49 = vor.u32 %v5748_v43, %v4609_v42  ;;  %v4707_v42 = vld [vmem:[#allocation11 + $0x130] sm:$0xf0] }
 0x32c   : > { %3456 = vmatpush.bf16.msrb.mxu0 %v4638_v11  ;;  %3428 = vmatpush.bf16.msra.mxu2 %v5146_v1  ;;  %v4738_v11 = vor.u32 %v5780_v53, %v4737_v52  ;;  %v5246_v1 = vor.u32 %v5903_v56, %v5243_v57  ;;  %v5887_v0 = vld [vmem:[#allocation11 + $0x4cc] sm:$0xf]  ;;  %v5502_v21 = vor.u32 %v5967_v12, %v5499_v14  ;;  %v5820_v52 = vld [vmem:[#allocation11 + $0x2ac] sm:$0xf0]  ;;  %v4771_v14 = vld [vmem:[#allocation11 + $0x1b0] sm:$0xf0] }
 0x32d   : > { %v5179_v5 = vld [vmem:[#allocation11 + $0x4e8] sm:$0xf0]  ;;  %v5740_v56 = vld [vmem:[#allocation11 + $0x2c] sm:$0xf0] }
 0x32e   : > { %3389 = vmatmul.bf16.vlgmr.msrb.gmra.mxu3 %v6616_v3  ;;  %v5467_v7 = vld [vmem:[#allocation11 + $0x728] sm:$0xf0]  ;;  %v5281_v12 = vld [vmem:[#allocation11 + $0x590] sm:$0xf] }
 0x32f   : > { %3441 = vmatpush.bf16.msra.mxu3 %v5434_v9  ;;  %3469 = vmatpush.bf16.msrb.mxu1 %v4926_v10  ;;  %v5534_v9 = vor.u32 %v5975_v27, %v5531_v61  ;;  %v5026_v10 = vor.u32 %v5852_v15, %v5025_v62  ;;  %v5879_v32 = vld [vmem:[#allocation11 + $0x48c] sm:$0xf]  ;;  %v5313_v61 = vld [vmem:[#allocation11 + $0x5d0] sm:$0xf] }
 0x330   : > { %3457 = vmatpush.bf16.msrb.mxu0 %v4606_v13  ;;  %3429 = vmatpush.bf16.msra.mxu2 %v5114_v18  ;;  %v4706_v13 = vor.u32 %v5772_v4, %v4705_v2  ;;  %v5214_v18 = vor.u32 %v5895_v6, %v5211_v8  ;;  %v5951_v36 = vld [vmem:[#allocation11 + $0x6cc] sm:$0xf]  ;;  %v5924_v62 = vld [vmem:[#allocation11 + $0x5ec] sm:$0xf0] }
 0x331   : > { %v5435_v38 = vld [vmem:[#allocation11 + $0x6e8] sm:$0xf0]  ;;  %v4865_v4 = vld [vmem:[#allocation11 + $0x250] sm:$0xf] }
 0x332   : > { %v5871_v44 = vld [vmem:[#allocation11 + $0x44c] sm:$0xf]  ;;  %v5438_v47 = vor.u32 %v5951_v36, %v5435_v38  ;;  %v5812_v6 = vld [vmem:[#allocation11 + $0x26c] sm:$0xf0] }
 0x333   : > { %3442 = vmatpush.bf16.msra.mxu3 %v5402_v23  ;;  %3470 = vmatpush.bf16.msrb.mxu1 %v4894_v25  ;;  %v5959_v23 = vld [vmem:[#allocation11 + $0x70c] sm:$0xf]  ;;  %v4674_v25 = vor.u32 %v5764_v20, %v4673_v19  ;;  %v4866_v17 = vor.u32 %v5812_v6, %v4865_v4  ;;  %v5537_v36 = vld [vmem:[#allocation11 + $0x790] sm:$0xf] }
 0x334   : > { %3458 = vmatpush.bf16.msrb.mxu0 %v4574_v29  ;;  %3430 = vmatpush.bf16.msra.mxu2 %v5082_v33  ;;  %v5182_v29 = vor.u32 %v5887_v0, %v5179_v5  ;;  %v5147_v33 = vld [vmem:[#allocation11 + $0x4a8] sm:$0xf0]  ;;  %v4833_v0 = vld [vmem:[#allocation11 + $0x210] sm:$0xf] }
 0x335   : > { %v5150_v41 = vor.u32 %v5879_v32, %v5147_v33  ;;  %v5115_v46 = vld [vmem:[#allocation11 + $0x468] sm:$0xf0]  ;;  %v5804_v5 = vld [vmem:[#allocation11 + $0x22c] sm:$0xf0] }
 0x336   : > { %v5943_v48 = vld [vmem:[#allocation11 + $0x68c] sm:$0xf]  ;;  %v5118_v53 = vor.u32 %v5871_v44, %v5115_v46  ;;  %v4834_v31 = vor.u32 %v5804_v5, %v4833_v0  ;;  %v5980_v38 = vld [vmem:[#allocation11 + $0x7ac] sm:$0xf0] }
 0x337   : > { %3443 = vmatpush.bf16.msra.mxu3 %v5370_v39  ;;  %3471 = vmatpush.bf16.msrb.mxu1 %v4862_v40  ;;  %v4929_v39 = vld [vmem:[#allocation11 + $0x2d0] sm:$0xf]  ;;  %v5403_v50 = vld [vmem:[#allocation11 + $0x6a8] sm:$0xf0]  ;;  %v5538_v44 = vor.u32 %v5980_v38, %v5537_v36  ;;  %v5920_v38 = vld [vmem:[#allocation11 + $0x5d4] sm:$0xf] }
 0x338   : > { %3507 = vmatpush.bf16.msra.mxu0 %v4802_v34  ;;  %3479 = vmatpush.bf16.msrb.mxu2 %v5310_v35  ;;  %v5470_v34 = vor.u32 %v5959_v23, %v5467_v7  ;;  %v4962_v35 = vor.u32 %v5836_v28, %v4961_v26  ;;  %v5828_v40 = vld [vmem:[#allocation11 + $0x2ec] sm:$0xf0]  ;;  %v5083_v57 = vld [vmem:[#allocation11 + $0x428] sm:$0xf0]  ;;  %v5406_v27 = vor.u32 %v5943_v48, %v5403_v50  ;;  %v5059_v7 = vld [vmem:[#allocation11 + $0x3f0] sm:$0xf0] }
 0x339   : > { %3459 = vmatmul.bf16.vlgmr.msrb.gmra.mxu0 %v6602_v45  ;;  %3431 = vmatmul.bf16.vlgmr.msra.gmra.mxu2 %v6612_v58  ;;  %v5935_v15 = vld [vmem:[#allocation11 + $0x64c] sm:$0xf]  ;;  %v5988_v23 = vld [vmem:[#allocation11 + $0x7ec] sm:$0xf0]  ;;  %v5776_v28 = vld [vmem:[#allocation11 + $0x154] sm:$0xf] }
 0x33a   : > { %v5371_v2 = vld [vmem:[#allocation11 + $0x668] sm:$0xf0]  ;;  %v5505_v48 = vld [vmem:[#allocation11 + $0x750] sm:$0xf] }
 0x33b   : > { %3444 = vmatpush.bf16.msra.mxu3 %v5338_v54  ;;  %3472 = vmatpush.bf16.msrb.mxu1 %v4830_v55  ;;  %v5863_v54 = vld [vmem:[#allocation11 + $0x40c] sm:$0xf]  ;;  %v4577_v55 = vld [vmem:[#allocation11 + $0x10] sm:$0xf]  ;;  %v5374_v16 = vor.u32 %v5935_v15, %v5371_v2  ;;  %v4963_v15 = vld [vmem:[#allocation11 + $0x330] sm:$0xf0] }
 0x33c   : > { %3508 = vmatpush.bf16.msra.mxu0 %v4770_v60  ;;  %3480 = vmatpush.bf16.msrb.mxu2 %v5278_v51  ;;  %v4930_v60 = vor.u32 %v5828_v40, %v4929_v39  ;;  %v4897_v51 = vld [vmem:[#allocation11 + $0x290] sm:$0xf]  ;;  %v5086_v8 = vor.u32 %v5863_v54, %v5083_v57  ;;  %v5927_v19 = vld [vmem:[#allocation11 + $0x60c] sm:$0xf]  ;;  %v5848_v39 = vld [vmem:[#allocation11 + $0x394] sm:$0xf] }
 0x33d   : > { %v5339_v20 = vld [vmem:[#allocation11 + $0x628] sm:$0xf0]  ;;  %v5027_v40 = vld [vmem:[#allocation11 + $0x3b0] sm:$0xf0]  ;;  %v5972_v50 = vld [vmem:[#allocation11 + $0x76c] sm:$0xf0] }
 0x33e   : > { %3473 = vmatmul.bf16.vlgmr.msrb.gmra.mxu1 %v6605_v63  ;;  %3445 = vmatmul.bf16.vlgmr.msra.gmra.mxu3 %v6616_v3  ;;  %v5342_v30 = vor.u32 %v5927_v19, %v5339_v20  ;;  %v5030_v46 = vor.u32 %v5848_v39, %v5027_v40  ;;  %v4675_v54 = vld [vmem:[#allocation11 + $0xf0] sm:$0xf0]  ;;  %v5089_v36 = vld [vmem:[#allocation11 + $0x410] sm:$0xf] }
 0x33f   : > { %3493 = vmatpush.bf16.msrb.mxu3 %v5566_v59  ;;  %3521 = vmatpush.bf16.msra.mxu1 %v5058_v24  ;;  %v5792_v59 = vld [vmem:[#allocation11 + $0x1d4] sm:$0xf] }
 0x340   : > { %3509 = vmatpush.bf16.msra.mxu0 %v4738_v11  ;;  %3481 = vmatpush.bf16.msrb.mxu2 %v5246_v1  ;;  %v4803_v24 = vld [vmem:[#allocation11 + $0x1f0] sm:$0xf0]  ;;  %v4898_v11 = vor.u32 %v5820_v52, %v4897_v51  ;;  %v4578_v1 = vor.u32 %v5740_v56, %v4577_v55  ;;  %v5506_v56 = vor.u32 %v5972_v50, %v5505_v48  ;;  %v5789_v48 = vld [vmem:[#allocation11 + $0x1b4] sm:$0xf0] }
 0x341   : > { %v5840_v51 = vld [vmem:[#allocation11 + $0x354] sm:$0xf] }
 0x342   : > { %v4995_v52 = vld [vmem:[#allocation11 + $0x370] sm:$0xf0] }
 0x343   : > { %3494 = vmatpush.bf16.msrb.mxu3 %v5534_v9  ;;  %3522 = vmatpush.bf16.msra.mxu1 %v5026_v10  ;;  %v4806_v9 = vor.u32 %v5792_v59, %v4803_v24  ;;  %v5314_v10 = vor.u32 %v5924_v62, %v5313_v61  ;;  %v4998_v57 = vor.u32 %v5840_v51, %v4995_v52  ;;  %v5185_v59 = vld [vmem:[#allocation11 + $0x4d0] sm:$0xf]  ;;  %v5832_v62 = vld [vmem:[#allocation11 + $0x314] sm:$0xf] }
 0x344   : > { %3510 = vmatpush.bf16.msra.mxu0 %v4706_v13  ;;  %3482 = vmatpush.bf16.msrb.mxu2 %v5214_v18  ;;  %v5784_v13 = vld [vmem:[#allocation11 + $0x194] sm:$0xf]  ;;  %v5916_v18 = vld [vmem:[#allocation11 + $0x5ac] sm:$0xf0] }
 0x345   : > { %v5282_v26 = vor.u32 %v5916_v18, %v5281_v12  ;;  %v5892_v24 = vld [vmem:[#allocation11 + $0x4ec] sm:$0xf0]  ;;  %v4643_v2 = vld [vmem:[#allocation11 + $0xb0] sm:$0xf0] }
 0x346   : > { %v5964_v61 = vld [vmem:[#allocation11 + $0x72c] sm:$0xf0]  ;;  %v5186_v4 = vor.u32 %v5892_v24, %v5185_v59  ;;  %v5744_v18 = vld [vmem:[#allocation11 + $0x54] sm:$0xf] }
 0x347   : > { %3495 = vmatpush.bf16.msrb.mxu3 %v5502_v21  ;;  %3523 = vmatpush.bf16.msra.mxu1 %v4994_v22  ;;  %v5569_v21 = vld [vmem:[#allocation11 + $0x7d0] sm:$0xf]  ;;  %v4774_v22 = vor.u32 %v5784_v13, %v4771_v14  ;;  %v4611_v19 = vld [vmem:[#allocation11 + $0x70] sm:$0xf0] }
 0x348   : > { %3511 = vmatpush.bf16.msra.mxu0 %v4674_v25  ;;  %3483 = vmatpush.bf16.msrb.mxu2 %v5182_v29  ;;  %v5856_v25 = vld [vmem:[#allocation11 + $0x3d4] sm:$0xf]  ;;  %v5570_v32 = vor.u32 %v5988_v23, %v5569_v21  ;;  %v5441_v12 = vld [vmem:[#allocation11 + $0x6d0] sm:$0xf] }
 0x349   : > { %v4739_v29 = vld [vmem:[#allocation11 + $0x170] sm:$0xf0]  ;;  %v5062_v33 = vor.u32 %v5856_v25, %v5059_v7  ;;  %v5956_v14 = vld [vmem:[#allocation11 + $0x6ec] sm:$0xf0]  ;;  %v4614_v25 = vor.u32 %v5744_v18, %v4611_v19  ;;  %v5853_v18 = vld [vmem:[#allocation11 + $0x3b4] sm:$0xf0] }
 0x34a   : > { %v5442_v0 = vor.u32 %v5956_v14, %v5441_v12  ;;  %v5121_v21 = vld [vmem:[#allocation11 + $0x450] sm:$0xf]  ;;  %v5315_v40 = vld [vmem:[#allocation11 + $0x5f0] sm:$0xf0]  ;;  %v4713_v19 = vld [vmem:[#allocation11 + $0x118] sm:$0xf] }
 0x34b   : > { %3496 = vmatpush.bf16.msrb.mxu3 %v5470_v34  ;;  %3524 = vmatpush.bf16.msra.mxu1 %v4962_v35  ;;  %v5249_v34 = vld [vmem:[#allocation11 + $0x550] sm:$0xf]  ;;  %v5912_v51 = vld [vmem:[#allocation11 + $0x594] sm:$0xf] }
 0x34c   : > { %3512 = vmatpush.bf16.msra.mxu0 %v4642_v37  ;;  %3484 = vmatpush.bf16.msrb.mxu2 %v5150_v41  ;;  %v5908_v35 = vld [vmem:[#allocation11 + $0x56c] sm:$0xf0]  ;;  %v4742_v37 = vor.u32 %v5776_v28, %v4739_v29  ;;  %v5768_v41 = vld [vmem:[#allocation11 + $0x114] sm:$0xf] }
 0x34d   : > { %v5250_v43 = vor.u32 %v5908_v35, %v5249_v34  ;;  %v5409_v23 = vld [vmem:[#allocation11 + $0x690] sm:$0xf]  ;;  %v4899_v28 = vld [vmem:[#allocation11 + $0x2b0] sm:$0xf0] }
 0x34e   : > { %v5948_v7 = vld [vmem:[#allocation11 + $0x6ac] sm:$0xf0]  ;;  %v5736_v29 = vld [vmem:[#allocation11 + $0x14] sm:$0xf] }
 0x34f   : > { %3497 = vmatpush.bf16.msrb.mxu3 %v5438_v47  ;;  %3525 = vmatpush.bf16.msra.mxu1 %v4930_v60  ;;  %v5217_v47 = vld [vmem:[#allocation11 + $0x510] sm:$0xf]  ;;  %v5410_v34 = vor.u32 %v5948_v7, %v5409_v23  ;;  %v5283_v52 = vld [vmem:[#allocation11 + $0x5b0] sm:$0xf0] }
 0x350   : > { %3513 = vmatpush.bf16.msra.mxu0 %v4610_v49  ;;  %3485 = vmatpush.bf16.msrb.mxu2 %v5118_v53  ;;  %v5900_v60 = vld [vmem:[#allocation11 + $0x52c] sm:$0xf0]  ;;  %v4710_v49 = vor.u32 %v5768_v41, %v4707_v42  ;;  %v5760_v53 = vld [vmem:[#allocation11 + $0xd4] sm:$0xf] }
 0x351   : > { %v5218_v55 = vor.u32 %v5900_v60, %v5217_v47  ;;  %v5377_v41 = vld [vmem:[#allocation11 + $0x650] sm:$0xf]  ;;  %v4777_v60 = vld [vmem:[#allocation11 + $0x198] sm:$0xf]  ;;  %v5984_v24 = vld [vmem:[#allocation11 + $0x7d4] sm:$0xf] }
 0x352   : > { %v5940_v42 = vld [vmem:[#allocation11 + $0x66c] sm:$0xf0]  ;;  %v4778_v59 = vor.u32 %v5789_v48, %v4777_v60  ;;  %v5219_v23 = vld [vmem:[#allocation11 + $0x530] sm:$0xf0] }
 0x353   : > { %3498 = vmatpush.bf16.msrb.mxu3 %v5406_v27  ;;  %3526 = vmatpush.bf16.msra.mxu1 %v4898_v11  ;;  %v5473_v27 = vld [vmem:[#allocation11 + $0x710] sm:$0xf]  ;;  %v4678_v11 = vor.u32 %v5760_v53, %v4675_v54  ;;  %v5378_v50 = vor.u32 %v5940_v42, %v5377_v41  ;;  %v5960_v41 = vld [vmem:[#allocation11 + $0x714] sm:$0xf] }
 0x354   : > { %3514 = vmatpush.bf16.msra.mxu0 %v4578_v1  ;;  %3486 = vmatpush.bf16.msrb.mxu2 %v5086_v8  ;;  %v5752_v1 = vld [vmem:[#allocation11 + $0x94] sm:$0xf]  ;;  %v5474_v6 = vor.u32 %v5964_v61, %v5473_v27  ;;  %v4966_v8 = vor.u32 %v5832_v62, %v4963_v15  ;;  %v5345_v53 = vld [vmem:[#allocation11 + $0x610] sm:$0xf]  ;;  %v5861_v61 = vld [vmem:[#allocation11 + $0x3f4] sm:$0xf0] }
 0x355   : > { %v4646_v13 = vor.u32 %v5752_v1, %v4643_v2  ;;  %v5571_v27 = vld [vmem:[#allocation11 + $0x7f0] sm:$0xf0]  ;;  %v4745_v62 = vld [vmem:[#allocation11 + $0x158] sm:$0xf]  ;;  %v5286_v1 = vor.u32 %v5912_v51, %v5283_v52 }
 0x356   : > { %v5781_v15 = vld [vmem:[#allocation11 + $0x174] sm:$0xf0]  ;;  %v5475_v42 = vld [vmem:[#allocation11 + $0x730] sm:$0xf0] }
 0x357   : > { %3499 = vmatpush.bf16.msrb.mxu3 %v5374_v16  ;;  %3527 = vmatpush.bf16.msra.mxu1 %v4866_v17  ;;  %v5824_v16 = vld [vmem:[#allocation11 + $0x2d4] sm:$0xf] }
 0x358   : > { %3563 = vmatpush.bf16.msrb.mxu0 %v4806_v9  ;;  %3535 = vmatpush.bf16.msra.mxu2 %v5314_v10  ;;  %v5153_v9 = vld [vmem:[#allocation11 + $0x490] sm:$0xf]  ;;  %v4931_v17 = vld [vmem:[#allocation11 + $0x2f0] sm:$0xf0] }
 0x359   : > { %3487 = vmatmul.bf16.vlgmr.msrb.gmra.mxu2 %v6612_v58  ;;  %3515 = vmatmul.bf16.vlgmr.msra.gmra.mxu0 %v6602_v45  ;;  %v5884_v10 = vld [vmem:[#allocation11 + $0x4ac] sm:$0xf0]  ;;  %v4934_v5 = vor.u32 %v5824_v16, %v4931_v17  ;;  %v5539_v16 = vld [vmem:[#allocation11 + $0x7b0] sm:$0xf0]  ;;  %v5033_v17 = vld [vmem:[#allocation11 + $0x398] sm:$0xf] }
 0x35a   : > { %v5154_v20 = vor.u32 %v5884_v10, %v5153_v9  ;;  %v5251_v9 = vld [vmem:[#allocation11 + $0x570] sm:$0xf0]  ;;  %v5034_v7 = vor.u32 %v5853_v18, %v5033_v17  ;;  %v5793_v18 = vld [vmem:[#allocation11 + $0x1dc] sm:$0xf] }
 0x35b   : > { %3500 = vmatpush.bf16.msrb.mxu3 %v5342_v30  ;;  %3528 = vmatpush.bf16.msra.mxu1 %v4834_v31  ;;  %v4579_v30 = vld [vmem:[#allocation11 + $0x30] sm:$0xf0] }
 0x35c   : > { %3564 = vmatpush.bf16.msrb.mxu0 %v4774_v22  ;;  %3536 = vmatpush.bf16.msra.mxu2 %v5282_v26  ;;  %v5876_v22 = vld [vmem:[#allocation11 + $0x46c] sm:$0xf0]  ;;  %v5816_v26 = vld [vmem:[#allocation11 + $0x294] sm:$0xf]  ;;  %v4582_v39 = vor.u32 %v5736_v29, %v4579_v30  ;;  %v5001_v30 = vld [vmem:[#allocation11 + $0x358] sm:$0xf] }
 0x35d   : > { %v5122_v31 = vor.u32 %v5876_v22, %v5121_v21  ;;  %v4902_v35 = vor.u32 %v5816_v26, %v4899_v28  ;;  %v5976_v10 = vld [vmem:[#allocation11 + $0x794] sm:$0xf] }
 0x35e   : > { %3501 = vmatmul.bf16.vlgmr.msrb.gmra.mxu3 %v6616_v3  ;;  %3529 = vmatmul.bf16.vlgmr.msra.gmra.mxu1 %v6605_v63  ;;  %v6635_v14 = vld [vmem:[%s6749_s9] sm:$0xff]  ;;  %v5542_v21 = vor.u32 %v5976_v10, %v5539_v16 }
 0x35f   : > { %3549 = vmatpush.bf16.msra.mxu3 %v5570_v32  ;;  %3577 = vmatpush.bf16.msrb.mxu1 %v5062_v33  ;;  %v4809_v32 = vld [vmem:[#allocation11 + $0x1d8] sm:$0xf]  ;;  %v5896_v22 = vld [vmem:[#allocation11 + $0x514] sm:$0xf] }
 0x360   : > { %3565 = vmatpush.bf16.msrb.mxu0 %v4742_v37  ;;  %3537 = vmatpush.bf16.msra.mxu2 %v5250_v43  ;;  %v5797_v33 = vld [vmem:[#allocation11 + $0x1f4] sm:$0xf0]  ;;  %v5868_v37 = vld [vmem:[#allocation11 + $0x42c] sm:$0xf0]  ;;  %v5968_v28 = vld [vmem:[#allocation11 + $0x754] sm:$0xf] }
 0x361   : > { %v4810_v43 = vor.u32 %v5797_v33, %v4809_v32  ;;  %v5090_v47 = vor.u32 %v5868_v37, %v5089_v36  ;;  %v5507_v29 = vld [vmem:[#allocation11 + $0x770] sm:$0xf0]  ;;  %v4681_v32 = vld [vmem:[#allocation11 + $0xd8] sm:$0xf] }
 0x362   : > { %v5765_v33 = vld [vmem:[#allocation11 + $0xf4] sm:$0xf0]  ;;  %v5888_v36 = vld [vmem:[#allocation11 + $0x4d4] sm:$0xf] }
 0x363   : > { %3550 = vmatpush.bf16.msra.mxu3 %v5538_v44  ;;  %3578 = vmatpush.bf16.msrb.mxu1 %v5030_v46  ;;  %v5808_v44 = vld [vmem:[#allocation11 + $0x254] sm:$0xf]  ;;  %v5821_v10 = vld [vmem:[#allocation11 + $0x2b4] sm:$0xf0] }
 0x364   : > { %3566 = vmatpush.bf16.msrb.mxu0 %v4710_v49  ;;  %3538 = vmatpush.bf16.msra.mxu2 %v5218_v55  ;;  %v4867_v46 = vld [vmem:[#allocation11 + $0x270] sm:$0xf0]  ;;  %v5318_v49 = vor.u32 %v5920_v38, %v5315_v40  ;;  %v5932_v55 = vld [vmem:[#allocation11 + $0x62c] sm:$0xf0]  ;;  %v4682_v40 = vor.u32 %v5765_v33, %v4681_v32  ;;  %v4873_v32 = vld [vmem:[#allocation11 + $0x258] sm:$0xf] }
 0x365   : > { %v4870_v54 = vor.u32 %v5808_v44, %v4867_v46  ;;  %v5346_v2 = vor.u32 %v5932_v55, %v5345_v53  ;;  %v5187_v37 = vld [vmem:[#allocation11 + $0x4f0] sm:$0xf0]  ;;  %v5837_v44 = vld [vmem:[#allocation11 + $0x334] sm:$0xf0] }
 0x366   : > { %v4649_v46 = vld [vmem:[#allocation11 + $0x98] sm:$0xf]  ;;  %v5190_v60 = vor.u32 %v5888_v36, %v5187_v37  ;;  %v5155_v51 = vld [vmem:[#allocation11 + $0x4b0] sm:$0xf0]  ;;  %v5785_v36 = vld [vmem:[#allocation11 + $0x19c] sm:$0xf] }
 0x367   : > { %3551 = vmatpush.bf16.msra.mxu3 %v5506_v56  ;;  %3579 = vmatpush.bf16.msrb.mxu1 %v4998_v57  ;;  %v5800_v56 = vld [vmem:[#allocation11 + $0x214] sm:$0xf]  ;;  %v5813_v33 = vld [vmem:[#allocation11 + $0x274] sm:$0xf0]  ;;  %v4779_v37 = vld [vmem:[#allocation11 + $0x1b8] sm:$0xf0] }
 0x368   : > { %3567 = vmatpush.bf16.msrb.mxu0 %v4678_v11  ;;  %3539 = vmatpush.bf16.msra.mxu2 %v5186_v4  ;;  %v4835_v57 = vld [vmem:[#allocation11 + $0x230] sm:$0xf0]  ;;  %v5065_v11 = vld [vmem:[#allocation11 + $0x3d8] sm:$0xf] }
 0x369   : > { %v4838_v4 = vor.u32 %v5800_v56, %v4835_v57  ;;  %v5066_v12 = vor.u32 %v5861_v61, %v5065_v11  ;;  %v5952_v56 = vld [vmem:[#allocation11 + $0x6d4] sm:$0xf]  ;;  %v5749_v11 = vld [vmem:[#allocation11 + $0x74] sm:$0xf0] }
 0x36a   : > { %v5443_v57 = vld [vmem:[#allocation11 + $0x6f0] sm:$0xf0] }
 0x36b   : > { %3552 = vmatpush.bf16.msra.mxu3 %v5474_v6  ;;  %3580 = vmatpush.bf16.msrb.mxu1 %v4966_v8  ;;  %v5574_v6 = vor.u32 %v5984_v24, %v5571_v27  ;;  %v5904_v8 = vld [vmem:[#allocation11 + $0x554] sm:$0xf]  ;;  %v5829_v24 = vld [vmem:[#allocation11 + $0x2f4] sm:$0xf0] }
 0x36c   : > { %3568 = vmatpush.bf16.msrb.mxu0 %v4646_v13  ;;  %3540 = vmatpush.bf16.msra.mxu2 %v5154_v20  ;;  %v4746_v13 = vor.u32 %v5781_v15, %v4745_v62  ;;  %v5773_v20 = vld [vmem:[#allocation11 + $0x134] sm:$0xf0]  ;;  %v5446_v62 = vor.u32 %v5952_v56, %v5443_v57  ;;  %v5872_v15 = vld [vmem:[#allocation11 + $0x454] sm:$0xf] }
 0x36d   : > { %v4714_v26 = vor.u32 %v5773_v20, %v4713_v19  ;;  %v4617_v27 = vld [vmem:[#allocation11 + $0x58] sm:$0xf]  ;;  %v4811_v19 = vld [vmem:[#allocation11 + $0x1f8] sm:$0xf0] }
 0x36f   : > { %3553 = vmatpush.bf16.msra.mxu3 %v5442_v0  ;;  %3581 = vmatpush.bf16.msrb.mxu1 %v4934_v5  ;;  %v5254_v0 = vor.u32 %v5904_v8, %v5251_v9  ;;  %v1987_v5 = vperm.slane %v6635_v14, 0  ;;  %v5411_v8 = vld [vmem:[#allocation11 + $0x6b0] sm:$0xf0]  ;;  %v4905_v9 = vld [vmem:[#allocation11 + $0x298] sm:$0xf] }
 0x370   : > { %3569 = vmatpush.bf16.msrb.mxu0 %v4614_v25  ;;  %3541 = vmatpush.bf16.msra.mxu2 %v5122_v31  ;;  %v5845_v31 = vld [vmem:[#allocation11 + $0x374] sm:$0xf0] }
 0x373   : > { %3554 = vmatpush.bf16.msra.mxu3 %v5410_v34  ;;  %3582 = vmatpush.bf16.msrb.mxu1 %v4902_v35  ;;  %v5222_v34 = vor.u32 %v5896_v22, %v5219_v23  ;;  %v5510_v35 = vor.u32 %v5968_v28, %v5507_v29  ;;  %v5091_v22 = vld [vmem:[#allocation11 + $0x430] sm:$0xf0]  ;;  %v5321_v23 = vld [vmem:[#allocation11 + $0x5d8] sm:$0xf] }
 0x374   : > { %3570 = vmatpush.bf16.msrb.mxu0 %v4582_v39  ;;  %3542 = vmatpush.bf16.msra.mxu2 %v5090_v47  ;;  %v3292_v25 = vpop.f32.mrf.mxu0  ;;  %v5002_v39 = vor.u32 %v5845_v31, %v5001_v30  ;;  %v5757_v47 = vld [vmem:[#allocation11 + $0xb4] sm:$0xf0]  ;;  %v5936_v30 = vld [vmem:[#allocation11 + $0x654] sm:$0xf]  ;;  %v4814_v31 = vor.u32 %v5793_v18, %v4811_v19 }
 0x375   : > { %v3293_v38 = vadd.f32 %v3292_v25, %v1987_v5  ;;  %v4650_v55 = vor.u32 %v5757_v47, %v4649_v46  ;;  %v5925_v29 = vld [vmem:[#allocation11 + $0x5f4] sm:$0xf0] }
 0x376   : > { %v4841_v46 = vld [vmem:[#allocation11 + $0x218] sm:$0xf] }
 0x377   : > { %3555 = vmatpush.bf16.msra.mxu3 %v5378_v50  ;;  %3583 = vmatpush.bf16.msrb.mxu1 %v4870_v54  ;;  %v5880_v50 = vld [vmem:[#allocation11 + $0x494] sm:$0xf]  ;;  %v5805_v47 = vld [vmem:[#allocation11 + $0x234] sm:$0xf0] }
 0x378   : > { %3619 = vmatpush.bf16.msra.mxu0 %v4810_v43  ;;  %3591 = vmatpush.bf16.msrb.mxu2 %v5318_v49  ;;  %v4969_v43 = vld [vmem:[#allocation11 + $0x318] sm:$0xf]  ;;  %v5478_v49 = vor.u32 %v5960_v41, %v5475_v42  ;;  %v5158_v61 = vor.u32 %v5880_v50, %v5155_v51  ;;  %v5928_v42 = vld [vmem:[#allocation11 + $0x614] sm:$0xf]  ;;  %v5857_v50 = vld [vmem:[#allocation11 + $0x3dc] sm:$0xf] }
 0x379   : > { %3571 = vmatmul.bf16.vlgmr.msrb.gmra.mxu0 %v6602_v45  ;;  %3543 = vmatmul.bf16.vlgmr.msra.gmra.mxu2 %v6612_v58  ;;  %v4970_v54 = vor.u32 %v5837_v44, %v4969_v43  ;;  %v5917_v41 = vld [vmem:[#allocation11 + $0x5b4] sm:$0xf0]  ;;  %v4874_v43 = vor.u32 %v5813_v33, %v4873_v32  ;;  %v5347_v44 = vld [vmem:[#allocation11 + $0x630] sm:$0xf0] }
 0x37a   : > { %v5901_v18 = vld [vmem:[#allocation11 + $0x534] sm:$0xf0] }
 0x37b   : > { %3556 = vmatpush.bf16.msra.mxu3 %v5346_v2  ;;  %3584 = vmatpush.bf16.msrb.mxu1 %v4838_v4  ;;  %v3306_v48 = vpop.f32.mrf.mxu1  ;;  %v4618_v4 = vor.u32 %v5749_v11, %v4617_v27  ;;  %v4842_v11 = vor.u32 %v5805_v47, %v4841_v46  ;;  %v5193_v33 = vld [vmem:[#allocation11 + $0x4d8] sm:$0xf] }
 0x37c   : > { %3620 = vmatpush.bf16.msra.mxu0 %v4778_v59  ;;  %3592 = vmatpush.bf16.msrb.mxu2 %v5286_v1  ;;  %v6642_v52 = vadd.f32 %v3306_v48, %v3293_v38  ;;  %v3294_v53 = vpop.f32.mrf.mxu0  ;;  %v4937_v59 = vld [vmem:[#allocation11 + $0x2d8] sm:$0xf]  ;;  %v5123_v1 = vld [vmem:[#allocation11 + $0x470] sm:$0xf0]  ;;  %v5322_v38 = vor.u32 %v5925_v29, %v5321_v23 }
 0x37d   : > { %v4938_v2 = vor.u32 %v5829_v24, %v4937_v59  ;;  %v3295_v16 = vadd.f32 %v3294_v53, %v1987_v5  ;;  %v5126_v17 = vor.u32 %v5872_v15, %v5123_v1  ;;  %v5379_v5 = vld [vmem:[#allocation11 + $0x670] sm:$0xf0]  ;;  %v5577_v48 = vld [vmem:[#allocation11 + $0x7d8] sm:$0xf]  ;;  %v5067_v53 = vld [vmem:[#allocation11 + $0x3f8] sm:$0xf0]  ;;  %v5350_v59 = vor.u32 %v5928_v42, %v5347_v44 }
 0x37e   : > { %3557 = vmatmul.bf16.vlgmr.msra.gmra.mxu3 %v6616_v3  ;;  %3585 = vmatmul.bf16.vlgmr.msrb.gmra.mxu1 %v6605_v63  ;;  %v5909_v15 = vld [vmem:[#allocation11 + $0x574] sm:$0xf0]  ;;  %v5070_v1 = vor.u32 %v5857_v50, %v5067_v53  ;;  %v5753_v42 = vld [vmem:[#allocation11 + $0x9c] sm:$0xf] }
 0x37f   : > { %3605 = vmatpush.bf16.msrb.mxu3 %v5574_v6  ;;  %3633 = vmatpush.bf16.msra.mxu1 %v5066_v12  ;;  %v5944_v6 = vld [vmem:[#allocation11 + $0x694] sm:$0xf]  ;;  %v4585_v12 = vld [vmem:[#allocation11 + $0x18] sm:$0xf] }
 0x380   : > { %3621 = vmatpush.bf16.msra.mxu0 %v4746_v13  ;;  %3593 = vmatpush.bf16.msrb.mxu2 %v5254_v0  ;;  %v5741_v13 = vld [vmem:[#allocation11 + $0x34] sm:$0xf0]  ;;  %v5414_v0 = vor.u32 %v5944_v6, %v5411_v8  ;;  %v5849_v8 = vld [vmem:[#allocation11 + $0x39c] sm:$0xf] }
 0x381   : > { %v4586_v28 = vor.u32 %v5741_v13, %v4585_v12  ;;  %v5981_v6 = vld [vmem:[#allocation11 + $0x7b4] sm:$0xf0]  ;;  %v4715_v12 = vld [vmem:[#allocation11 + $0x138] sm:$0xf0] }
 0x382   : > { %v5449_v53 = vld [vmem:[#allocation11 + $0x6d8] sm:$0xf] }
 0x383   : > { %3606 = vmatpush.bf16.msrb.mxu3 %v5542_v21  ;;  %3634 = vmatpush.bf16.msra.mxu1 %v5034_v7  ;;  %v3308_v20 = vpop.f32.mrf.mxu1  ;;  %v5864_v21 = vld [vmem:[#allocation11 + $0x414] sm:$0xf] }
 0x384   : > { %3622 = vmatpush.bf16.msra.mxu0 %v4714_v26  ;;  %3594 = vmatpush.bf16.msrb.mxu2 %v5222_v34  ;;  %v6646_v25 = vadd.f32 %v3308_v20, %v3295_v16  ;;  %v3348_v7 = vpop.f32.mrf.mxu0  ;;  %v4906_v26 = vor.u32 %v5821_v10, %v4905_v9  ;;  %v1988_v34 = vperm.slane %v6635_v14, 1  ;;  %v5035_v9 = vld [vmem:[#allocation11 + $0x3b8] sm:$0xf0] }
 0x385   : > { %v5769_v10 = vld [vmem:[#allocation11 + $0x11c] sm:$0xf]  ;;  %v5038_v19 = vor.u32 %v5849_v8, %v5035_v9  ;;  %v5949_v8 = vld [vmem:[#allocation11 + $0x6b4] sm:$0xf0] }
 0x386   : > { %v3349_v51 = vadd.f32 %v3348_v7, %v1988_v34  ;;  %v4718_v20 = vor.u32 %v5769_v10, %v4715_v12  ;;  %v5003_v7 = vld [vmem:[#allocation11 + $0x378] sm:$0xf0] }
 0x387   : > { %3607 = vmatpush.bf16.msrb.mxu3 %v5510_v35  ;;  %3635 = vmatpush.bf16.msra.mxu1 %v5002_v39  ;;  %v5094_v35 = vor.u32 %v5864_v21, %v5091_v22  ;;  %v5382_v39 = vor.u32 %v5936_v30, %v5379_v5  ;;  %v5973_v21 = vld [vmem:[#allocation11 + $0x774] sm:$0xf0]  ;;  %v5841_v22 = vld [vmem:[#allocation11 + $0x35c] sm:$0xf] }
 0x388   : > { %3623 = vmatpush.bf16.msra.mxu0 %v4682_v40  ;;  %3595 = vmatpush.bf16.msrb.mxu2 %v5190_v60  ;;  %v5289_v40 = vld [vmem:[#allocation11 + $0x598] sm:$0xf]  ;;  %v4782_v60 = vor.u32 %v5785_v36, %v4779_v37  ;;  %v5006_v36 = vor.u32 %v5841_v22, %v5003_v7  ;;  %v5817_v9 = vld [vmem:[#allocation11 + $0x29c] sm:$0xf] }
 0x389   : > { %v5290_v57 = vor.u32 %v5917_v41, %v5289_v40  ;;  %v5833_v40 = vld [vmem:[#allocation11 + $0x31c] sm:$0xf]  ;;  %v5097_v22 = vld [vmem:[#allocation11 + $0x418] sm:$0xf] }
 0x38a   : > { %v4971_v41 = vld [vmem:[#allocation11 + $0x338] sm:$0xf0] }
 0x38b   : > { %3608 = vmatpush.bf16.msrb.mxu3 %v5478_v49  ;;  %3636 = vmatpush.bf16.msra.mxu1 %v4970_v54  ;;  %v5989_v49 = vld [vmem:[#allocation11 + $0x7f4] sm:$0xf0]  ;;  %v5777_v54 = vld [vmem:[#allocation11 + $0x15c] sm:$0xf]  ;;  %v3362_v56 = vpop.f32.mrf.mxu1  ;;  %v4974_v50 = vor.u32 %v5833_v40, %v4971_v41 }
 0x38c   : > { %3624 = vmatpush.bf16.msra.mxu0 %v4650_v55  ;;  %3596 = vmatpush.bf16.msrb.mxu2 %v5158_v61  ;;  %v4747_v55 = vld [vmem:[#allocation11 + $0x178] sm:$0xf0]  ;;  %v6651_v24 = vadd.f32 %v3362_v56, %v3349_v51  ;;  %v3350_v27 = vpop.f32.mrf.mxu0  ;;  %v5578_v61 = vor.u32 %v5989_v49, %v5577_v48  ;;  %v5161_v48 = vld [vmem:[#allocation11 + $0x498] sm:$0xf] }
 0x38d   : > { %v3351_v23 = vadd.f32 %v3350_v27, %v1988_v34  ;;  %v5885_v49 = vld [vmem:[#allocation11 + $0x4b4] sm:$0xf0]  ;;  %v4619_v27 = vld [vmem:[#allocation11 + $0x78] sm:$0xf0] }
 0x38e   : > { %v4907_v12 = vld [vmem:[#allocation11 + $0x2b8] sm:$0xf0] }
 0x38f   : > { %3609 = vmatpush.bf16.msrb.mxu3 %v5446_v62  ;;  %3637 = vmatpush.bf16.msra.mxu1 %v4938_v2  ;;  %v5257_v62 = vld [vmem:[#allocation11 + $0x558] sm:$0xf]  ;;  %v4750_v2 = vor.u32 %v5777_v54, %v4747_v55  ;;  %v5825_v55 = vld [vmem:[#allocation11 + $0x2dc] sm:$0xf] }
 0x390   : > { %3625 = vmatpush.bf16.msra.mxu0 %v4618_v4  ;;  %3597 = vmatpush.bf16.msrb.mxu2 %v5126_v17  ;;  %v5545_v4 = vld [vmem:[#allocation11 + $0x798] sm:$0xf]  ;;  %v5258_v13 = vor.u32 %v5909_v15, %v5257_v62  ;;  %v5921_v7 = vld [vmem:[#allocation11 + $0x5dc] sm:$0xf] }
 0x391   : > { %v5546_v16 = vor.u32 %v5981_v6, %v5545_v4  ;;  %v5225_v17 = vld [vmem:[#allocation11 + $0x518] sm:$0xf]  ;;  %v5913_v40 = vld [vmem:[#allocation11 + $0x59c] sm:$0xf] }
 0x392   : > { %v5226_v30 = vor.u32 %v5901_v18, %v5225_v17  ;;  %v5957_v54 = vld [vmem:[#allocation11 + $0x6f4] sm:$0xf0]  ;;  %v5291_v41 = vld [vmem:[#allocation11 + $0x5b8] sm:$0xf0] }
 0x393   : > { %3610 = vmatpush.bf16.msrb.mxu3 %v5414_v0  ;;  %3638 = vmatpush.bf16.msra.mxu1 %v4906_v26  ;;  %v5513_v0 = vld [vmem:[#allocation11 + $0x758] sm:$0xf]  ;;  %v5761_v26 = vld [vmem:[#allocation11 + $0xdc] sm:$0xf]  ;;  %v3364_v29 = vpop.f32.mrf.mxu1  ;;  %v5450_v62 = vor.u32 %v5957_v54, %v5449_v53 }
 0x394   : > { %3626 = vmatpush.bf16.msra.mxu0 %v4586_v28  ;;  %3598 = vmatpush.bf16.msrb.mxu2 %v5094_v35  ;;  %v4683_v28 = vld [vmem:[#allocation11 + $0xf8] sm:$0xf0]  ;;  %v6659_v5 = vadd.f32 %v3364_v29, %v3351_v23  ;;  %v5514_v32 = vor.u32 %v5973_v21, %v5513_v0  ;;  %v5893_v35 = vld [vmem:[#allocation11 + $0x4f4] sm:$0xf0] }
 0x395   : > { %v4686_v37 = vor.u32 %v5761_v26, %v4683_v28  ;;  %v5194_v46 = vor.u32 %v5893_v35, %v5193_v33  ;;  %v5129_v15 = vld [vmem:[#allocation11 + $0x458] sm:$0xf]  ;;  %v4910_v26 = vor.u32 %v5817_v9, %v4907_v12  ;;  %v5323_v29 = vld [vmem:[#allocation11 + $0x5f8] sm:$0xf0] }
 0x396   : > { %v3404_v34 = vpop.f32.mrf.mxu0  ;;  %v5417_v6 = vld [vmem:[#allocation11 + $0x698] sm:$0xf]  ;;  %v5809_v35 = vld [vmem:[#allocation11 + $0x25c] sm:$0xf] }
 0x397   : > { %3611 = vmatpush.bf16.msrb.mxu3 %v5382_v39  ;;  %3639 = vmatpush.bf16.msra.mxu1 %v4874_v43  ;;  %v5965_v39 = vld [vmem:[#allocation11 + $0x734] sm:$0xf0]  ;;  %v4651_v43 = vld [vmem:[#allocation11 + $0xb8] sm:$0xf0]  ;;  %v5418_v21 = vor.u32 %v5949_v8, %v5417_v6 }
 0x398   : > { %3675 = vmatpush.bf16.msrb.mxu0 %v4814_v31  ;;  %3647 = vmatpush.bf16.msra.mxu2 %v5322_v38  ;;  %v1989_v31 = vperm.slane %v6635_v14, 2  ;;  %v5481_v38 = vld [vmem:[#allocation11 + $0x718] sm:$0xf]  ;;  %v4654_v51 = vor.u32 %v5753_v42, %v4651_v43  ;;  %v5969_v6 = vld [vmem:[#allocation11 + $0x75c] sm:$0xf] }
 0x399   : > { %3627 = vmatmul.bf16.vlgmr.msra.gmra.mxu0 %v6602_v45  ;;  %3599 = vmatmul.bf16.vlgmr.msrb.gmra.mxu2 %v6612_v58  ;;  %v3320_v44 = vpop.f32.mrf.mxu2  ;;  %v5869_v23 = vld [vmem:[#allocation11 + $0x434] sm:$0xf0] }
 0x39a   : > { %v3321_v47 = vadd.f32 %v3320_v44, %v6642_v52  ;;  %v3405_v56 = vadd.f32 %v3404_v34, %v1989_v31  ;;  %v4875_v34 = vld [vmem:[#allocation11 + $0x278] sm:$0xf0]  ;;  %v5353_v42 = vld [vmem:[#allocation11 + $0x618] sm:$0xf] }
 0x39b   : > { %3612 = vmatpush.bf16.msrb.mxu3 %v5350_v59  ;;  %3640 = vmatpush.bf16.msra.mxu1 %v4842_v11  ;;  %v5745_v59 = vld [vmem:[#allocation11 + $0x5c] sm:$0xf]  ;;  %v3418_v11 = vpop.f32.mrf.mxu1  ;;  %v4878_v43 = vor.u32 %v5809_v35, %v4875_v34  ;;  %v5933_v44 = vld [vmem:[#allocation11 + $0x634] sm:$0xf0] }
 0x39c   : > { %3676 = vmatpush.bf16.msrb.mxu0 %v4782_v60  ;;  %3648 = vmatpush.bf16.msra.mxu2 %v5290_v57  ;;  %v5482_v60 = vor.u32 %v5965_v39, %v5481_v38  ;;  %v4939_v57 = vld [vmem:[#allocation11 + $0x2f8] sm:$0xf0]  ;;  %v6665_v52 = vadd.f32 %v3418_v11, %v3405_v56  ;;  %v4622_v4 = vor.u32 %v5745_v59, %v4619_v27 }
 0x39d   : > { %v5326_v38 = vor.u32 %v5921_v7, %v5323_v29  ;;  %v5354_v53 = vor.u32 %v5933_v44, %v5353_v42  ;;  %v5905_v59 = vld [vmem:[#allocation11 + $0x55c] sm:$0xf] }
 0x39e   : > { %3613 = vmatmul.bf16.vlgmr.msrb.gmra.mxu3 %v6616_v3  ;;  %3641 = vmatmul.bf16.vlgmr.msra.gmra.mxu1 %v6605_v63  ;;  %v3406_v17 = vpop.f32.mrf.mxu0  ;;  %v5259_v27 = vld [vmem:[#allocation11 + $0x578] sm:$0xf0] }
 0x39f   : > { %3661 = vmatpush.bf16.msra.mxu3 %v5578_v61  ;;  %3689 = vmatpush.bf16.msrb.mxu1 %v5070_v1  ;;  %v5162_v61 = vor.u32 %v5885_v49, %v5161_v48  ;;  %v5877_v1 = vld [vmem:[#allocation11 + $0x474] sm:$0xf0]  ;;  %v3407_v33 = vadd.f32 %v3406_v17, %v1989_v31  ;;  %v5579_v48 = vld [vmem:[#allocation11 + $0x7f8] sm:$0xf0] }
 0x3a0   : > { %3677 = vmatpush.bf16.msrb.mxu0 %v4750_v2  ;;  %3649 = vmatpush.bf16.msra.mxu2 %v5258_v13  ;;  %v4942_v2 = vor.u32 %v5825_v55, %v4939_v57  ;;  %v5737_v13 = vld [vmem:[#allocation11 + $0x1c] sm:$0xf] }
 0x3a1   : > { %v3334_v10 = vpop.f32.mrf.mxu3  ;;  %v5977_v11 = vld [vmem:[#allocation11 + $0x79c] sm:$0xf] }
 0x3a2   : > { %v3335_v18 = vadd.f32 %v3334_v10, %v3321_v47  ;;  %v4843_v47 = vld [vmem:[#allocation11 + $0x238] sm:$0xf0] }
 0x3a3   : > { %3662 = vmatpush.bf16.msra.mxu3 %v5546_v16  ;;  %3690 = vmatpush.bf16.msrb.mxu1 %v5038_v19  ;;  %v4587_v16 = vld [vmem:[#allocation11 + $0x38] sm:$0xf0]  ;;  %v3322_v19 = vpop.f32.mrf.mxu2 }
 0x3a4   : > { %3678 = vmatpush.bf16.msrb.mxu0 %v4718_v20  ;;  %3650 = vmatpush.bf16.msra.mxu2 %v5226_v30  ;;  %v5130_v20 = vor.u32 %v5877_v1, %v5129_v15  ;;  %v3323_v0 = vadd.f32 %v3322_v19, %v6646_v25  ;;  %v4590_v28 = vor.u32 %v5737_v13, %v4587_v16  ;;  %v5385_v30 = vld [vmem:[#allocation11 + $0x658] sm:$0xf]  ;;  %v5897_v1 = vld [vmem:[#allocation11 + $0x51c] sm:$0xf] }
 0x3a5   : > { %v5889_v13 = vld [vmem:[#allocation11 + $0x4dc] sm:$0xf] }
 0x3a6   : > { %v5195_v16 = vld [vmem:[#allocation11 + $0x4f8] sm:$0xf0] }
 0x3a7   : > { %3663 = vmatpush.bf16.msra.mxu3 %v5514_v32  ;;  %3691 = vmatpush.bf16.msrb.mxu1 %v5006_v36  ;;  %v5941_v32 = vld [vmem:[#allocation11 + $0x674] sm:$0xf0]  ;;  %v3420_v36 = vpop.f32.mrf.mxu1  ;;  %v5483_v19 = vld [vmem:[#allocation11 + $0x738] sm:$0xf0] }
 0x3a8   : > { %3679 = vmatpush.bf16.msrb.mxu0 %v4686_v37  ;;  %3651 = vmatpush.bf16.msra.mxu2 %v5194_v46  ;;  %v5098_v37 = vor.u32 %v5869_v23, %v5097_v22  ;;  %v6670_v25 = vadd.f32 %v3420_v36, %v3407_v33  ;;  %v5386_v39 = vor.u32 %v5941_v32, %v5385_v30  ;;  %v5801_v46 = vld [vmem:[#allocation11 + $0x21c] sm:$0xf] }
 0x3a9   : > { %v3336_v31 = vpop.f32.mrf.mxu3  ;;  %v4846_v54 = vor.u32 %v5801_v46, %v4843_v47  ;;  %v5163_v23 = vld [vmem:[#allocation11 + $0x4b8] sm:$0xf0] }
 0x3aa   : > { %v3337_v49 = vadd.f32 %v3336_v31, %v3323_v0  ;;  %v1990_v0 = vperm.slane %v6635_v14, 3  ;;  %v5419_v42 = vld [vmem:[#allocation11 + $0x6b8] sm:$0xf0] }
 0x3ab   : > { %3664 = vmatpush.bf16.msra.mxu3 %v5482_v60  ;;  %3692 = vmatpush.bf16.msrb.mxu1 %v4974_v50  ;;  %v5985_v60 = vld [vmem:[#allocation11 + $0x7dc] sm:$0xf]  ;;  %v3376_v50 = vpop.f32.mrf.mxu2 }
 0x3ac   : > { %3680 = vmatpush.bf16.msrb.mxu0 %v4654_v51  ;;  %3652 = vmatpush.bf16.msra.mxu2 %v5162_v61  ;;  %v5294_v51 = vor.u32 %v5913_v40, %v5291_v41  ;;  %v3732_v55 = vmax.f32 %v3335_v18, %v3337_v49  ;;  %v3377_v56 = vadd.f32 %v3376_v50, %v6651_v24  ;;  %v5547_v61 = vld [vmem:[#allocation11 + $0x7b8] sm:$0xf0] }
 0x3ad   : > { %v5582_v57 = vor.u32 %v5985_v60, %v5579_v48  ;;  %v5550_v15 = vor.u32 %v5977_v11, %v5547_v61  ;;  %v5515_v24 = vld [vmem:[#allocation11 + $0x778] sm:$0xf0] }
 0x3ae   : > { %v5518_v12 = vor.u32 %v5969_v6, %v5515_v24  ;;  %v5961_v18 = vld [vmem:[#allocation11 + $0x71c] sm:$0xf] }
 0x3af   : > { %3665 = vmatpush.bf16.msra.mxu3 %v5450_v62  ;;  %3693 = vmatpush.bf16.msrb.mxu1 %v4942_v2  ;;  %v5262_v62 = vor.u32 %v5905_v59, %v5259_v27  ;;  %v5227_v2 = vld [vmem:[#allocation11 + $0x538] sm:$0xf0]  ;;  %v5486_v22 = vor.u32 %v5961_v18, %v5483_v19 }
 0x3b0   : > { %3681 = vmatpush.bf16.msrb.mxu0 %v4622_v4  ;;  %3653 = vmatpush.bf16.msra.mxu2 %v5130_v20  ;;  %v5230_v9 = vor.u32 %v5897_v1, %v5227_v2  ;;  %v3733_v20 = vrot.slane %v3732_v55, 4  ;;  %v5131_v40 = vld [vmem:[#allocation11 + $0x478] sm:$0xf0] }
 0x3b1   : > { %v3390_v4 = vpop.f32.mrf.mxu3  ;;  %v5945_v41 = vld [vmem:[#allocation11 + $0x69c] sm:$0xf] }
 0x3b2   : > { %v3391_v8 = vadd.f32 %v3390_v4, %v3377_v56  ;;  %v5422_v60 = vor.u32 %v5945_v41, %v5419_v42  ;;  %v5865_v48 = vld [vmem:[#allocation11 + $0x41c] sm:$0xf] }
 0x3b3   : > { %3666 = vmatpush.bf16.msra.mxu3 %v5418_v21  ;;  %3694 = vmatpush.bf16.msrb.mxu1 %v4910_v26  ;;  %v5198_v21 = vor.u32 %v5889_v13, %v5195_v16  ;;  %v5953_v26 = vld [vmem:[#allocation11 + $0x6dc] sm:$0xf] }
 0x3b4   : > { %3682 = vmatpush.bf16.msrb.mxu0 %v4590_v28  ;;  %3654 = vmatpush.bf16.msra.mxu2 %v5098_v37  ;;  %v5451_v28 = vld [vmem:[#allocation11 + $0x6f8] sm:$0xf0] }
 0x3b5   : > { %v5099_v49 = vld [vmem:[#allocation11 + $0x438] sm:$0xf0] }
 0x3b6   : > { %v3460_v17 = vpop.f32.mrf.mxu0  ;;  %v5937_v50 = vld [vmem:[#allocation11 + $0x65c] sm:$0xf]  ;;  %v5102_v27 = vor.u32 %v5865_v48, %v5099_v49 }
 0x3b7   : > { %3667 = vmatpush.bf16.msra.mxu3 %v5386_v39  ;;  %3695 = vmatpush.bf16.msrb.mxu1 %v4878_v43  ;;  %v3461_v29 = vadd.f32 %v3460_v17, %v1990_v0  ;;  %v5873_v39 = vld [vmem:[#allocation11 + $0x45c] sm:$0xf] }
 0x3b8   : > { %3703 = vmatpush.bf16.msrb.mxu2 %v5326_v38  ;;  %3683 = vmatmul.bf16.vlgmr.msrb.gmra.mxu0 %v6602_v45  ;;  %v3378_v45 = vpop.f32.mrf.mxu2  ;;  %v5454_v38 = vor.u32 %v5953_v26, %v5451_v28  ;;  %v5134_v47 = vor.u32 %v5873_v39, %v5131_v40  ;;  %v5929_v1 = vld [vmem:[#allocation11 + $0x61c] sm:$0xf] }
 0x3b9   : > { %3655 = vmatmul.bf16.vlgmr.msra.gmra.mxu2 %v6612_v58  ;;  %v3379_v10 = vadd.f32 %v3378_v45, %v6659_v5  ;;  %v3392_v7 = vpop.f32.mrf.mxu3  ;;  %v3734_v5 = vmax.f32 %v3732_v55, %v3733_v20  ;;  %v5355_v2 = vld [vmem:[#allocation11 + $0x638] sm:$0xf0] }
 0x3bb   : > { %3668 = vmatpush.bf16.msra.mxu3 %v5354_v53  ;;  %3696 = vmatpush.bf16.msrb.mxu1 %v4846_v54  ;;  %v3393_v30 = vadd.f32 %v3392_v7, %v3379_v10  ;;  %v3474_v32 = vpop.f32.mrf.mxu1  ;;  %v3735_v43 = vrot.slane %v3734_v5, 2 }
 0x3bc   : > { %3704 = vmatpush.bf16.msrb.mxu2 %v5294_v51  ;;  %v3475_v36 = vadd.f32 %v3474_v32, %v3461_v29  ;;  %v5387_v51 = vld [vmem:[#allocation11 + $0x678] sm:$0xf0] }
 0x3bd   : > { %v3739_v34 = vmax.f32 %v3391_v8, %v3393_v30  ;;  %v3736_v53 = vmax.f32 %v3734_v5, %v3735_v43  ;;  %v5358_v8 = vor.u32 %v5929_v1, %v5355_v2 }
 0x3be   : > { %3669 = vmatmul.bf16.vlgmr.msra.gmra.mxu3 %v6616_v3  ;;  %3697 = vmatmul.bf16.vlgmr.msrb.gmra.mxu1 %v6605_v63  ;;  %v5881_v63 = vld [vmem:[#allocation11 + $0x49c] sm:$0xf]  ;;  %v3462_v46 = vpop.f32.mrf.mxu0 }
 0x3bf   : > { %3717 = vmatpush.bf16.msrb.mxu3 %v5582_v57  ;;  %v5166_v35 = vor.u32 %v5881_v63, %v5163_v23  ;;  %v3740_v44 = vrot.slane %v3739_v34, 4  ;;  %v3463_v54 = vadd.f32 %v3462_v46, %v1990_v0  ;;  %v3737_v4 = vrot.slane %v3736_v53, 1 }
 0x3c0   : > { %3705 = vmatpush.bf16.msrb.mxu2 %v5262_v62  ;;  %v3432_v33 = vpop.f32.mrf.mxu2 }
 0x3c1   : > { %v3433_v37 = vadd.f32 %v3432_v33, %v6665_v52  ;;  %v3741_v31 = vmax.f32 %v3739_v34, %v3740_v44  ;;  %v3446_v55 = vpop.f32.mrf.mxu3  ;;  %v3738_v45 = vmax.f32 %v3736_v53, %v3737_v4 }
 0x3c3   : > { %3718 = vmatpush.bf16.msrb.mxu3 %v5550_v15  ;;  %v3742_v52 = vrot.slane %v3741_v31, 2  ;;  %v3447_v56 = vadd.f32 %v3446_v55, %v3433_v37  ;;  %v3476_v57 = vpop.f32.mrf.mxu1  ;;  %v5390_v15 = vor.u32 %v5937_v50, %v5387_v51 }
 0x3c4   : > { %3706 = vmatpush.bf16.msrb.mxu2 %v5230_v9  ;;  %v3477_v61 = vadd.f32 %v3476_v57, %v3463_v54 }
 0x3c5   : > { %v3743_v11 = vmax.f32 %v3741_v31, %v3742_v52 }
 0x3c7   : > { %3719 = vmatpush.bf16.msrb.mxu3 %v5518_v12  ;;  %v3744_v6 = vrot.slane %v3743_v11, 1 }
 0x3c8   : > { %3707 = vmatpush.bf16.msrb.mxu2 %v5198_v21  ;;  %v3434_v59 = vpop.f32.mrf.mxu2 }
 0x3c9   : > { %v3435_v62 = vadd.f32 %v3434_v59, %v6670_v25  ;;  %v3745_v24 = vmax.f32 %v3743_v11, %v3744_v6  ;;  %v3448_v10 = vpop.f32.mrf.mxu3  ;;  %v1991_v11 = vperm.slane %v6635_v14, 4 }
 0x3cb   : > { %3720 = vmatpush.bf16.msrb.mxu3 %v5486_v22  ;;  %v3796_v9 = vrot.slane %v3745_v24, 7  ;;  %v3449_v12 = vadd.f32 %v3448_v10, %v3435_v62 }
 0x3cc   : > { %3708 = vmatpush.bf16.msrb.mxu2 %v5166_v35 }
 0x3cd   : > { %v3804_v13 = vsel %vm3803_vm9, %v3738_v45, %v3796_v9  ;;  %v3746_v25 = vmax.f32 %v3447_v56, %v3449_v12 }
 0x3cf   : > { %3721 = vmatpush.bf16.msrb.mxu3 %v5454_v38  ;;  %v3747_v19 = vrot.slane %v3746_v25, 4 }
 0x3d0   : > { %3709 = vmatpush.bf16.msrb.mxu2 %v5134_v47 }
 0x3d1   : > { %v3748_v22 = vmax.f32 %v3746_v25, %v3747_v19 }
 0x3d3   : > { %3722 = vmatpush.bf16.msrb.mxu3 %v5422_v60  ;;  %v3749_v23 = vrot.slane %v3748_v22, 2 }
 0x3d4   : > { %3710 = vmatpush.bf16.msrb.mxu2 %v5102_v27  ;;  %v1992_v27 = vperm.slane %v6635_v14, 5 }
 0x3d6   : > { %v3516_v39 = vpop.f32.mrf.mxu0 }
 0x3d7   : > { %3723 = vmatpush.bf16.msrb.mxu3 %v5390_v15  ;;  %3711 = vmatmul.bf16.vlgmr.msrb.gmra.mxu2 %v6612_v58  ;;  %v3750_v58 = vmax.f32 %v3748_v22, %v3749_v23  ;;  %v1993_v15 = vperm.slane %v6635_v14, 6 }
 0x3d9   : > { %v3751_v29 = vrot.slane %v3750_v58, 1 }
 0x3db   : > { %3724 = vmatpush.bf16.msrb.mxu3 %v5358_v8  ;;  %v3752_v33 = vmax.f32 %v3750_v58, %v3751_v29  ;;  %v3530_v40 = vpop.f32.mrf.mxu1  ;;  %v3517_v8 = vadd.f32 %v3516_v39, %v1991_v11 }
 0x3dc   : > { %v3488_v16 = vpop.f32.mrf.mxu2 }
 0x3dd   : > { %v3489_v17 = vadd.f32 %v3488_v16, %v3475_v36  ;;  %v3797_v34 = vrot.slane %v3752_v33, 6  ;;  %v3531_v25 = vadd.f32 %v3530_v40, %v3517_v8 }
 0x3de   : > { %3725 = vmatmul.bf16.vlgmr.msrb.gmra.mxu3 %v6616_v3  ;;  %v3518_v43 = vpop.f32.mrf.mxu0 }
 0x3df   : > { %v3519_v1 = vadd.f32 %v3518_v43, %v1991_v11 }
 0x3e1   : > { %v3502_v18 = vpop.f32.mrf.mxu3 }
 0x3e2   : > { %v3503_v20 = vadd.f32 %v3502_v18, %v3489_v17 }
 0x3e3   : > { %v3532_v44 = vpop.f32.mrf.mxu1 }
 0x3e4   : > { %v3490_v0 = vpop.f32.mrf.mxu2  ;;  %v3533_v45 = vadd.f32 %v3532_v44, %v3519_v1 }
 0x3e5   : > { %v3491_v21 = vadd.f32 %v3490_v0, %v3477_v61 }
 0x3e9   : > { %v3504_v63 = vpop.f32.mrf.mxu3 }
 0x3ea   : > { %v3505_v7 = vadd.f32 %v3504_v63, %v3491_v21 }
 0x3ec   : > { %v3753_v26 = vmax.f32 %v3503_v20, %v3505_v7 }
 0x3ee   : > { %v3754_v28 = vrot.slane %v3753_v26, 4 }
 0x3f0   : > { %v3755_v5 = vmax.f32 %v3753_v26, %v3754_v28 }
 0x3f2   : > { %v3756_v30 = vrot.slane %v3755_v5, 2 }
 0x3f4   : > { %v3757_v32 = vmax.f32 %v3755_v5, %v3756_v30 }
 0x3f6   : > { %v3758_v3 = vrot.slane %v3757_v32, 1  ;;  %v3572_v47 = vpop.f32.mrf.mxu0 }
 0x3f7   : > { %v3573_v2 = vadd.f32 %v3572_v47, %v1992_v27 }
 0x3f8   : > { %v3759_v35 = vmax.f32 %v3757_v32, %v3758_v3 }
 0x3fa   : > { %v3798_v36 = vrot.slane %v3759_v35, 5  ;;  %v1994_v35 = vperm.slane %v6635_v14, 7 }
 0x3fb   : > { %v3586_v60 = vpop.f32.mrf.mxu1 }
 0x3fc   : > { %v3806_v37 = vsel %vm3805_vm10, %v3797_v34, %v3798_v36  ;;  %v3544_v41 = vpop.f32.mrf.mxu2  ;;  %v3587_v9 = vadd.f32 %v3586_v60, %v3573_v2 }
 0x3fd   : > { %v6683_v38 = vsel %vm3807_vm11, %v3804_v13, %v3806_v37  ;;  %v3545_v22 = vadd.f32 %v3544_v41, %v3531_v25 }
 0x3fe   : > { %v3574_v50 = vpop.f32.mrf.mxu0 }
 0x3ff   : > { %v3575_v62 = vadd.f32 %v3574_v50, %v1992_v27 }
 0x401   : > { %v3558_v42 = vpop.f32.mrf.mxu3 }
 0x402   : > { %v3559_v28 = vadd.f32 %v3558_v42, %v3545_v22 }
 0x403   : > { %v3588_v51 = vpop.f32.mrf.mxu1 }
 0x404   : > { %v3546_v46 = vpop.f32.mrf.mxu2  ;;  %v3589_v4 = vadd.f32 %v3588_v51, %v3575_v62 }
 0x405   : > { %v3547_v16 = vadd.f32 %v3546_v46, %v3533_v45 }
 0x409   : > { %v3560_v31 = vpop.f32.mrf.mxu3 }
 0x40a   : > { %v3561_v23 = vadd.f32 %v3560_v31, %v3547_v16  ;;  %v3731_v16 = vld [vmem:[#allocation3] sm:$0xff] }
 0x40c   : > { %v3760_v32 = vmax.f32 %v3559_v28, %v3561_v23 }
 0x40e   : > { %v3761_v37 = vrot.slane %v3760_v32, 4 }
 0x410   : > { %v3762_v47 = vmax.f32 %v3760_v32, %v3761_v37 }
 0x416   : > { %v3628_v52 = vpop.f32.mrf.mxu0 }
 0x417   : > { %v3629_v10 = vadd.f32 %v3628_v52, %v1993_v15 }
 0x41b   : > { %v3642_v55 = vpop.f32.mrf.mxu1 }
 0x41c   : > { %v3600_v48 = vpop.f32.mrf.mxu2  ;;  %v3643_v20 = vadd.f32 %v3642_v55, %v3629_v10 }
 0x41d   : > { %v3601_v19 = vadd.f32 %v3600_v48, %v3587_v9 }
 0x41e   : > { %v3630_v59 = vpop.f32.mrf.mxu0 }
 0x41f   : > { %v3631_v6 = vadd.f32 %v3630_v59, %v1993_v15 }
 0x421   : > { %v3614_v49 = vpop.f32.mrf.mxu3 }
 0x422   : > { %v3615_v7 = vadd.f32 %v3614_v49, %v3601_v19 }
 0x423   : > { %v3644_v61 = vpop.f32.mrf.mxu1 }
 0x424   : > { %v3602_v53 = vpop.f32.mrf.mxu2  ;;  %v3645_v13 = vadd.f32 %v3644_v61, %v3631_v6 }
 0x425   : > { %v3603_v12 = vadd.f32 %v3602_v53, %v3589_v4  ;;  %v3763_v53 = vrot.slane %v3762_v47, 2 }
 0x429   : > { %v3616_v54 = vpop.f32.mrf.mxu3 }
 0x42a   : > { %v3617_v0 = vadd.f32 %v3616_v54, %v3603_v12 }
 0x42c   : > { %v3767_v5 = vmax.f32 %v3615_v7, %v3617_v0 }
 0x42e   : > { %v3768_v3 = vrot.slane %v3767_v5, 4 }
 0x430   : > { %v3769_v41 = vmax.f32 %v3767_v5, %v3768_v3 }
 0x432   : > { %v3770_v48 = vrot.slane %v3769_v41, 2 }
 0x434   : > { %v3771_v55 = vmax.f32 %v3769_v41, %v3770_v48 }
 0x435   : > { %v3684_v17 = vpop.f32.mrf.mxu0 }
 0x436   : > { %v3685_v43 = vadd.f32 %v3684_v17, %v1994_v35  ;;  %v3772_v11 = vrot.slane %v3771_v55, 1 }
 0x438   : > { %v3773_v2 = vmax.f32 %v3771_v55, %v3772_v11 }
 0x43a   : > { %v3800_v45 = vrot.slane %v3773_v2, 3 }
 0x43b   : > { %v3698_v63 = vpop.f32.mrf.mxu1 }
 0x43c   : > { %v3656_v56 = vpop.f32.mrf.mxu2  ;;  %v3699_v31 = vadd.f32 %v3698_v63, %v3685_v43 }
 0x43d   : > { %v3657_v26 = vadd.f32 %v3656_v56, %v3643_v20  ;;  %v3686_v34 = vpop.f32.mrf.mxu0 }
 0x43e   : > { %v3687_v44 = vadd.f32 %v3686_v34, %v1994_v35 }
 0x441   : > { %v3670_v57 = vpop.f32.mrf.mxu3 }
 0x442   : > { %v3671_v29 = vadd.f32 %v3670_v57, %v3657_v26  ;;  %v3764_v57 = vmax.f32 %v3762_v47, %v3763_v53 }
 0x443   : > { %v3700_v40 = vpop.f32.mrf.mxu1 }
 0x444   : > { %v3658_v24 = vpop.f32.mrf.mxu2  ;;  %v3701_v42 = vadd.f32 %v3700_v40, %v3687_v44  ;;  %v3765_v62 = vrot.slane %v3764_v57, 1 }
 0x445   : > { %v3659_v21 = vadd.f32 %v3658_v24, %v3645_v13 }
 0x446   : > { %v3766_v6 = vmax.f32 %v3764_v57, %v3765_v62 }
 0x448   : > { %v3799_v10 = vrot.slane %v3766_v6, 4 }
 0x449   : > { %v3672_v18 = vpop.f32.mrf.mxu3 }
 0x44a   : > { %v3673_v58 = vadd.f32 %v3672_v18, %v3659_v21  ;;  %v3810_v25 = vsel %vm3809_vm12, %v3799_v10, %v3800_v45 }
 0x44c   : > { %v3774_v33 = vmax.f32 %v3671_v29, %v3673_v58 }
 0x44e   : > { %v3775_v39 = vrot.slane %v3774_v33, 4 }
 0x450   : > { %v3776_v60 = vmax.f32 %v3774_v33, %v3775_v39 }
 0x452   : > { %v3777_v52 = vrot.slane %v3776_v60, 2 }
 0x454   : > { %v3778_v59 = vmax.f32 %v3776_v60, %v3777_v52 }
 0x456   : > { %v3779_v15 = vrot.slane %v3778_v59, 1 }
 0x458   : > { %v3780_v24 = vmax.f32 %v3778_v59, %v3779_v15 }
 0x45a   : > { %v3712_v30 = vpop.f32.mrf.mxu2  ;;  %v3801_v12 = vrot.slane %v3780_v24, 2 }
 0x45b   : > { %v3713_v49 = vadd.f32 %v3712_v30, %v3699_v31 }
 0x461   : > { %v3726_v36 = vpop.f32.mrf.mxu3 }
 0x462   : > { %v3714_v46 = vpop.f32.mrf.mxu2  ;;  %v3727_v14 = vadd.f32 %v3726_v36, %v3713_v49 }
 0x463   : > { %v3715_v50 = vadd.f32 %v3714_v46, %v3701_v42 }
 0x469   : > { %v3728_v51 = vpop.f32.mrf.mxu3 }
 0x46a   : > { %v3729_v54 = vadd.f32 %v3728_v51, %v3715_v50 }
 0x46c   : > { %v3781_v56 = vmax.f32 %v3727_v14, %v3729_v54 }
 0x46e   : > { %v3782_v27 = vrot.slane %v3781_v56, 4 }
 0x470   : > { %v3783_v61 = vmax.f32 %v3781_v56, %v3782_v27 }
 0x472   : > { %v3784_v1 = vrot.slane %v3783_v61, 2 }
 0x474   : > { %v3785_v4 = vmax.f32 %v3783_v61, %v3784_v1 }
 0x476   : > { %v3786_v8 = vrot.slane %v3785_v4, 1 }
 0x478   : > { %v3787_v9 = vmax.f32 %v3785_v4, %v3786_v8 }
 0x47a   : > { %v3802_v13 = vrot.slane %v3787_v9, 1 }
 0x47c   : > { %v3812_v17 = vsel %vm3811_vm13, %v3801_v12, %v3802_v13 }
 0x47d   : > { %v3814_v18 = vsel %vm3813_vm14, %v3810_v25, %v3812_v17 }
 0x47e   : > { %v3816_v19 = vsel %vm3815_vm15, %v6683_v38, %v3814_v18 }
 0x47f   : > { %v3818_v20 = vmax.f32 %v3731_v16, %v3816_v19 }
 0x481   : > { %3819 = vst [vmem:[#allocation3] sm:$0xff] %v3818_v20 }
 0x482 PF: > { %3821 = sbr.rel (!%p676_p5) target bundleno = 1162 (0x48a), region = 96 }
 0x488   : > { %v3822_v0 = vld [vmem:[#allocation3] sm:$0xff] }
 0x489   : > { %3823 = vst [vmem:[%s449_s24] sm:$0xff] %v3822_v0 }
 0x48a PF: > { %s5584_s27 = sshll.u32 %s6324_s17, 3  ;;  %s6779_s19 = sld [smem:[#allocation29_spill]] }
 0x48b   : > { %s3837_s28 = sshll.u32 %s449_s24, 4  ;;  %s3825_s16 = scalar_lea.sflag [#allocation7], %s447_s3  ;;  %s3838_s28 = int_to_ptr.vmem [resolvable:$true] %s3837_s28 }
 0x490   : > { %s6780_s23 = smov %s6779_s19  ;;  %s3835_s20 = scalar_lea.hbm %s6779_s19, %s5584_s27 }
 0x491   : > { %s3839_s30 = sshll.u32 %s3835_s20, 4  ;;  %s6250_s21 = scalar_lea.hbm %s6780_s23, 16  ;;  %s3840_s30 = int_to_ptr.hbm [resolvable:$true] %s3839_s30 }
 0x492   : > { %s6244_s25 = sshra.s32 %s3840_s30, 4  ;;  %s6245_s25 = int_to_ptr.hbm [resolvable:$true] %s6244_s25 }
 0x493   : > { %s6246_s29 = scalar_lea.hbm %s6245_s25, 8  ;;  %p6251_p11 = scmp.lt.s32.totalorder %s6245_s25, %s6780_s23 }
 0x494   : > { %p6247_p7 = scmp.ne.s32.totalorder %s6245_s25, %s6246_s29  ;;  %p6252_p12 = scmp.lt.s32.totalorder %s6250_s21, %s6246_s29 }
 0x496   : > { %p6248_p8 = pnand %p6247_p7, %p6454_p3  ;;  %p6253_p13 = por %p6252_p12, %p6251_p11 }
 0x498   : > { %p6249_p10 = pneg %p6248_p8 }
 0x49a   : > { %p6254_p0 = pnand %p6253_p13, %p6249_p10 }
 0x49c   : > { %6257 = shalt.err (!%p6254_p0)
}
 0x49d   : > { %6006 = dma.vmem_to_hbm [thread:$0]  (%p6454_p3), %s3838_s28, 128, %s3840_s30, %s3825_s16  }
 0x49e PF: > { %s6781_s3 = sld [smem:[#allocation22_spill]] }
 0x49f   : > { %s6782_s10 = sld [smem:[#allocation18_spill]] }
 0x4a4   : > { %p6033_p1 = scmp.ge.s32.totalorder %s6781_s3, 2 }
 0x4a5   : > { %s3851_s5 = sand.u32 1, %s6782_s10  }
 0x4a6   : > { %p6022_p2 = pnand %p6033_p1, %p6464_p9  ;;  %s3852_s15 = scalar_lea.sflag [#allocation7], %s3851_s5 }
 0x4a8   : > { %p6023_p4 = pneg %p6022_p2 }
 0x4aa   : > { %6303 = dma.done.wait (%p6023_p4), %s3852_s15, 128  }
 0x4ab   : > { %6305 = vsyncadd (%p6023_p4), %s3852_s15, 4294967168  ;;  %s26_s20 = sadd.s32 1, %s6781_s3   ;;  %s6784_s27 = sld [smem:[#allocation19_spill]] }
 0x4ac   : > { %p23_p5 = scmp.ge.s32.totalorder %s26_s20, 6   ;;  %s6785_s15 = sld [smem:[#allocation26_spill]] }
 0x4ad   : > { %s6786_s16 = sld [smem:[#allocation20_spill]]  ;;  %s6790_s13 = smov %s6312_s14 }
 0x4ae   : > { %s6787_s17 = sld [smem:[#allocation21_spill]]  ;;  %25 = sbr.rel (!%p23_p5) target bundleno = 12 (0xc), region = 132 }
 0x4af   : > { %s6788_s18 = sld [smem:[#allocation23_spill]] }
 0x4b0   : > { %s6789_s19 = sld [smem:[#allocation24_spill]] }
 0x4b1   : > { %s6791_s14 = smov %s6784_s27 }
 0x4b3   :  { %3858 = vsyncpa [#allocation6], 1 }
 0x4b4   :  { %3860 = vsyncpa [#allocation6 + $0x1], 1 }
 0x4b5   :  { %3861 = vsyncpa [#allocation9], 1 }
 0x4b6   :  { %3862 = vsyncpa [#allocation12], 1 }
 0x4b7   :  { %3863 = vsyncpa [#allocation7], 1 }
 0x4b8   :  { %3865 = vsyncpa [#allocation7 + $0x1], 1 }

</bundles_post_ra>
